<compile_context>
chip_gen: v7x
topology: tpu7x:2x2x1
jax: 0.10.0
libtpu: 0.0.40
codegen_flags: <defaults>
</compile_context>

<pallas_src>
import functools

import numpy as np

import jax
import jax.numpy as jnp
from jax.experimental import pallas as pl
from jax.experimental.pallas import tpu as pltpu

EPS = 1e-5
NEG_SLOPE = 0.2
KH = KW = 4
STRIDE = 2
ROW_PAD = 128     # every flattened image row is padded to one full lane group
SUBLANE = 8


def _leaky(v):
    # LeakyReLU(0.2): max(v, 0.2*v) is exact for all v.
    return jnp.maximum(v, NEG_SLOPE * v)


def _disc_kernel(xf_ref, t1_ref, b1_ref, t2_ref, b2_ref, mc_ref, ms_ref,
                 g2_ref, be2_ref, t3_ref, b3_ref, g3_ref, be3_ref,
                 w4_ref, b4_ref, out_ref, *,
                 n_out1, n_out2, n_real, inv_cnt2, inv_cnt3):
    # xf_ref : (N_pad, H*ROW_PAD)  row-padded NHWC input, zero-padded batch rows
    # t*_ref : shared per-output-row block-Toeplitz conv weights
    # b*_ref : per-output-row bias columns
    # mc/ms  : (D2, C2) / (C2, D2) 0/1 channel collect / scatter matrices
    # g*/be* : (1, C) BatchNorm gamma / beta
    n_pad = out_ref.shape[0]
    win = KH * ROW_PAD        # lanes covered by one 4-row conv window
    step = STRIDE * ROW_PAD   # lane stride between consecutive output rows

    # Rows >= n_real are zero-padded batch rows; conv biases make them nonzero
    # downstream, so mask them out of the BatchNorm statistics explicitly.
    row_mask = (jax.lax.broadcasted_iota(jnp.int32, (n_pad, 1), 0)
                < n_real).astype(jnp.float32)

    # ---- conv1 (4x4, s=2) as n_out1 row-block GEMMs + bias + LeakyReLU ----
    t1 = t1_ref[...]
    b1 = b1_ref[...]
    h1_rows = []
    for oy in range(n_out1):
        xw = xf_ref[:, oy * step:oy * step + win]       # 128-aligned static slice
        h1_rows.append(_leaky(
            jnp.dot(xw, t1, preferred_element_type=jnp.float32) + b1))
    h1 = jnp.concatenate(h1_rows, axis=-1)              # (N_pad, n_out1*ROW_PAD)

    # ---- conv2 + bias ------------------------------------------------------
    t2 = t2_ref[...]
    b2 = b2_ref[...]
    h2_rows = []
    for oy in range(n_out2):
        hw = h1[:, oy * step:oy * step + win]
        h2_rows.append(
            jnp.dot(hw, t2, preferred_element_type=jnp.float32) + b2)
    h2 = jnp.concatenate(h2_rows, axis=-1)              # (N_pad, n_out2*ROW_PAD)

    # BatchNorm2d(16), training-mode batch stats.  Single pass (E[x^2]-mean^2);
    # fine at these scales, a two-pass variance would be safer at training scale.
    h2m = h2 * row_mask
    row_s = jnp.sum(h2m, axis=0, keepdims=True)
    row_q = jnp.sum(h2m * h2, axis=0, keepdims=True)
    stats = jnp.dot(jnp.concatenate([row_s, row_q], axis=0), mc_ref[...],
                    preferred_element_type=jnp.float32)           # (2, C2)
    mean = stats[0:1] * inv_cnt2
    var = stats[1:2] * inv_cnt2 - mean * mean
    scale = g2_ref[...] * jax.lax.rsqrt(var + EPS)
    shift = be2_ref[...] - mean * scale
    cols = jnp.dot(jnp.concatenate([scale, shift], axis=0), ms_ref[...],
                   preferred_element_type=jnp.float32)            # (2, D2)
    h2 = _leaky(h2 * cols[0:1] + cols[1:2])

    # ---- conv3 + bias: spatial collapses to 1x1, flat dim == channels ------
    h3 = jnp.dot(h2[:, 0:win], t3_ref[...],
                 preferred_element_type=jnp.float32) + b3_ref[...]  # (N_pad, C3)
    h3m = h3 * row_mask
    mean3 = jnp.sum(h3m, axis=0, keepdims=True) * inv_cnt3
    var3 = jnp.sum(h3m * h3, axis=0, keepdims=True) * inv_cnt3 - mean3 * mean3
    h3 = _leaky((h3 - mean3) * (g3_ref[...] * jax.lax.rsqrt(var3 + EPS))
                + be3_ref[...])

    # ---- final 1x1 conv (32 -> 1) + sigmoid into one lane-dense slab -------
    # w4 is replicated into lanes 0 and 1 (zeros elsewhere); lane 0 keeps the
    # logit, lane 1 is sigmoid'd in place -> single unmasked 128-lane store.
    slab = jnp.dot(h3, w4_ref[...], preferred_element_type=jnp.float32) + b4_ref[...]
    lane = jax.lax.broadcasted_iota(jnp.int32, slab.shape, 1)
    sig = 1.0 / (1.0 + jnp.exp(-slab))
    out_ref[...] = jnp.where(lane == 1, sig, slab)


# ---------------------------------------------------------------------------
# One-time (per parameter set) numpy weight-layout plumbing.
# ---------------------------------------------------------------------------
def _row_toeplitz(w_oihw, w_in, row_pad_in, row_pad_out):
    """Shared per-output-row block-Toeplitz T_row.

    With each flattened image row padded to `row_pad_in` lanes (NHWC order),
    flat(conv_out_row(oy)) == x_flat[:, oy*STRIDE*row_pad_in : +KH*row_pad_in] @ T_row
    for every output row oy.
    """
    w = np.asarray(w_oihw, np.float32)
    c_out, c_in, kh, kw = w.shape
    w_out = (w_in - kw) // STRIDE + 1
    t = np.zeros((kh * row_pad_in, row_pad_out), np.float32)
    for ox in range(w_out):
        for dy in range(kh):
            for dx in range(kw):
                ib = dy * row_pad_in + (ox * STRIDE + dx) * c_in
                ob = ox * c_out
                t[ib:ib + c_in, ob:ob + c_out] = w[:, :, dy, dx].T
    return t


def _bias_row(b, n_pos, row_pad_out):
    b = np.asarray(b, np.float32)
    row = np.zeros((1, row_pad_out), np.float32)
    row[0, :n_pos * b.shape[0]] = np.tile(b, n_pos)
    return row


def _channel_collect(n_rows, n_pos, c, row_pad):
    m = np.zeros((n_rows * row_pad, c), np.float32)
    eye = np.eye(c, dtype=np.float32)
    for r in range(n_rows):
        for p in range(n_pos):
            base = r * row_pad + p * c
            m[base:base + c, :] = eye
    return m


def make_discriminator_forward(params, image_hw):
    """Builds the kernel constants ONCE and returns a jitted forward(x) fn."""
    (w1, b1, w2, b2, g2, be2, w3, b3, g3, be3, w4, b4) = params
    img_h, img_w = image_hw
    c_in = np.asarray(w1).shape[1]
    c1 = np.asarray(w1).shape[0]
    c2 = np.asarray(w2).shape[0]
    c3 = np.asarray(w3).shape[0]

    h1s, w1s = (img_h - KH) // STRIDE + 1, (img_w - KW) // STRIDE + 1
    h2s, w2s = (h1s - KH) // STRIDE + 1, (w1s - KW) // STRIDE + 1
    h3s, w3s = (h2s - KH) // STRIDE + 1, (w2s - KW) // STRIDE + 1
    assert h3s == 1 and w3s == 1, "expected the third conv to reduce spatial to 1x1"
    assert img_w * c_in <= ROW_PAD and w1s * c1 <= ROW_PAD and w2s * c2 <= ROW_PAD

    t1 = _row_toeplitz(w1, img_w, ROW_PAD, ROW_PAD)
    t2 = _row_toeplitz(w2, w1s, ROW_PAD, ROW_PAD)
    t3 = _row_toeplitz(w3, w2s, ROW_PAD, c3)
    b1r = _bias_row(b1, w1s, ROW_PAD)
    b2r = _bias_row(b2, w2s, ROW_PAD)
    b3r = _bias_row(b3, 1, c3)
    mc = _channel_collect(h2s, w2s, c2, ROW_PAD)
    ms = np.ascontiguousarray(mc.T)

    w4v = np.asarray(w4, np.float32)[:, :, 0, 0][0]     # (c3,)
    w4p = np.zeros((c3, ROW_PAD), np.float32)
    w4p[:, 0] = w4v
    w4p[:, 1] = w4v
    b4p = np.zeros((1, ROW_PAD), np.float32)
    b4p[0, 0] = b4p[0, 1] = float(np.asarray(b4, np.float32).reshape(-1)[0])

    consts = tuple(jnp.asarray(a) for a in (
        t1, b1r, t2, b2r, mc, ms,
        np.asarray(g2, np.float32).reshape(1, c2),
        np.asarray(be2, np.float32).reshape(1, c2),
        t3, b3r,
        np.asarray(g3, np.float32).reshape(1, c3),
        np.asarray(be3, np.float32).reshape(1, c3),
        w4p, b4p))

    vmem = pl.BlockSpec(memory_space=pltpu.MemorySpace.VMEM)

    @jax.jit
    def forward(x):
        n = x.shape[0]
        n_pad = max(SUBLANE, ((n + SUBLANE - 1) // SUBLANE) * SUBLANE)

        # NCHW -> NHWC -> per-row 128-lane padded flat layout; zero-pad batch.
        xr = jnp.transpose(x, (0, 2, 3, 1)).reshape(n, img_h, img_w * c_in)
        xr = jnp.pad(xr, ((0, n_pad - n), (0, 0), (0, ROW_PAD - img_w * c_in)))
        xf = xr.reshape(n_pad, img_h * ROW_PAD)

        kernel = functools.partial(
            _disc_kernel,
            n_out1=h1s, n_out2=h2s, n_real=n,
            inv_cnt2=1.0 / float(n * h2s * w2s),
            inv_cnt3=1.0 / float(n))

        out = pl.pallas_call(
            kernel,
            out_shape=jax.ShapeDtypeStruct((n_pad, ROW_PAD), jnp.float32),
            in_specs=[vmem] * 15,
            out_specs=vmem,
            compiler_params=pltpu.CompilerParams(
                vmem_limit_bytes=8 * 1024 * 1024),
        )(xf, *consts)

        logits = out[:n, 0].reshape(n, 1, 1, 1)
        output = jnp.squeeze(out[:n, 1])
        return logits, output

    return forward


def discriminator_ref(x, params):
    """Pure-JAX reference matching the PyTorch forward (training-mode BN)."""
    (w1, b1, w2, b2, g2, be2, w3, b3, g3, be3, w4, b4) = params

    def conv(v, wt, bs, stride):
        y = jax.lax.conv_general_dilated(
            v, wt, window_strides=(stride, stride), padding='VALID',
            dimension_numbers=('NCHW', 'OIHW', 'NCHW'))
        return y + bs.reshape(1, -1, 1, 1)

    def bn(v, g, b):
        mean = jnp.mean(v, axis=(0, 2, 3), keepdims=True)
        var = jnp.mean((v - mean) ** 2, axis=(0, 2, 3), keepdims=True)
        return ((v - mean) * jax.lax.rsqrt(var + EPS) * g.reshape(1, -1, 1, 1)
                + b.reshape(1, -1, 1, 1))

    def lrelu(v):
        return jnp.where(v > 0, v, NEG_SLOPE * v)

    h = lrelu(conv(x, w1, b1, 2))
    h = lrelu(bn(conv(h, w2, b2, 2), g2, be2))
    h = lrelu(bn(conv(h, w3, b3, 2), g3, be3))
    logits = conv(h, w4, b4, 1)
    return logits, jnp.squeeze(jax.nn.sigmoid(logits))


if __name__ == "__main__":
    # Shapes consistent with the module (AdvGAN-style 28x28 discriminator):
    # three 4x4/stride-2 VALID convs take 28 -> 13 -> 5 -> 1.
    N, IMAGE_NC, H, W = 4, 1, 28, 28

    key = jax.random.PRNGKey(0)
    ks = jax.random.split(key, 13)
    x = jax.random.normal(ks[0], (N, IMAGE_NC, H, W), jnp.float32)
    w1 = 0.1 * jax.random.normal(ks[1], (8, IMAGE_NC, 4, 4), jnp.float32)
    b1 = 0.1 * jax.random.normal(ks[2], (8,), jnp.float32)
    w2 = 0.1 * jax.random.normal(ks[3], (16, 8, 4, 4), jnp.float32)
    b2 = 0.1 * jax.random.normal(ks[4], (16,), jnp.float32)
    g2 = 1.0 + 0.1 * jax.random.normal(ks[5], (16,), jnp.float32)
    be2 = 0.1 * jax.random.normal(ks[6], (16,), jnp.float32)
    w3 = 0.1 * jax.random.normal(ks[7], (32, 16, 4, 4), jnp.float32)
    b3 = 0.1 * jax.random.normal(ks[8], (32,), jnp.float32)
    g3 = 1.0 + 0.1 * jax.random.normal(ks[9], (32,), jnp.float32)
    be3 = 0.1 * jax.random.normal(ks[10], (32,), jnp.float32)
    w4 = 0.1 * jax.random.normal(ks[11], (1, 32, 1, 1), jnp.float32)
    b4 = 0.1 * jax.random.normal(ks[12], (1,), jnp.float32)
    params = (w1, b1, w2, b2, g2, be2, w3, b3, g3, be3, w4, b4)

    # Weight preprocessing happens once here; the returned fn is jitted.
    forward = make_discriminator_forward(params, (H, W))

    logits, output = forward(x)
    logits = jax.block_until_ready(logits)
    output = jax.block_until_ready(output)

    logits_ref, output_ref = discriminator_ref(x, params)

    assert logits.shape == (N, 1, 1, 1), logits.shape
    assert output.shape == (N,), output.shape
    assert jnp.allclose(logits, logits_ref, atol=2e-3, rtol=2e-3), (
        f"logits max abs diff = {jnp.max(jnp.abs(logits - logits_ref))}")
    assert jnp.allclose(output, output_ref, atol=2e-3, rtol=2e-3), (
        f"output max abs diff = {jnp.max(jnp.abs(output - output_ref))}")

    print("KERNEL_OK")
</pallas_src>

<mosaic_0001>
module attributes {stable_mosaic.version = 11 : i64} {
  func.func @_disc_kernel(%arg0: memref<8x3584xf32, #tpu.memory_space<vmem>>, %arg1: memref<512x128xf32, #tpu.memory_space<vmem>>, %arg2: memref<1x128xf32, #tpu.memory_space<vmem>>, %arg3: memref<512x128xf32, #tpu.memory_space<vmem>>, %arg4: memref<1x128xf32, #tpu.memory_space<vmem>>, %arg5: memref<640x16xf32, #tpu.memory_space<vmem>>, %arg6: memref<16x640xf32, #tpu.memory_space<vmem>>, %arg7: memref<1x16xf32, #tpu.memory_space<vmem>>, %arg8: memref<1x16xf32, #tpu.memory_space<vmem>>, %arg9: memref<512x32xf32, #tpu.memory_space<vmem>>, %arg10: memref<1x32xf32, #tpu.memory_space<vmem>>, %arg11: memref<1x32xf32, #tpu.memory_space<vmem>>, %arg12: memref<1x32xf32, #tpu.memory_space<vmem>>, %arg13: memref<32x128xf32, #tpu.memory_space<vmem>>, %arg14: memref<1x128xf32, #tpu.memory_space<vmem>>, %arg15: memref<8x128xf32, #tpu.memory_space<vmem>>) attributes {dimension_semantics = [], scalar_prefetch = 0 : i64, scratch_operands = 0 : i64, tpu.core_type = #tpu.core_type<tc>} {
    %0 = tpu.iota {dimensions = array<i32: 0>} : vector<8x1xi32>
    %c4_i32 = arith.constant 4 : i32
    %1 = vector.broadcast %c4_i32 : i32 to vector<8x1xi32>
    %2 = arith.cmpi slt, %0, %1 : vector<8x1xi32>
    %3 = arith.extui %2 : vector<8x1xi1> to vector<8x1xi32>
    %4 = arith.sitofp %3 : vector<8x1xi32> to vector<8x1xf32>
    %c0 = arith.constant 0 : index
    %c0_0 = arith.constant 0 : index
    %5 = vector.load %arg1[%c0, %c0_0] : memref<512x128xf32, #tpu.memory_space<vmem>>, vector<512x128xf32>
    %c0_1 = arith.constant 0 : index
    %c0_2 = arith.constant 0 : index
    %6 = vector.load %arg2[%c0_1, %c0_2] : memref<1x128xf32, #tpu.memory_space<vmem>>, vector<1x128xf32>
    %c0_3 = arith.constant 0 : index
    %c0_4 = arith.constant 0 : index
    %7 = vector.load %arg0[%c0_3, %c0_4] : memref<8x3584xf32, #tpu.memory_space<vmem>>, vector<8x512xf32>
    %cst = arith.constant dense<0.000000e+00> : vector<8x128xf32>
    %8 = tpu.matmul %7, %5, %cst {dimension_numbers = #tpu.dot_dimension_numbers<[1], [0], [0], [1], [0, 0, 1, 1], [], []>} : vector<8x512xf32>, vector<512x128xf32>, vector<8x128xf32> -> vector<8x128xf32>
    %9 = vector.broadcast %6 : vector<1x128xf32> to vector<8x128xf32>
    %10 = arith.addf %8, %9 : vector<8x128xf32>
    %cst_5 = arith.constant 2.000000e-01 : f32
    %11 = vector.broadcast %cst_5 : f32 to vector<8x128xf32>
    %12 = arith.mulf %11, %10 : vector<8x128xf32>
    %13 = arith.maximumf %10, %12 : vector<8x128xf32>
    %c0_6 = arith.constant 0 : index
    %c256 = arith.constant 256 : index
    %14 = vector.load %arg0[%c0_6, %c256] : memref<8x3584xf32, #tpu.memory_space<vmem>>, vector<8x512xf32>
    %cst_7 = arith.constant dense<0.000000e+00> : vector<8x128xf32>
    %15 = tpu.matmul %14, %5, %cst_7 {dimension_numbers = #tpu.dot_dimension_numbers<[1], [0], [0], [1], [0, 0, 1, 1], [], []>} : vector<8x512xf32>, vector<512x128xf32>, vector<8x128xf32> -> vector<8x128xf32>
    %16 = vector.broadcast %6 : vector<1x128xf32> to vector<8x128xf32>
    %17 = arith.addf %15, %16 : vector<8x128xf32>
    %cst_8 = arith.constant 2.000000e-01 : f32
    %18 = vector.broadcast %cst_8 : f32 to vector<8x128xf32>
    %19 = arith.mulf %18, %17 : vector<8x128xf32>
    %20 = arith.maximumf %17, %19 : vector<8x128xf32>
    %c0_9 = arith.constant 0 : index
    %c512 = arith.constant 512 : index
    %21 = vector.load %arg0[%c0_9, %c512] : memref<8x3584xf32, #tpu.memory_space<vmem>>, vector<8x512xf32>
    %cst_10 = arith.constant dense<0.000000e+00> : vector<8x128xf32>
    %22 = tpu.matmul %21, %5, %cst_10 {dimension_numbers = #tpu.dot_dimension_numbers<[1], [0], [0], [1], [0, 0, 1, 1], [], []>} : vector<8x512xf32>, vector<512x128xf32>, vector<8x128xf32> -> vector<8x128xf32>
    %23 = vector.broadcast %6 : vector<1x128xf32> to vector<8x128xf32>
    %24 = arith.addf %22, %23 : vector<8x128xf32>
    %cst_11 = arith.constant 2.000000e-01 : f32
    %25 = vector.broadcast %cst_11 : f32 to vector<8x128xf32>
    %26 = arith.mulf %25, %24 : vector<8x128xf32>
    %27 = arith.maximumf %24, %26 : vector<8x128xf32>
    %c0_12 = arith.constant 0 : index
    %c768 = arith.constant 768 : index
    %28 = vector.load %arg0[%c0_12, %c768] : memref<8x3584xf32, #tpu.memory_space<vmem>>, vector<8x512xf32>
    %cst_13 = arith.constant dense<0.000000e+00> : vector<8x128xf32>
    %29 = tpu.matmul %28, %5, %cst_13 {dimension_numbers = #tpu.dot_dimension_numbers<[1], [0], [0], [1], [0, 0, 1, 1], [], []>} : vector<8x512xf32>, vector<512x128xf32>, vector<8x128xf32> -> vector<8x128xf32>
    %30 = vector.broadcast %6 : vector<1x128xf32> to vector<8x128xf32>
    %31 = arith.addf %29, %30 : vector<8x128xf32>
    %cst_14 = arith.constant 2.000000e-01 : f32
    %32 = vector.broadcast %cst_14 : f32 to vector<8x128xf32>
    %33 = arith.mulf %32, %31 : vector<8x128xf32>
    %34 = arith.maximumf %31, %33 : vector<8x128xf32>
    %c0_15 = arith.constant 0 : index
    %c1024 = arith.constant 1024 : index
    %35 = vector.load %arg0[%c0_15, %c1024] : memref<8x3584xf32, #tpu.memory_space<vmem>>, vector<8x512xf32>
    %cst_16 = arith.constant dense<0.000000e+00> : vector<8x128xf32>
    %36 = tpu.matmul %35, %5, %cst_16 {dimension_numbers = #tpu.dot_dimension_numbers<[1], [0], [0], [1], [0, 0, 1, 1], [], []>} : vector<8x512xf32>, vector<512x128xf32>, vector<8x128xf32> -> vector<8x128xf32>
    %37 = vector.broadcast %6 : vector<1x128xf32> to vector<8x128xf32>
    %38 = arith.addf %36, %37 : vector<8x128xf32>
    %cst_17 = arith.constant 2.000000e-01 : f32
    %39 = vector.broadcast %cst_17 : f32 to vector<8x128xf32>
    %40 = arith.mulf %39, %38 : vector<8x128xf32>
    %41 = arith.maximumf %38, %40 : vector<8x128xf32>
    %c0_18 = arith.constant 0 : index
    %c1280 = arith.constant 1280 : index
    %42 = vector.load %arg0[%c0_18, %c1280] : memref<8x3584xf32, #tpu.memory_space<vmem>>, vector<8x512xf32>
    %cst_19 = arith.constant dense<0.000000e+00> : vector<8x128xf32>
    %43 = tpu.matmul %42, %5, %cst_19 {dimension_numbers = #tpu.dot_dimension_numbers<[1], [0], [0], [1], [0, 0, 1, 1], [], []>} : vector<8x512xf32>, vector<512x128xf32>, vector<8x128xf32> -> vector<8x128xf32>
    %44 = vector.broadcast %6 : vector<1x128xf32> to vector<8x128xf32>
    %45 = arith.addf %43, %44 : vector<8x128xf32>
    %cst_20 = arith.constant 2.000000e-01 : f32
    %46 = vector.broadcast %cst_20 : f32 to vector<8x128xf32>
    %47 = arith.mulf %46, %45 : vector<8x128xf32>
    %48 = arith.maximumf %45, %47 : vector<8x128xf32>
    %c0_21 = arith.constant 0 : index
    %c1536 = arith.constant 1536 : index
    %49 = vector.load %arg0[%c0_21, %c1536] : memref<8x3584xf32, #tpu.memory_space<vmem>>, vector<8x512xf32>
    %cst_22 = arith.constant dense<0.000000e+00> : vector<8x128xf32>
    %50 = tpu.matmul %49, %5, %cst_22 {dimension_numbers = #tpu.dot_dimension_numbers<[1], [0], [0], [1], [0, 0, 1, 1], [], []>} : vector<8x512xf32>, vector<512x128xf32>, vector<8x128xf32> -> vector<8x128xf32>
    %51 = vector.broadcast %6 : vector<1x128xf32> to vector<8x128xf32>
    %52 = arith.addf %50, %51 : vector<8x128xf32>
    %cst_23 = arith.constant 2.000000e-01 : f32
    %53 = vector.broadcast %cst_23 : f32 to vector<8x128xf32>
    %54 = arith.mulf %53, %52 : vector<8x128xf32>
    %55 = arith.maximumf %52, %54 : vector<8x128xf32>
    %c0_24 = arith.constant 0 : index
    %c1792 = arith.constant 1792 : index
    %56 = vector.load %arg0[%c0_24, %c1792] : memref<8x3584xf32, #tpu.memory_space<vmem>>, vector<8x512xf32>
    %cst_25 = arith.constant dense<0.000000e+00> : vector<8x128xf32>
    %57 = tpu.matmul %56, %5, %cst_25 {dimension_numbers = #tpu.dot_dimension_numbers<[1], [0], [0], [1], [0, 0, 1, 1], [], []>} : vector<8x512xf32>, vector<512x128xf32>, vector<8x128xf32> -> vector<8x128xf32>
    %58 = vector.broadcast %6 : vector<1x128xf32> to vector<8x128xf32>
    %59 = arith.addf %57, %58 : vector<8x128xf32>
    %cst_26 = arith.constant 2.000000e-01 : f32
    %60 = vector.broadcast %cst_26 : f32 to vector<8x128xf32>
    %61 = arith.mulf %60, %59 : vector<8x128xf32>
    %62 = arith.maximumf %59, %61 : vector<8x128xf32>
    %c0_27 = arith.constant 0 : index
    %c2048 = arith.constant 2048 : index
    %63 = vector.load %arg0[%c0_27, %c2048] : memref<8x3584xf32, #tpu.memory_space<vmem>>, vector<8x512xf32>
    %cst_28 = arith.constant dense<0.000000e+00> : vector<8x128xf32>
    %64 = tpu.matmul %63, %5, %cst_28 {dimension_numbers = #tpu.dot_dimension_numbers<[1], [0], [0], [1], [0, 0, 1, 1], [], []>} : vector<8x512xf32>, vector<512x128xf32>, vector<8x128xf32> -> vector<8x128xf32>
    %65 = vector.broadcast %6 : vector<1x128xf32> to vector<8x128xf32>
    %66 = arith.addf %64, %65 : vector<8x128xf32>
    %cst_29 = arith.constant 2.000000e-01 : f32
    %67 = vector.broadcast %cst_29 : f32 to vector<8x128xf32>
    %68 = arith.mulf %67, %66 : vector<8x128xf32>
    %69 = arith.maximumf %66, %68 : vector<8x128xf32>
    %c0_30 = arith.constant 0 : index
    %c2304 = arith.constant 2304 : index
    %70 = vector.load %arg0[%c0_30, %c2304] : memref<8x3584xf32, #tpu.memory_space<vmem>>, vector<8x512xf32>
    %cst_31 = arith.constant dense<0.000000e+00> : vector<8x128xf32>
    %71 = tpu.matmul %70, %5, %cst_31 {dimension_numbers = #tpu.dot_dimension_numbers<[1], [0], [0], [1], [0, 0, 1, 1], [], []>} : vector<8x512xf32>, vector<512x128xf32>, vector<8x128xf32> -> vector<8x128xf32>
    %72 = vector.broadcast %6 : vector<1x128xf32> to vector<8x128xf32>
    %73 = arith.addf %71, %72 : vector<8x128xf32>
    %cst_32 = arith.constant 2.000000e-01 : f32
    %74 = vector.broadcast %cst_32 : f32 to vector<8x128xf32>
    %75 = arith.mulf %74, %73 : vector<8x128xf32>
    %76 = arith.maximumf %73, %75 : vector<8x128xf32>
    %c0_33 = arith.constant 0 : index
    %c2560 = arith.constant 2560 : index
    %77 = vector.load %arg0[%c0_33, %c2560] : memref<8x3584xf32, #tpu.memory_space<vmem>>, vector<8x512xf32>
    %cst_34 = arith.constant dense<0.000000e+00> : vector<8x128xf32>
    %78 = tpu.matmul %77, %5, %cst_34 {dimension_numbers = #tpu.dot_dimension_numbers<[1], [0], [0], [1], [0, 0, 1, 1], [], []>} : vector<8x512xf32>, vector<512x128xf32>, vector<8x128xf32> -> vector<8x128xf32>
    %79 = vector.broadcast %6 : vector<1x128xf32> to vector<8x128xf32>
    %80 = arith.addf %78, %79 : vector<8x128xf32>
    %cst_35 = arith.constant 2.000000e-01 : f32
    %81 = vector.broadcast %cst_35 : f32 to vector<8x128xf32>
    %82 = arith.mulf %81, %80 : vector<8x128xf32>
    %83 = arith.maximumf %80, %82 : vector<8x128xf32>
    %c0_36 = arith.constant 0 : index
    %c2816 = arith.constant 2816 : index
    %84 = vector.load %arg0[%c0_36, %c2816] : memref<8x3584xf32, #tpu.memory_space<vmem>>, vector<8x512xf32>
    %cst_37 = arith.constant dense<0.000000e+00> : vector<8x128xf32>
    %85 = tpu.matmul %84, %5, %cst_37 {dimension_numbers = #tpu.dot_dimension_numbers<[1], [0], [0], [1], [0, 0, 1, 1], [], []>} : vector<8x512xf32>, vector<512x128xf32>, vector<8x128xf32> -> vector<8x128xf32>
    %86 = vector.broadcast %6 : vector<1x128xf32> to vector<8x128xf32>
    %87 = arith.addf %85, %86 : vector<8x128xf32>
    %cst_38 = arith.constant 2.000000e-01 : f32
    %88 = vector.broadcast %cst_38 : f32 to vector<8x128xf32>
    %89 = arith.mulf %88, %87 : vector<8x128xf32>
    %90 = arith.maximumf %87, %89 : vector<8x128xf32>
    %c0_39 = arith.constant 0 : index
    %c3072 = arith.constant 3072 : index
    %91 = vector.load %arg0[%c0_39, %c3072] : memref<8x3584xf32, #tpu.memory_space<vmem>>, vector<8x512xf32>
    %cst_40 = arith.constant dense<0.000000e+00> : vector<8x128xf32>
    %92 = tpu.matmul %91, %5, %cst_40 {dimension_numbers = #tpu.dot_dimension_numbers<[1], [0], [0], [1], [0, 0, 1, 1], [], []>} : vector<8x512xf32>, vector<512x128xf32>, vector<8x128xf32> -> vector<8x128xf32>
    %93 = vector.broadcast %6 : vector<1x128xf32> to vector<8x128xf32>
    %94 = arith.addf %92, %93 : vector<8x128xf32>
    %cst_41 = arith.constant 2.000000e-01 : f32
    %95 = vector.broadcast %cst_41 : f32 to vector<8x128xf32>
    %96 = arith.mulf %95, %94 : vector<8x128xf32>
    %97 = arith.maximumf %94, %96 : vector<8x128xf32>
    %98 = tpu.concatenate %13, %20, %27, %34, %41, %48, %55, %62, %69, %76, %83, %90, %97 in 1 : vector<8x128xf32>, vector<8x128xf32>, vector<8x128xf32>, vector<8x128xf32>, vector<8x128xf32>, vector<8x128xf32>, vector<8x128xf32>, vector<8x128xf32>, vector<8x128xf32>, vector<8x128xf32>, vector<8x128xf32>, vector<8x128xf32>, vector<8x128xf32> -> vector<8x1664xf32>
    %c0_42 = arith.constant 0 : index
    %c0_43 = arith.constant 0 : index
    %99 = vector.load %arg3[%c0_42, %c0_43] : memref<512x128xf32, #tpu.memory_space<vmem>>, vector<512x128xf32>
    %c0_44 = arith.constant 0 : index
    %c0_45 = arith.constant 0 : index
    %100 = vector.load %arg4[%c0_44, %c0_45] : memref<1x128xf32, #tpu.memory_space<vmem>>, vector<1x128xf32>
    %101 = vector.extract_strided_slice %98 {offsets = [0, 0], sizes = [8, 512], strides = [1, 1]} : vector<8x1664xf32> to vector<8x512xf32>
    %cst_46 = arith.constant dense<0.000000e+00> : vector<8x128xf32>
    %102 = tpu.matmul %101, %99, %cst_46 {dimension_numbers = #tpu.dot_dimension_numbers<[1], [0], [0], [1], [0, 0, 1, 1], [], []>} : vector<8x512xf32>, vector<512x128xf32>, vector<8x128xf32> -> vector<8x128xf32>
    %103 = vector.broadcast %100 : vector<1x128xf32> to vector<8x128xf32>
    %104 = arith.addf %102, %103 : vector<8x128xf32>
    %105 = vector.extract_strided_slice %98 {offsets = [0, 256], sizes = [8, 512], strides = [1, 1]} : vector<8x1664xf32> to vector<8x512xf32>
    %cst_47 = arith.constant dense<0.000000e+00> : vector<8x128xf32>
    %106 = tpu.matmul %105, %99, %cst_47 {dimension_numbers = #tpu.dot_dimension_numbers<[1], [0], [0], [1], [0, 0, 1, 1], [], []>} : vector<8x512xf32>, vector<512x128xf32>, vector<8x128xf32> -> vector<8x128xf32>
    %107 = vector.broadcast %100 : vector<1x128xf32> to vector<8x128xf32>
    %108 = arith.addf %106, %107 : vector<8x128xf32>
    %109 = vector.extract_strided_slice %98 {offsets = [0, 512], sizes = [8, 512], strides = [1, 1]} : vector<8x1664xf32> to vector<8x512xf32>
    %cst_48 = arith.constant dense<0.000000e+00> : vector<8x128xf32>
    %110 = tpu.matmul %109, %99, %cst_48 {dimension_numbers = #tpu.dot_dimension_numbers<[1], [0], [0], [1], [0, 0, 1, 1], [], []>} : vector<8x512xf32>, vector<512x128xf32>, vector<8x128xf32> -> vector<8x128xf32>
    %111 = vector.broadcast %100 : vector<1x128xf32> to vector<8x128xf32>
    %112 = arith.addf %110, %111 : vector<8x128xf32>
    %113 = vector.extract_strided_slice %98 {offsets = [0, 768], sizes = [8, 512], strides = [1, 1]} : vector<8x1664xf32> to vector<8x512xf32>
    %cst_49 = arith.constant dense<0.000000e+00> : vector<8x128xf32>
    %114 = tpu.matmul %113, %99, %cst_49 {dimension_numbers = #tpu.dot_dimension_numbers<[1], [0], [0], [1], [0, 0, 1, 1], [], []>} : vector<8x512xf32>, vector<512x128xf32>, vector<8x128xf32> -> vector<8x128xf32>
    %115 = vector.broadcast %100 : vector<1x128xf32> to vector<8x128xf32>
    %116 = arith.addf %114, %115 : vector<8x128xf32>
    %117 = vector.extract_strided_slice %98 {offsets = [0, 1024], sizes = [8, 512], strides = [1, 1]} : vector<8x1664xf32> to vector<8x512xf32>
    %cst_50 = arith.constant dense<0.000000e+00> : vector<8x128xf32>
    %118 = tpu.matmul %117, %99, %cst_50 {dimension_numbers = #tpu.dot_dimension_numbers<[1], [0], [0], [1], [0, 0, 1, 1], [], []>} : vector<8x512xf32>, vector<512x128xf32>, vector<8x128xf32> -> vector<8x128xf32>
    %119 = vector.broadcast %100 : vector<1x128xf32> to vector<8x128xf32>
    %120 = arith.addf %118, %119 : vector<8x128xf32>
    %121 = tpu.concatenate %104, %108, %112, %116, %120 in 1 : vector<8x128xf32>, vector<8x128xf32>, vector<8x128xf32>, vector<8x128xf32>, vector<8x128xf32> -> vector<8x640xf32>
    %122 = vector.broadcast %4 : vector<8x1xf32> to vector<8x640xf32>
    %123 = arith.mulf %121, %122 : vector<8x640xf32>
    %cst_51 = arith.constant dense<0.000000e+00> : vector<640xf32>
    %124 = vector.multi_reduction <add>, %123, %cst_51 [0] : vector<8x640xf32> to vector<640xf32>
    %125 = vector.shape_cast %124 : vector<640xf32> to vector<1x640xf32>
    %126 = arith.mulf %123, %121 : vector<8x640xf32>
    %cst_52 = arith.constant dense<0.000000e+00> : vector<640xf32>
    %127 = vector.multi_reduction <add>, %126, %cst_52 [0] : vector<8x640xf32> to vector<640xf32>
    %128 = vector.shape_cast %127 : vector<640xf32> to vector<1x640xf32>
    %129 = tpu.concatenate %125, %128 in 0 : vector<1x640xf32>, vector<1x640xf32> -> vector<2x640xf32>
    %c0_53 = arith.constant 0 : index
    %c0_54 = arith.constant 0 : index
    %130 = vector.load %arg5[%c0_53, %c0_54] : memref<640x16xf32, #tpu.memory_space<vmem>>, vector<640x16xf32>
    %cst_55 = arith.constant dense<0.000000e+00> : vector<2x16xf32>
    %131 = tpu.matmul %129, %130, %cst_55 {dimension_numbers = #tpu.dot_dimension_numbers<[1], [0], [0], [1], [0, 0, 1, 1], [], []>} : vector<2x640xf32>, vector<640x16xf32>, vector<2x16xf32> -> vector<2x16xf32>
    %132 = vector.extract_strided_slice %131 {offsets = [0, 0], sizes = [1, 16], strides = [1, 1]} : vector<2x16xf32> to vector<1x16xf32>
    %cst_56 = arith.constant 0.00999999977 : f32
    %133 = vector.broadcast %cst_56 : f32 to vector<1x16xf32>
    %134 = arith.mulf %132, %133 : vector<1x16xf32>
    %135 = vector.extract_strided_slice %131 {offsets = [1, 0], sizes = [1, 16], strides = [1, 1]} : vector<2x16xf32> to vector<1x16xf32>
    %cst_57 = arith.constant 0.00999999977 : f32
    %136 = vector.broadcast %cst_57 : f32 to vector<1x16xf32>
    %137 = arith.mulf %135, %136 : vector<1x16xf32>
    %138 = arith.mulf %134, %134 : vector<1x16xf32>
    %139 = arith.subf %137, %138 : vector<1x16xf32>
    %c0_58 = arith.constant 0 : index
    %c0_59 = arith.constant 0 : index
    %140 = vector.load %arg7[%c0_58, %c0_59] : memref<1x16xf32, #tpu.memory_space<vmem>>, vector<1x16xf32>
    %cst_60 = arith.constant 9.99999974E-6 : f32
    %141 = vector.broadcast %cst_60 : f32 to vector<1x16xf32>
    %142 = arith.addf %139, %141 : vector<1x16xf32>
    %143 = math.rsqrt %142 : vector<1x16xf32>
    %144 = arith.mulf %140, %143 : vector<1x16xf32>
    %c0_61 = arith.constant 0 : index
    %c0_62 = arith.constant 0 : index
    %145 = vector.load %arg8[%c0_61, %c0_62] : memref<1x16xf32, #tpu.memory_space<vmem>>, vector<1x16xf32>
    %146 = arith.mulf %134, %144 : vector<1x16xf32>
    %147 = arith.subf %145, %146 : vector<1x16xf32>
    %148 = tpu.concatenate %144, %147 in 0 : vector<1x16xf32>, vector<1x16xf32> -> vector<2x16xf32>
    %c0_63 = arith.constant 0 : index
    %c0_64 = arith.constant 0 : index
    %149 = vector.load %arg6[%c0_63, %c0_64] : memref<16x640xf32, #tpu.memory_space<vmem>>, vector<16x640xf32>
    %cst_65 = arith.constant dense<0.000000e+00> : vector<2x640xf32>
    %150 = tpu.matmul %148, %149, %cst_65 {dimension_numbers = #tpu.dot_dimension_numbers<[1], [0], [0], [1], [0, 0, 1, 1], [], []>} : vector<2x16xf32>, vector<16x640xf32>, vector<2x640xf32> -> vector<2x640xf32>
    %151 = vector.extract_strided_slice %150 {offsets = [0, 0], sizes = [1, 640], strides = [1, 1]} : vector<2x640xf32> to vector<1x640xf32>
    %152 = vector.broadcast %151 : vector<1x640xf32> to vector<8x640xf32>
    %153 = arith.mulf %121, %152 : vector<8x640xf32>
    %154 = vector.extract_strided_slice %150 {offsets = [1, 0], sizes = [1, 640], strides = [1, 1]} : vector<2x640xf32> to vector<1x640xf32>
    %155 = vector.broadcast %154 : vector<1x640xf32> to vector<8x640xf32>
    %156 = arith.addf %153, %155 : vector<8x640xf32>
    %cst_66 = arith.constant 2.000000e-01 : f32
    %157 = vector.broadcast %cst_66 : f32 to vector<8x640xf32>
    %158 = arith.mulf %157, %156 : vector<8x640xf32>
    %159 = arith.maximumf %156, %158 : vector<8x640xf32>
    %160 = vector.extract_strided_slice %159 {offsets = [0, 0], sizes = [8, 512], strides = [1, 1]} : vector<8x640xf32> to vector<8x512xf32>
    %c0_67 = arith.constant 0 : index
    %c0_68 = arith.constant 0 : index
    %161 = vector.load %arg9[%c0_67, %c0_68] : memref<512x32xf32, #tpu.memory_space<vmem>>, vector<512x32xf32>
    %cst_69 = arith.constant dense<0.000000e+00> : vector<8x32xf32>
    %162 = tpu.matmul %160, %161, %cst_69 {dimension_numbers = #tpu.dot_dimension_numbers<[1], [0], [0], [1], [0, 0, 1, 1], [], []>} : vector<8x512xf32>, vector<512x32xf32>, vector<8x32xf32> -> vector<8x32xf32>
    %c0_70 = arith.constant 0 : index
    %c0_71 = arith.constant 0 : index
    %163 = vector.load %arg10[%c0_70, %c0_71] : memref<1x32xf32, #tpu.memory_space<vmem>>, vector<1x32xf32>
    %164 = vector.broadcast %163 : vector<1x32xf32> to vector<8x32xf32>
    %165 = arith.addf %162, %164 : vector<8x32xf32>
    %166 = vector.broadcast %4 : vector<8x1xf32> to vector<8x32xf32>
    %167 = arith.mulf %165, %166 : vector<8x32xf32>
    %cst_72 = arith.constant dense<0.000000e+00> : vector<32xf32>
    %168 = vector.multi_reduction <add>, %167, %cst_72 [0] : vector<8x32xf32> to vector<32xf32>
    %169 = vector.shape_cast %168 : vector<32xf32> to vector<1x32xf32>
    %cst_73 = arith.constant 2.500000e-01 : f32
    %170 = vector.broadcast %cst_73 : f32 to vector<1x32xf32>
    %171 = arith.mulf %169, %170 : vector<1x32xf32>
    %172 = arith.mulf %167, %165 : vector<8x32xf32>
    %cst_74 = arith.constant dense<0.000000e+00> : vector<32xf32>
    %173 = vector.multi_reduction <add>, %172, %cst_74 [0] : vector<8x32xf32> to vector<32xf32>
    %174 = vector.shape_cast %173 : vector<32xf32> to vector<1x32xf32>
    %cst_75 = arith.constant 2.500000e-01 : f32
    %175 = vector.broadcast %cst_75 : f32 to vector<1x32xf32>
    %176 = arith.mulf %174, %175 : vector<1x32xf32>
    %177 = arith.mulf %171, %171 : vector<1x32xf32>
    %178 = arith.subf %176, %177 : vector<1x32xf32>
    %179 = vector.broadcast %171 : vector<1x32xf32> to vector<8x32xf32>
    %180 = arith.subf %165, %179 : vector<8x32xf32>
    %c0_76 = arith.constant 0 : index
    %c0_77 = arith.constant 0 : index
    %181 = vector.load %arg11[%c0_76, %c0_77] : memref<1x32xf32, #tpu.memory_space<vmem>>, vector<1x32xf32>
    %cst_78 = arith.constant 9.99999974E-6 : f32
    %182 = vector.broadcast %cst_78 : f32 to vector<1x32xf32>
    %183 = arith.addf %178, %182 : vector<1x32xf32>
    %184 = math.rsqrt %183 : vector<1x32xf32>
    %185 = arith.mulf %181, %184 : vector<1x32xf32>
    %186 = vector.broadcast %185 : vector<1x32xf32> to vector<8x32xf32>
    %187 = arith.mulf %180, %186 : vector<8x32xf32>
    %c0_79 = arith.constant 0 : index
    %c0_80 = arith.constant 0 : index
    %188 = vector.load %arg12[%c0_79, %c0_80] : memref<1x32xf32, #tpu.memory_space<vmem>>, vector<1x32xf32>
    %189 = vector.broadcast %188 : vector<1x32xf32> to vector<8x32xf32>
    %190 = arith.addf %187, %189 : vector<8x32xf32>
    %cst_81 = arith.constant 2.000000e-01 : f32
    %191 = vector.broadcast %cst_81 : f32 to vector<8x32xf32>
    %192 = arith.mulf %191, %190 : vector<8x32xf32>
    %193 = arith.maximumf %190, %192 : vector<8x32xf32>
    %c0_82 = arith.constant 0 : index
    %c0_83 = arith.constant 0 : index
    %194 = vector.load %arg13[%c0_82, %c0_83] : memref<32x128xf32, #tpu.memory_space<vmem>>, vector<32x128xf32>
    %cst_84 = arith.constant dense<0.000000e+00> : vector<8x128xf32>
    %195 = tpu.matmul %193, %194, %cst_84 {dimension_numbers = #tpu.dot_dimension_numbers<[1], [0], [0], [1], [0, 0, 1, 1], [], []>} : vector<8x32xf32>, vector<32x128xf32>, vector<8x128xf32> -> vector<8x128xf32>
    %c0_85 = arith.constant 0 : index
    %c0_86 = arith.constant 0 : index
    %196 = vector.load %arg14[%c0_85, %c0_86] : memref<1x128xf32, #tpu.memory_space<vmem>>, vector<1x128xf32>
    %197 = vector.broadcast %196 : vector<1x128xf32> to vector<8x128xf32>
    %198 = arith.addf %195, %197 : vector<8x128xf32>
    %199 = tpu.iota {dimensions = array<i32: 1>} : vector<8x128xi32>
    %cst_87 = arith.constant 0.000000e+00 : f32
    %200 = vector.broadcast %cst_87 : f32 to vector<8x128xf32>
    %201 = arith.subf %200, %198 : vector<8x128xf32>
    %202 = math.exp %201 : vector<8x128xf32>
    %cst_88 = arith.constant 1.000000e+00 : f32
    %203 = vector.broadcast %cst_88 : f32 to vector<8x128xf32>
    %204 = arith.addf %203, %202 : vector<8x128xf32>
    %cst_89 = arith.constant 1.000000e+00 : f32
    %205 = vector.broadcast %cst_89 : f32 to vector<8x128xf32>
    %206 = arith.divf %205, %204 : vector<8x128xf32>
    %c1_i32 = arith.constant 1 : i32
    %207 = vector.broadcast %c1_i32 : i32 to vector<8x128xi32>
    %208 = arith.cmpi eq, %199, %207 : vector<8x128xi32>
    %209 = arith.select %208, %206, %198 : vector<8x128xi1>, vector<8x128xf32>
    %c0_90 = arith.constant 0 : index
    %c0_91 = arith.constant 0 : index
    %210 = vector.load %arg15[%c0_90, %c0_91] : memref<8x128xf32, #tpu.memory_space<vmem>>, vector<8x128xf32>
    tpu.vector_store %arg15[%c0_90, %c0_91], %209 {strides = array<i32>} : memref<8x128xf32, #tpu.memory_space<vmem>>, vector<8x128xf32>,
    return
  }
}

</mosaic_0001>

<bundles_post_ra>
// kernel: forward.1
= control target key start
LH: loop header
LB: loop body
LE: loop exit
PB: predicated region body
PF: predicated region fallthrough
CT: control target
= control target key end

     0   :  { %20 = vsyncpa [#allocation3], 0  ;;  %s7906_s0 = inlined_call_operand.vmem [shape: f32[8,3584], index: 0, kind: input, shape index: {}]   ;;  %s7907_s1 = inlined_call_operand.hbm [shape: f32[512,128], index: 1, kind: input, shape index: {}]   ;;  %s7908_s2 = inlined_call_operand.hbm [shape: f32[1,128], index: 2, kind: input, shape index: {}]   ;;  %s7909_s3 = inlined_call_operand.hbm [shape: f32[512,128], index: 3, kind: input, shape index: {}]   ;;  %s7910_s4 = inlined_call_operand.hbm [shape: f32[1,128], index: 4, kind: input, shape index: {}]   ;;  %s7911_s5 = inlined_call_operand.hbm [shape: f32[640,16], index: 5, kind: input, shape index: {}]   ;;  %s7912_s6 = inlined_call_operand.vmem [shape: f32[16,640], index: 6, kind: input, shape index: {}]   ;;  %s7913_s7 = inlined_call_operand.hbm [shape: f32[1,16], index: 7, kind: input, shape index: {}]   ;;  %s7914_s8 = inlined_call_operand.hbm [shape: f32[1,16], index: 8, kind: input, shape index: {}]   ;;  %s7915_s9 = inlined_call_operand.vmem [shape: f32[512,32], index: 9, kind: input, shape index: {}]   ;;  %s7916_s10 = inlined_call_operand.vmem [shape: f32[1,32], index: 10, kind: input, shape index: {}]   ;;  %s7917_s11 = inlined_call_operand.vmem [shape: f32[1,32], index: 11, kind: input, shape index: {}]   ;;  %s7918_s12 = inlined_call_operand.vmem [shape: f32[1,32], index: 12, kind: input, shape index: {}]   ;;  %s7919_s13 = inlined_call_operand.hbm [shape: f32[32,128], index: 13, kind: input, shape index: {}]   ;;  %s7920_s14 = inlined_call_operand.vmem [shape: f32[1,128], index: 14, kind: input, shape index: {}]   ;;  %s7921_s15 = inlined_call_operand.vmem [shape: f32[8,128], index: 15, kind: output, shape index: {}]  }
   0x1   :  { %21 = vsyncpa [#allocation5], 0 }
   0x2   :  { %22 = vsyncpa [#allocation8], 0 }
   0x3   :  { %23 = vsyncpa [#allocation11], 0 }
   0x4   :  { %24 = vsyncpa [#allocation14], 0  ;;  %s6583_s18 = smov [#allocation4]   ;;  %s6584_s20 = smov [#allocation7]  }
   0x5   :  { %s45_s19 = sshll.u32 %s6583_s18, 4  ;;  %s67_s21 = sshll.u32 %s6584_s20, 4  ;;  %s46_s19 = int_to_ptr.vmem [resolvable:$true] %s45_s19  ;;  %s68_s21 = int_to_ptr.vmem [resolvable:$true] %s67_s21 }
   0x6   :  { %s6397_s24 = scalar_lea.hbm %s7908_s2, 16 }
   0x7   :  { %p6398_p0 = scmp.ne.s32.totalorder %s7908_s2, %s6397_s24  ;;  %p6401_p1 = scmp.lt.u32.totalorder %s6397_s24, %s7908_s2 }
   0x9   :  { %p6403_p2 = pnand %p6401_p1, %p6398_p0 }
   0xb   :  { %6406 = shalt.err (!%p6403_p2)
}
   0xc   :  { %s6407_s29 = scalar_lea.vmem %s46_s19, 16  ;;  %s6411_s30 = scalar_lea.vmem %s46_s19, 32 }
   0xd   :  { %p6408_p3 = scmp.ne.s32.totalorder %s46_s19, %s6407_s29  ;;  %p6412_p4 = scmp.lt.s32.totalorder %s46_s19, %s46_s19 }
   0xe   :  { %p6413_p5 = scmp.lt.s32.totalorder %s6411_s30, %s6407_s29 }
  0x10   :  { %p6414_p6 = por %p6413_p5, %p6412_p4 }
  0x12   :  { %p6415_p7 = pnand %p6414_p6, %p6408_p3 }
  0x14   :  { %6418 = shalt.err (!%p6415_p7)
}
  0x15   :  { %48 = dma.hbm_to_vmem [thread:$0]  %s7908_s2, 16, %s46_s19, [#allocation5]  }
  0x16   :  { %s6419_s22 = scalar_lea.hbm %s7910_s4, 16 }
  0x17   :  { %p6420_p8 = scmp.ne.s32.totalorder %s7910_s4, %s6419_s22  ;;  %p6423_p9 = scmp.lt.u32.totalorder %s6419_s22, %s7910_s4 }
  0x19   :  { %p6425_p10 = pnand %p6423_p9, %p6420_p8 }
  0x1b   :  { %6428 = shalt.err (!%p6425_p10)
}
  0x1c   :  { %s6429_s27 = scalar_lea.vmem %s68_s21, 16  ;;  %s6433_s28 = scalar_lea.vmem %s68_s21, 32 }
  0x1d   :  { %p6430_p11 = scmp.ne.s32.totalorder %s68_s21, %s6429_s27  ;;  %p6434_p12 = scmp.lt.s32.totalorder %s68_s21, %s68_s21 }
  0x1e   :  { %p6435_p13 = scmp.lt.s32.totalorder %s6433_s28, %s6429_s27 }
  0x20   :  { %p6436_p0 = por %p6435_p13, %p6434_p12 }
  0x22   :  { %p6437_p1 = pnand %p6436_p0, %p6430_p11 }
  0x24   :  { %6440 = shalt.err (!%p6437_p1)
}
  0x25   :  { %70 = dma.hbm_to_vmem [thread:$0]  %s7910_s4, 16, %s68_s21, [#allocation8]  }
  0x26   :  { %s6585_s29 = smov [#allocation10]   ;;  %s6586_s16 = smov [#allocation2]  }
  0x27   :  { %s91_s30 = sshll.u32 %s6585_s29, 4  ;;  %s32_s17 = sshll.u32 %s6586_s16, 4  ;;  %s92_s30 = int_to_ptr.vmem [resolvable:$true] %s91_s30  ;;  %s6701_s17 = int_to_ptr.vmem [resolvable:$true] %s32_s17 }
  0x28   :  { %s6441_s22 = scalar_lea.hbm %s7913_s7, 16 }
  0x29   :  { %p6442_p2 = scmp.ne.s32.totalorder %s7913_s7, %s6441_s22  ;;  %p6445_p3 = scmp.lt.u32.totalorder %s6441_s22, %s7913_s7 }
  0x2b   :  { %p6447_p4 = pnand %p6445_p3, %p6442_p2 }
  0x2d   :  { %6450 = shalt.err (!%p6447_p4)
}
  0x2e   :  { %s6451_s4 = scalar_lea.vmem %s92_s30, 16  ;;  %s6455_s21 = scalar_lea.vmem %s92_s30, 32 }
  0x2f   :  { %p6452_p5 = scmp.ne.s32.totalorder %s92_s30, %s6451_s4  ;;  %p6456_p6 = scmp.lt.s32.totalorder %s92_s30, %s92_s30 }
  0x30   :  { %p6457_p7 = scmp.lt.s32.totalorder %s6455_s21, %s6451_s4 }
  0x32   :  { %p6458_p8 = por %p6457_p7, %p6456_p6 }
  0x34   :  { %p6459_p9 = pnand %p6458_p8, %p6452_p5 }
  0x36   :  { %6462 = shalt.err (!%p6459_p9)
}
  0x37   :  { %94 = dma.hbm_to_vmem [thread:$0]  %s7913_s7, 16, %s92_s30, [#allocation11]  }
  0x38   :  { %s6463_s29 = scalar_lea.hbm %s7907_s1, 8192 }
  0x39   :  { %p6464_p10 = scmp.ne.s32.totalorder %s7907_s1, %s6463_s29  ;;  %p6467_p11 = scmp.lt.u32.totalorder %s6463_s29, %s7907_s1 }
  0x3b   :  { %p6469_p12 = pnand %p6467_p11, %p6464_p10 }
  0x3d   :  { %6472 = shalt.err (!%p6469_p12)
}
  0x3e   :  { %s6473_s23 = scalar_lea.vmem %s6701_s17, 8192  ;;  %p6478_p0 = scmp.lt.s32.totalorder %s6701_s17, %s6701_s17 }
  0x3f   :  { %p6474_p13 = scmp.ne.s32.totalorder %s6701_s17, %s6473_s23  ;;  %p6479_p1 = scmp.lt.s32.totalorder %s6473_s23, %s6473_s23 }
  0x41   :  { %p6480_p2 = por %p6479_p1, %p6478_p0 }
  0x43   :  { %p6481_p3 = pnand %p6480_p2, %p6474_p13 }
  0x45   :  { %6484 = shalt.err (!%p6481_p3)
}
  0x46   :  { %s6587_s7 = smov 128   ;;  %s6588_s30 = smov 8  }
  0x47   :  { %38 = dma.hbm_to_vmem [thread:$0]  %s7907_s1, 8192, %s6701_s17, [#allocation3], %s6587_s7, %s6587_s7, %s6588_s30  }
  0x48   :  { %s6589_s26 = smov [#allocation6]   ;;  %s6590_s21 = smov [#allocation9]  }
  0x49   :  { %s54_s4 = sshll.u32 %s6589_s26, 4  ;;  %s76_s27 = sshll.u32 %s6590_s21, 4  ;;  %s55_s4 = int_to_ptr.vmem [resolvable:$true] %s54_s4  ;;  %s6735_s27 = int_to_ptr.vmem [resolvable:$true] %s76_s27 }
  0x4a   :  { %s6485_s19 = scalar_lea.hbm %s7909_s3, 8192 }
  0x4b   :  { %p6486_p4 = scmp.ne.s32.totalorder %s7909_s3, %s6485_s19  ;;  %p6489_p5 = scmp.lt.u32.totalorder %s6485_s19, %s7909_s3 }
  0x4d   :  { %p6491_p6 = pnand %p6489_p5, %p6486_p4 }
  0x4f   :  { %6494 = shalt.err (!%p6491_p6)
}
  0x50   :  { %s6495_s1 = scalar_lea.vmem %s55_s4, 8192  ;;  %p6500_p8 = scmp.lt.s32.totalorder %s55_s4, %s55_s4 }
  0x51   :  { %p6496_p7 = scmp.ne.s32.totalorder %s55_s4, %s6495_s1  ;;  %p6501_p9 = scmp.lt.s32.totalorder %s6495_s1, %s6495_s1 }
  0x53   :  { %p6502_p10 = por %p6501_p9, %p6500_p8 }
  0x55   :  { %p6503_p11 = pnand %p6502_p10, %p6496_p7 }
  0x57   :  { %6506 = shalt.err (!%p6503_p11)
}
  0x58   :  { %60 = dma.hbm_to_vmem [thread:$0]  %s7909_s3, 8192, %s55_s4, [#allocation5], %s6587_s7, %s6587_s7, %s6588_s30  }
  0x59   :  { %s6507_s25 = scalar_lea.hbm %s7911_s5, 10240 }
  0x5a   :  { %p6508_p12 = scmp.ne.s32.totalorder %s7911_s5, %s6507_s25  ;;  %p6511_p13 = scmp.lt.u32.totalorder %s6507_s25, %s7911_s5 }
  0x5c   :  { %p6513_p0 = pnand %p6511_p13, %p6508_p12 }
  0x5e   :  { %6516 = shalt.err (!%p6513_p0)
}
  0x5f   :  { %s6517_s19 = scalar_lea.vmem %s6735_s27, 10240  ;;  %p6522_p2 = scmp.lt.s32.totalorder %s6735_s27, %s6735_s27 }
  0x60   :  { %p6518_p1 = scmp.ne.s32.totalorder %s6735_s27, %s6517_s19  ;;  %p6523_p3 = scmp.lt.s32.totalorder %s6517_s19, %s6517_s19 }
  0x62   :  { %p6524_p4 = por %p6523_p3, %p6522_p2 }
  0x64   :  { %p6525_p5 = pnand %p6524_p4, %p6518_p1 }
  0x66   :  { %6528 = shalt.err (!%p6525_p5)
}
  0x67   :  { %82 = dma.hbm_to_vmem [thread:$0]  %s7911_s5, 10240, %s6735_s27, [#allocation8], %s6587_s7, %s6587_s7, %s6588_s30  }
  0x68   :  { %s6591_s29 = smov [#allocation12]   ;;  %s6592_s18 = smov [#allocation13]  }
  0x69   :  { %s101_s16 = sshll.u32 %s6591_s29, 4  ;;  %s118_s20 = sshll.u32 %s6592_s18, 4  ;;  %s102_s16 = int_to_ptr.vmem [resolvable:$true] %s101_s16  ;;  %s6772_s20 = int_to_ptr.vmem [resolvable:$true] %s118_s20 }
  0x6a   :  { %s6529_s22 = scalar_lea.hbm %s7914_s8, 16 }
  0x6b   :  { %p6530_p6 = scmp.ne.s32.totalorder %s7914_s8, %s6529_s22  ;;  %p6533_p7 = scmp.lt.u32.totalorder %s6529_s22, %s7914_s8 }
  0x6d   :  { %p6535_p8 = pnand %p6533_p7, %p6530_p6 }
  0x6f   :  { %6538 = shalt.err (!%p6535_p8)
}
  0x70   :  { %s6539_s5 = scalar_lea.vmem %s102_s16, 16  ;;  %s6543_s27 = scalar_lea.vmem %s102_s16, 32 }
  0x71   :  { %p6540_p9 = scmp.ne.s32.totalorder %s102_s16, %s6539_s5  ;;  %p6544_p10 = scmp.lt.s32.totalorder %s102_s16, %s102_s16 }
  0x72   :  { %p6545_p11 = scmp.lt.s32.totalorder %s6543_s27, %s6539_s5 }
  0x74   :  { %p6546_p12 = por %p6545_p11, %p6544_p10 }
  0x76   :  { %p6547_p13 = pnand %p6546_p12, %p6540_p9 }
  0x78   :  { %6550 = shalt.err (!%p6547_p13)
}
  0x79   :  { %104 = dma.hbm_to_vmem [thread:$0]  %s7914_s8, 16, %s102_s16, [#allocation11]  }
  0x7a   :  { %s6551_s3 = scalar_lea.hbm %s7919_s13, 512 }
  0x7b   :  { %p6552_p0 = scmp.ne.s32.totalorder %s7919_s13, %s6551_s3  ;;  %p6555_p1 = scmp.lt.u32.totalorder %s6551_s3, %s7919_s13 }
  0x7d   :  { %p6557_p2 = pnand %p6555_p1, %p6552_p0 }
  0x7f   :  { %6560 = shalt.err (!%p6557_p2)
}
  0x80   :  { %s6561_s17 = scalar_lea.vmem %s6772_s20, 512  ;;  %p6566_p4 = scmp.lt.s32.totalorder %s6772_s20, %s6772_s20 }
  0x81   :  { %p6562_p3 = scmp.ne.s32.totalorder %s6772_s20, %s6561_s17  ;;  %p6567_p5 = scmp.lt.s32.totalorder %s6561_s17, %s6561_s17 }
  0x83   :  { %p6568_p6 = por %p6567_p5, %p6566_p4 }
  0x85   :  { %p6569_p7 = pnand %p6568_p6, %p6562_p3 }
  0x87   :  { %6572 = shalt.err (!%p6569_p7)
}
  0x88   :  { %124 = dma.hbm_to_vmem [thread:$0]  %s7919_s13, 512, %s6772_s20, [#allocation14], %s6587_s7, %s6587_s7, %s6588_s30  }
  0x89   :  { %6573 = dma.done.wait [#allocation3], 8192  }
  0x8a   :  { %6574 = vsyncadd [#allocation3], 4294959104 }
  0x8b   :  { %6575 = dma.done.wait [#allocation5], 8208  }
  0x8c   :  { %6576 = vsyncadd [#allocation5], 4294959088 }
  0x8d   :  { %6577 = dma.done.wait [#allocation8], 10256  }
  0x8e   :  { %6578 = vsyncadd [#allocation8], 4294957040 }
  0x8f   :  { %6579 = dma.done.wait [#allocation11], 32  }
  0x90   :  { %6580 = vsyncadd [#allocation11], 4294967264 }
  0x91   :  { %6581 = dma.done.wait [#allocation14], 512  }
  0x92   :  { %6582 = vsyncadd [#allocation14], 4294966784  ;;  %v172_v0 = vld [vmem:[#allocation2 + $0x80] sm:$0xff]  ;;  %v173_v1 = vld [vmem:[#allocation2 + $0x88] sm:$0xff]  ;;  %vm2820_vm1 = vcmask 1040384   ;;  %vm6595_vm2 = vmmov 0  }
  0x93   :  { %v204_v2 = vld [vmem:[#allocation2 + $0x180] sm:$0xff]  ;;  %v6806_v3 = vpack.c.bf16 %v173_v1, %v172_v0  ;;  %v205_v4 = vld [vmem:[#allocation2 + $0x188] sm:$0xff]  ;;  %v174_v11 = vld [vmem:[#allocation2 + $0x90] sm:$0xff]  ;;  %vm3161_vm3 = vcmask 130048   ;;  %vm3567_vm4 = vcmask 261120  }
  0x94   :  { %v156_v5 = vld [vmem:[#allocation2] sm:$0xff]  ;;  %v157_v6 = vld [vmem:[#allocation2 + $0x8] sm:$0xff]  ;;  %v6808_v7 = vpack.c.bf16 %v205_v4, %v204_v2  ;;  %v175_v13 = vld [vmem:[#allocation2 + $0x98] sm:$0xff] }
  0x95   :  { %v6810_v8 = vpack.c.bf16 %v157_v6, %v156_v5  ;;  %v188_v9 = vld [vmem:[#allocation2 + $0x100] sm:$0xff]  ;;  %v189_v10 = vld [vmem:[#allocation2 + $0x108] sm:$0xff]  ;;  %5121 = vmatprep.subr.bf16.mxu0 %v6806_v3  ;;  %v206_v14 = vld [vmem:[#allocation2 + $0x190] sm:$0xff]  ;;  %v6817_v16 = vpack.c.bf16 %v175_v13, %v174_v11 }
  0x96   :  { %v6813_v12 = vpack.c.bf16 %v189_v10, %v188_v9  ;;  %v207_v15 = vld [vmem:[#allocation2 + $0x198] sm:$0xff]  ;;  %5153 = vmatprep.subr.bf16.mxu1 %v6808_v7  ;;  %v158_v18 = vld [vmem:[#allocation2 + $0x10] sm:$0xff]  ;;  %v176_v23 = vld [vmem:[#allocation2 + $0xa0] sm:$0xff] }
  0x97   :  { %5123 = vmatpush3.bf16.msra.mxu0 %v6810_v8  ;;  %v6819_v17 = vpack.c.bf16 %v207_v15, %v206_v14  ;;  %v159_v19 = vld [vmem:[#allocation2 + $0x18] sm:$0xff]  ;;  %v190_v20 = vld [vmem:[#allocation2 + $0x110] sm:$0xff]  ;;  %v177_v24 = vld [vmem:[#allocation2 + $0xa8] sm:$0xff] }
  0x98   :  { %5155 = vmatpush3.bf16.msra.mxu1 %v6813_v12  ;;  %v6822_v21 = vpack.c.bf16 %v159_v19, %v158_v18  ;;  %v191_v22 = vld [vmem:[#allocation2 + $0x118] sm:$0xff]  ;;  %5125 = vmatprep.subr.bf16.mxu0 %v6817_v16  ;;  %v6828_v26 = vpack.c.bf16 %v177_v24, %v176_v23  ;;  %v208_v27 = vld [vmem:[#allocation2 + $0x1a0] sm:$0xff]  ;;  %v209_v28 = vld [vmem:[#allocation2 + $0x1a8] sm:$0xff] }
  0x99   :  { %5157 = vmatprep.subr.bf16.mxu1 %v6819_v17  ;;  %v6826_v25 = vpack.c.bf16 %v191_v22, %v190_v20  ;;  %v160_v29 = vld [vmem:[#allocation2 + $0x20] sm:$0xff]  ;;  %v6830_v30 = vpack.c.bf16 %v209_v28, %v208_v27  ;;  %v161_v31 = vld [vmem:[#allocation2 + $0x28] sm:$0xff]  ;;  %v178_v35 = vld [vmem:[#allocation2 + $0xb0] sm:$0xff] }
  0x9a   :  { %v192_v32 = vld [vmem:[#allocation2 + $0x120] sm:$0xff]  ;;  %v193_v33 = vld [vmem:[#allocation2 + $0x128] sm:$0xff]  ;;  %v6833_v34 = vpack.c.bf16 %v161_v31, %v160_v29  ;;  %v179_v36 = vld [vmem:[#allocation2 + $0xb8] sm:$0xff] }
  0x9b   :  { %5127 = vmatpush3.bf16.msra.mxu0 %v6822_v21  ;;  %v210_v37 = vld [vmem:[#allocation2 + $0x1b0] sm:$0xff]  ;;  %v6837_v38 = vpack.c.bf16 %v193_v33, %v192_v32  ;;  %v6839_v39 = vpack.c.bf16 %v179_v36, %v178_v35  ;;  %v211_v40 = vld [vmem:[#allocation2 + $0x1b8] sm:$0xff]  ;;  %v180_v46 = vld [vmem:[#allocation2 + $0xc0] sm:$0xff] }
  0x9c   :  { %5159 = vmatpush3.bf16.msra.mxu1 %v6826_v25  ;;  %5129 = vmatprep.subr.bf16.mxu0 %v6828_v26  ;;  %v162_v41 = vld [vmem:[#allocation2 + $0x30] sm:$0xff]  ;;  %v163_v42 = vld [vmem:[#allocation2 + $0x38] sm:$0xff]  ;;  %v6842_v43 = vpack.c.bf16 %v211_v40, %v210_v37  ;;  %v181_v47 = vld [vmem:[#allocation2 + $0xc8] sm:$0xff] }
  0x9d   :  { %5161 = vmatprep.subr.bf16.mxu1 %v6830_v30  ;;  %v194_v44 = vld [vmem:[#allocation2 + $0x130] sm:$0xff]  ;;  %v195_v45 = vld [vmem:[#allocation2 + $0x138] sm:$0xff]  ;;  %v212_v48 = vld [vmem:[#allocation2 + $0x1c0] sm:$0xff]  ;;  %v6845_v50 = vpack.c.bf16 %v163_v42, %v162_v41  ;;  %v6851_v52 = vpack.c.bf16 %v181_v47, %v180_v46 }
  0x9e   :  { %v213_v49 = vld [vmem:[#allocation2 + $0x1c8] sm:$0xff]  ;;  %v6849_v51 = vpack.c.bf16 %v195_v45, %v194_v44  ;;  %v164_v53 = vld [vmem:[#allocation2 + $0x40] sm:$0xff]  ;;  %v182_v58 = vld [vmem:[#allocation2 + $0xd0] sm:$0xff] }
  0x9f   :  { %5131 = vmatpush3.bf16.msra.mxu0 %v6833_v34  ;;  %v165_v54 = vld [vmem:[#allocation2 + $0x48] sm:$0xff]  ;;  %v196_v55 = vld [vmem:[#allocation2 + $0x140] sm:$0xff]  ;;  %v6854_v56 = vpack.c.bf16 %v213_v49, %v212_v48  ;;  %v183_v59 = vld [vmem:[#allocation2 + $0xd8] sm:$0xff] }
  0xa0   :  { %5163 = vmatpush3.bf16.msra.mxu1 %v6837_v38  ;;  %5133 = vmatprep.subr.bf16.mxu0 %v6839_v39  ;;  %v197_v57 = vld [vmem:[#allocation2 + $0x148] sm:$0xff]  ;;  %v214_v60 = vld [vmem:[#allocation2 + $0x1d0] sm:$0xff]  ;;  %v215_v61 = vld [vmem:[#allocation2 + $0x1d8] sm:$0xff]  ;;  %v6857_v62 = vpack.c.bf16 %v165_v54, %v164_v53  ;;  %v6863_v0 = vpack.c.bf16 %v183_v59, %v182_v58 }
  0xa1   :  { %5165 = vmatprep.subr.bf16.mxu1 %v6842_v43  ;;  %v6861_v63 = vpack.c.bf16 %v197_v57, %v196_v55  ;;  %v166_v1 = vld [vmem:[#allocation2 + $0x50] sm:$0xff]  ;;  %v167_v2 = vld [vmem:[#allocation2 + $0x58] sm:$0xff]  ;;  %v6866_v5 = vpack.c.bf16 %v215_v61, %v214_v60  ;;  %v184_v9 = vld [vmem:[#allocation2 + $0xe0] sm:$0xff] }
  0xa2   :  { %v198_v4 = vld [vmem:[#allocation2 + $0x150] sm:$0xff]  ;;  %v199_v6 = vld [vmem:[#allocation2 + $0x158] sm:$0xff]  ;;  %v185_v10 = vld [vmem:[#allocation2 + $0xe8] sm:$0xff]  ;;  %v6869_v14 = vpack.c.bf16 %v167_v2, %v166_v1 }
  0xa3   :  { %5135 = vmatpush3.bf16.msra.mxu0 %v6845_v50  ;;  %v216_v11 = vld [vmem:[#allocation2 + $0x1e0] sm:$0xff]  ;;  %v217_v13 = vld [vmem:[#allocation2 + $0x1e8] sm:$0xff]  ;;  %v6873_v19 = vpack.c.bf16 %v199_v6, %v198_v4  ;;  %v6875_v20 = vpack.c.bf16 %v185_v10, %v184_v9  ;;  %v186_v28 = vld [vmem:[#allocation2 + $0xf0] sm:$0xff] }
  0xa4   :  { %5167 = vmatpush3.bf16.msra.mxu1 %v6849_v51  ;;  %5137 = vmatprep.subr.bf16.mxu0 %v6851_v52  ;;  %v168_v15 = vld [vmem:[#allocation2 + $0x60] sm:$0xff]  ;;  %v169_v18 = vld [vmem:[#allocation2 + $0x68] sm:$0xff]  ;;  %v6881_v27 = vpack.c.bf16 %v217_v13, %v216_v11  ;;  %v187_v29 = vld [vmem:[#allocation2 + $0xf8] sm:$0xff] }
  0xa5   :  { %5169 = vmatprep.subr.bf16.mxu1 %v6854_v56  ;;  %v200_v22 = vld [vmem:[#allocation2 + $0x160] sm:$0xff]  ;;  %v201_v23 = vld [vmem:[#allocation2 + $0x168] sm:$0xff]  ;;  %v224_v31 = vld [vmem:[%s7906_s0 + $0x18] sm:$0xff]  ;;  %v6887_v35 = vpack.c.bf16 %v169_v18, %v168_v15  ;;  %v6893_v37 = vpack.c.bf16 %v187_v29, %v186_v28 }
  0xa6   :  { %v222_v24 = vld [vmem:[%s7906_s0 + $0x8] sm:$0xff]  ;;  %v218_v32 = vld [vmem:[#allocation2 + $0x1f0] sm:$0xff]  ;;  %v219_v33 = vld [vmem:[#allocation2 + $0x1f8] sm:$0xff]  ;;  %365 = vmatprep.mubr.f32.mxu1 %v224_v31  ;;  %v6891_v36 = vpack.c.bf16 %v201_v23, %v200_v22 }
  0xa7   :  { %5139 = vmatpush3.bf16.msra.mxu0 %v6857_v62  ;;  %295 = vmatprep.mubr.f32.mxu0 %v222_v24  ;;  %v170_v40 = vld [vmem:[#allocation2 + $0x70] sm:$0xff]  ;;  %v171_v41 = vld [vmem:[#allocation2 + $0x78] sm:$0xff]  ;;  %v6896_v42 = vpack.c.bf16 %v219_v33, %v218_v32  ;;  %v221_v48 = vld [vmem:[%s7906_s0] sm:$0xff] }
  0xa8   :  { %5171 = vmatpush3.bf16.msra.mxu1 %v6861_v63  ;;  %5141 = vmatprep.subr.bf16.mxu0 %v6863_v0  ;;  %v202_v44 = vld [vmem:[#allocation2 + $0x170] sm:$0xff]  ;;  %v203_v45 = vld [vmem:[#allocation2 + $0x178] sm:$0xff]  ;;  %v6899_v46 = vpack.c.bf16 %v171_v41, %v170_v40  ;;  %v376_v53 = vld [vmem:[%s7906_s0 + $0x28] sm:$0xff] }
  0xa9   :  { %5173 = vmatprep.subr.bf16.mxu1 %v6866_v5  ;;  %v6903_v47 = vpack.c.bf16 %v203_v45, %v202_v44  ;;  %v223_v49 = vld [vmem:[%s7906_s0 + $0x10] sm:$0xff]  ;;  %v375_v54 = vld [vmem:[%s7906_s0 + $0x20] sm:$0xff]  ;;  %v522_v55 = vld [vmem:[%s7906_s0 + $0x38] sm:$0xff] }
  0xaa   :  { %v521_v57 = vld [vmem:[%s7906_s0 + $0x30] sm:$0xff]  ;;  %v668_v58 = vld [vmem:[%s7906_s0 + $0x48] sm:$0xff]  ;;  %v667_v59 = vld [vmem:[%s7906_s0 + $0x40] sm:$0xff] }
  0xab   :  { %5143 = vmatpush3.bf16.msra.mxu0 %v6869_v14  ;;  %v814_v60 = vld [vmem:[%s7906_s0 + $0x58] sm:$0xff]  ;;  %v813_v61 = vld [vmem:[%s7906_s0 + $0x50] sm:$0xff]  ;;  %v960_v1 = vld [vmem:[%s7906_s0 + $0x68] sm:$0xff] }
  0xac   :  { %5175 = vmatpush3.bf16.msra.mxu1 %v6873_v19  ;;  %5145 = vmatprep.subr.bf16.mxu0 %v6875_v20  ;;  %v959_v2 = vld [vmem:[%s7906_s0 + $0x60] sm:$0xff]  ;;  %v1106_v4 = vld [vmem:[%s7906_s0 + $0x78] sm:$0xff]  ;;  %v1105_v6 = vld [vmem:[%s7906_s0 + $0x70] sm:$0xff] }
  0xad   :  { %5177 = vmatprep.subr.bf16.mxu1 %v6881_v27  ;;  %v1252_v9 = vld [vmem:[%s7906_s0 + $0x88] sm:$0xff]  ;;  %v7167_v11 = vld [vmem:[#allocation4] ss:$0 sm:$0xff] }
  0xae   :  { %v1251_v29 = vld [vmem:[%s7906_s0 + $0x80] sm:$0xff] }
  0xaf   :  { %5147 = vmatpush3.bf16.msra.mxu0 %v6887_v35 }
  0xb0   :  { %5179 = vmatpush3.bf16.msra.mxu1 %v6891_v36  ;;  %5149 = vmatprep.subr.bf16.mxu0 %v6893_v37 }
  0xb1   :  { %5181 = vmatprep.subr.bf16.mxu1 %v6896_v42 }
  0xb3   :  { %5151 = vmatpush3.bf16.msra.mxu0 %v6899_v46 }
  0xb4   :  { %5183 = vmatpush3.bf16.msra.mxu1 %v6903_v47  ;;  %5185 = vmatprep.subr.bf16.mxu0 %v6806_v3 }
  0xb5   :  { %5217 = vmatprep.subr.bf16.mxu1 %v6808_v7 }
  0xb6   :  { %296 = vmatmul.mubr.f32.vlgmr.msra.gmra.mrb[0].mxu0 %v221_v48 }
  0xb7   :  { %366 = vmatmul.mubr.f32.vlgmr.msra.gmra.mrb[0].mxu1 %v223_v49  ;;  %5187 = vmatpush3.bf16.msra.mxu0 %v6810_v8 }
  0xb8   :  { %5219 = vmatpush3.bf16.msra.mxu1 %v6813_v12  ;;  %5189 = vmatprep.subr.bf16.mxu0 %v6817_v16 }
  0xb9   :  { %5221 = vmatprep.subr.bf16.mxu1 %v6819_v17  ;;  %441 = vmatprep.mubr.f32.mxu0 %v224_v31  ;;  %v1398_v31 = vld [vmem:[%s7906_s0 + $0x98] sm:$0xff] }
  0xba   :  { %511 = vmatprep.mubr.f32.mxu1 %v376_v53 }
  0xbb   :  { %5191 = vmatpush3.bf16.msra.mxu0 %v6822_v21 }
  0xbc   :  { %5223 = vmatpush3.bf16.msra.mxu1 %v6826_v25  ;;  %5193 = vmatprep.subr.bf16.mxu0 %v6828_v26 }
  0xbd   :  { %5225 = vmatprep.subr.bf16.mxu1 %v6830_v30 }
  0xbf   :  { %5195 = vmatpush3.bf16.msra.mxu0 %v6833_v34 }
  0xc0   :  { %5227 = vmatpush3.bf16.msra.mxu1 %v6837_v38  ;;  %5197 = vmatprep.subr.bf16.mxu0 %v6839_v39 }
  0xc1   :  { %5229 = vmatprep.subr.bf16.mxu1 %v6842_v43 }
  0xc3   :  { %5199 = vmatpush3.bf16.msra.mxu0 %v6845_v50 }
  0xc4   :  { %5231 = vmatpush3.bf16.msra.mxu1 %v6849_v51  ;;  %5201 = vmatprep.subr.bf16.mxu0 %v6851_v52 }
  0xc5   :  { %5233 = vmatprep.subr.bf16.mxu1 %v6854_v56 }
  0xc7   :  { %5203 = vmatpush3.bf16.msra.mxu0 %v6857_v62 }
  0xc8   :  { %5235 = vmatpush3.bf16.msra.mxu1 %v6861_v63  ;;  %5205 = vmatprep.subr.bf16.mxu0 %v6863_v0 }
  0xc9   :  { %5237 = vmatprep.subr.bf16.mxu1 %v6866_v5 }
  0xcb   :  { %5207 = vmatpush3.bf16.msra.mxu0 %v6869_v14 }
  0xcc   :  { %5239 = vmatpush3.bf16.msra.mxu1 %v6873_v19  ;;  %5209 = vmatprep.subr.bf16.mxu0 %v6875_v20 }
  0xcd   :  { %5241 = vmatprep.subr.bf16.mxu1 %v6881_v27 }
  0xcf   :  { %5211 = vmatpush3.bf16.msra.mxu0 %v6887_v35 }
  0xd0   :  { %5243 = vmatpush3.bf16.msra.mxu1 %v6891_v36  ;;  %5213 = vmatprep.subr.bf16.mxu0 %v6893_v37 }
  0xd1   :  { %5245 = vmatprep.subr.bf16.mxu1 %v6896_v42 }
  0xd3   :  { %5215 = vmatpush3.bf16.msra.mxu0 %v6899_v46 }
  0xd4   :  { %5247 = vmatpush3.bf16.msra.mxu1 %v6903_v47  ;;  %5249 = vmatprep.subr.bf16.mxu0 %v6806_v3 }
  0xd5   :  { %5281 = vmatprep.subr.bf16.mxu1 %v6808_v7 }
  0xd6   :  { %442 = vmatmul.mubr.f32.vlgmr.msra.gmra.mrb[2].mxu0 %v223_v49 }
  0xd7   :  { %512 = vmatmul.mubr.f32.vlgmr.msra.gmra.mrb[2].mxu1 %v375_v54  ;;  %5251 = vmatpush3.bf16.msra.mxu0 %v6810_v8 }
  0xd8   :  { %5283 = vmatpush3.bf16.msra.mxu1 %v6813_v12  ;;  %5253 = vmatprep.subr.bf16.mxu0 %v6817_v16 }
  0xd9   :  { %5285 = vmatprep.subr.bf16.mxu1 %v6819_v17  ;;  %587 = vmatprep.mubr.f32.mxu0 %v376_v53  ;;  %v1397_v53 = vld [vmem:[%s7906_s0 + $0x90] sm:$0xff] }
  0xda   :  { %657 = vmatprep.mubr.f32.mxu1 %v522_v55 }
  0xdb   :  { %5255 = vmatpush3.bf16.msra.mxu0 %v6822_v21 }
  0xdc   :  { %5287 = vmatpush3.bf16.msra.mxu1 %v6826_v25  ;;  %5257 = vmatprep.subr.bf16.mxu0 %v6828_v26 }
  0xdd   :  { %5289 = vmatprep.subr.bf16.mxu1 %v6830_v30 }
  0xdf   :  { %5259 = vmatpush3.bf16.msra.mxu0 %v6833_v34 }
  0xe0   :  { %5291 = vmatpush3.bf16.msra.mxu1 %v6837_v38  ;;  %5261 = vmatprep.subr.bf16.mxu0 %v6839_v39 }
  0xe1   :  { %5293 = vmatprep.subr.bf16.mxu1 %v6842_v43 }
  0xe3   :  { %5263 = vmatpush3.bf16.msra.mxu0 %v6845_v50 }
  0xe4   :  { %5295 = vmatpush3.bf16.msra.mxu1 %v6849_v51  ;;  %5265 = vmatprep.subr.bf16.mxu0 %v6851_v52 }
  0xe5   :  { %5297 = vmatprep.subr.bf16.mxu1 %v6854_v56 }
  0xe7   :  { %5267 = vmatpush3.bf16.msra.mxu0 %v6857_v62 }
  0xe8   :  { %5299 = vmatpush3.bf16.msra.mxu1 %v6861_v63  ;;  %5269 = vmatprep.subr.bf16.mxu0 %v6863_v0 }
  0xe9   :  { %5301 = vmatprep.subr.bf16.mxu1 %v6866_v5 }
  0xeb   :  { %5271 = vmatpush3.bf16.msra.mxu0 %v6869_v14 }
  0xec   :  { %5303 = vmatpush3.bf16.msra.mxu1 %v6873_v19  ;;  %5273 = vmatprep.subr.bf16.mxu0 %v6875_v20 }
  0xed   :  { %5305 = vmatprep.subr.bf16.mxu1 %v6881_v27 }
  0xef   :  { %5275 = vmatpush3.bf16.msra.mxu0 %v6887_v35 }
  0xf0   :  { %5307 = vmatpush3.bf16.msra.mxu1 %v6891_v36  ;;  %5277 = vmatprep.subr.bf16.mxu0 %v6893_v37 }
  0xf1   :  { %5309 = vmatprep.subr.bf16.mxu1 %v6896_v42 }
  0xf3   :  { %5279 = vmatpush3.bf16.msra.mxu0 %v6899_v46 }
  0xf4   :  { %5311 = vmatpush3.bf16.msra.mxu1 %v6903_v47  ;;  %5313 = vmatprep.subr.bf16.mxu0 %v6806_v3 }
  0xf5   :  { %5345 = vmatprep.subr.bf16.mxu1 %v6808_v7 }
  0xf6   :  { %588 = vmatmul.mubr.f32.vlgmr.msra.gmra.mrb[4].mxu0 %v375_v54  ;;  %v1544_v54 = vld [vmem:[%s7906_s0 + $0xa8] sm:$0xff] }
  0xf7   :  { %658 = vmatmul.mubr.f32.vlgmr.msra.gmra.mrb[4].mxu1 %v521_v57  ;;  %5315 = vmatpush3.bf16.msra.mxu0 %v6810_v8 }
  0xf8   :  { %5347 = vmatpush3.bf16.msra.mxu1 %v6813_v12  ;;  %5317 = vmatprep.subr.bf16.mxu0 %v6817_v16 }
  0xf9   :  { %5349 = vmatprep.subr.bf16.mxu1 %v6819_v17  ;;  %733 = vmatprep.mubr.f32.mxu0 %v522_v55 }
  0xfa   :  { %803 = vmatprep.mubr.f32.mxu1 %v668_v58 }
  0xfb   :  { %5319 = vmatpush3.bf16.msra.mxu0 %v6822_v21 }
  0xfc   :  { %5351 = vmatpush3.bf16.msra.mxu1 %v6826_v25  ;;  %5321 = vmatprep.subr.bf16.mxu0 %v6828_v26 }
  0xfd   :  { %5353 = vmatprep.subr.bf16.mxu1 %v6830_v30 }
  0xff   :  { %5323 = vmatpush3.bf16.msra.mxu0 %v6833_v34 }
 0x100   :  { %5355 = vmatpush3.bf16.msra.mxu1 %v6837_v38  ;;  %5325 = vmatprep.subr.bf16.mxu0 %v6839_v39 }
 0x101   :  { %5357 = vmatprep.subr.bf16.mxu1 %v6842_v43 }
 0x103   :  { %5327 = vmatpush3.bf16.msra.mxu0 %v6845_v50 }
 0x104   :  { %5359 = vmatpush3.bf16.msra.mxu1 %v6849_v51  ;;  %5329 = vmatprep.subr.bf16.mxu0 %v6851_v52 }
 0x105   :  { %5361 = vmatprep.subr.bf16.mxu1 %v6854_v56 }
 0x107   :  { %5331 = vmatpush3.bf16.msra.mxu0 %v6857_v62 }
 0x108   :  { %5363 = vmatpush3.bf16.msra.mxu1 %v6861_v63  ;;  %5333 = vmatprep.subr.bf16.mxu0 %v6863_v0 }
 0x109   :  { %5365 = vmatprep.subr.bf16.mxu1 %v6866_v5 }
 0x10b   :  { %5335 = vmatpush3.bf16.msra.mxu0 %v6869_v14 }
 0x10c   :  { %5367 = vmatpush3.bf16.msra.mxu1 %v6873_v19  ;;  %5337 = vmatprep.subr.bf16.mxu0 %v6875_v20 }
 0x10d   :  { %5369 = vmatprep.subr.bf16.mxu1 %v6881_v27 }
 0x10f   :  { %5339 = vmatpush3.bf16.msra.mxu0 %v6887_v35 }
 0x110   :  { %5371 = vmatpush3.bf16.msra.mxu1 %v6891_v36  ;;  %5341 = vmatprep.subr.bf16.mxu0 %v6893_v37 }
 0x111   :  { %5373 = vmatprep.subr.bf16.mxu1 %v6896_v42 }
 0x113   :  { %5343 = vmatpush3.bf16.msra.mxu0 %v6899_v46 }
 0x114   :  { %5375 = vmatpush3.bf16.msra.mxu1 %v6903_v47  ;;  %5377 = vmatprep.subr.bf16.mxu0 %v6806_v3 }
 0x115   :  { %5409 = vmatprep.subr.bf16.mxu1 %v6808_v7 }
 0x116   :  { %734 = vmatmul.mubr.f32.vlgmr.msra.gmra.mrb[6].mxu0 %v521_v57 }
 0x117   :  { %804 = vmatmul.mubr.f32.vlgmr.msra.gmra.mrb[6].mxu1 %v667_v59  ;;  %5379 = vmatpush3.bf16.msra.mxu0 %v6810_v8 }
 0x118   :  { %5411 = vmatpush3.bf16.msra.mxu1 %v6813_v12  ;;  %5381 = vmatprep.subr.bf16.mxu0 %v6817_v16 }
 0x119   :  { %5413 = vmatprep.subr.bf16.mxu1 %v6819_v17  ;;  %879 = vmatprep.mubr.f32.mxu0 %v668_v58 }
 0x11a   :  { %949 = vmatprep.mubr.f32.mxu1 %v814_v60 }
 0x11b   :  { %5383 = vmatpush3.bf16.msra.mxu0 %v6822_v21 }
 0x11c   :  { %5415 = vmatpush3.bf16.msra.mxu1 %v6826_v25  ;;  %5385 = vmatprep.subr.bf16.mxu0 %v6828_v26 }
 0x11d   :  { %5417 = vmatprep.subr.bf16.mxu1 %v6830_v30 }
 0x11f   :  { %5387 = vmatpush3.bf16.msra.mxu0 %v6833_v34 }
 0x120   :  { %5419 = vmatpush3.bf16.msra.mxu1 %v6837_v38  ;;  %5389 = vmatprep.subr.bf16.mxu0 %v6839_v39 }
 0x121   :  { %5421 = vmatprep.subr.bf16.mxu1 %v6842_v43 }
 0x123   :  { %5391 = vmatpush3.bf16.msra.mxu0 %v6845_v50 }
 0x124   :  { %5423 = vmatpush3.bf16.msra.mxu1 %v6849_v51  ;;  %5393 = vmatprep.subr.bf16.mxu0 %v6851_v52 }
 0x125   :  { %5425 = vmatprep.subr.bf16.mxu1 %v6854_v56 }
 0x127   :  { %5395 = vmatpush3.bf16.msra.mxu0 %v6857_v62 }
 0x128   :  { %5427 = vmatpush3.bf16.msra.mxu1 %v6861_v63  ;;  %5397 = vmatprep.subr.bf16.mxu0 %v6863_v0 }
 0x129   :  { %5429 = vmatprep.subr.bf16.mxu1 %v6866_v5 }
 0x12b   :  { %5399 = vmatpush3.bf16.msra.mxu0 %v6869_v14 }
 0x12c   :  { %5431 = vmatpush3.bf16.msra.mxu1 %v6873_v19  ;;  %5401 = vmatprep.subr.bf16.mxu0 %v6875_v20 }
 0x12d   :  { %5433 = vmatprep.subr.bf16.mxu1 %v6881_v27 }
 0x12f   :  { %5403 = vmatpush3.bf16.msra.mxu0 %v6887_v35 }
 0x130   :  { %5435 = vmatpush3.bf16.msra.mxu1 %v6891_v36  ;;  %5405 = vmatprep.subr.bf16.mxu0 %v6893_v37 }
 0x131   :  { %5437 = vmatprep.subr.bf16.mxu1 %v6896_v42 }
 0x133   :  { %5407 = vmatpush3.bf16.msra.mxu0 %v6899_v46 }
 0x134   :  { %5439 = vmatpush3.bf16.msra.mxu1 %v6903_v47  ;;  %5441 = vmatprep.subr.bf16.mxu0 %v6806_v3 }
 0x135   :  { %5473 = vmatprep.subr.bf16.mxu1 %v6808_v7 }
 0x136   :  { %880 = vmatmul.mubr.f32.vlgmr.msra.gmra.mrb[8].mxu0 %v667_v59 }
 0x137   :  { %950 = vmatmul.mubr.f32.vlgmr.msra.gmra.mrb[8].mxu1 %v813_v61  ;;  %5443 = vmatpush3.bf16.msra.mxu0 %v6810_v8 }
 0x138   :  { %5475 = vmatpush3.bf16.msra.mxu1 %v6813_v12  ;;  %5445 = vmatprep.subr.bf16.mxu0 %v6817_v16 }
 0x139   :  { %5477 = vmatprep.subr.bf16.mxu1 %v6819_v17  ;;  %1025 = vmatprep.mubr.f32.mxu0 %v814_v60 }
 0x13a   :  { %1095 = vmatprep.mubr.f32.mxu1 %v960_v1 }
 0x13b   :  { %5447 = vmatpush3.bf16.msra.mxu0 %v6822_v21 }
 0x13c   :  { %5479 = vmatpush3.bf16.msra.mxu1 %v6826_v25  ;;  %5449 = vmatprep.subr.bf16.mxu0 %v6828_v26 }
 0x13d   :  { %5481 = vmatprep.subr.bf16.mxu1 %v6830_v30 }
 0x13f   :  { %5451 = vmatpush3.bf16.msra.mxu0 %v6833_v34 }
 0x140   :  { %5483 = vmatpush3.bf16.msra.mxu1 %v6837_v38  ;;  %5453 = vmatprep.subr.bf16.mxu0 %v6839_v39 }
 0x141   :  { %5485 = vmatprep.subr.bf16.mxu1 %v6842_v43 }
 0x143   :  { %5455 = vmatpush3.bf16.msra.mxu0 %v6845_v50 }
 0x144   :  { %5487 = vmatpush3.bf16.msra.mxu1 %v6849_v51  ;;  %5457 = vmatprep.subr.bf16.mxu0 %v6851_v52 }
 0x145   :  { %5489 = vmatprep.subr.bf16.mxu1 %v6854_v56 }
 0x147   :  { %5459 = vmatpush3.bf16.msra.mxu0 %v6857_v62 }
 0x148   :  { %5491 = vmatpush3.bf16.msra.mxu1 %v6861_v63  ;;  %5461 = vmatprep.subr.bf16.mxu0 %v6863_v0 }
 0x149   :  { %5493 = vmatprep.subr.bf16.mxu1 %v6866_v5 }
 0x14b   :  { %5463 = vmatpush3.bf16.msra.mxu0 %v6869_v14 }
 0x14c   :  { %5495 = vmatpush3.bf16.msra.mxu1 %v6873_v19  ;;  %5465 = vmatprep.subr.bf16.mxu0 %v6875_v20 }
 0x14d   :  { %5497 = vmatprep.subr.bf16.mxu1 %v6881_v27 }
 0x14f   :  { %5467 = vmatpush3.bf16.msra.mxu0 %v6887_v35 }
 0x150   :  { %5499 = vmatpush3.bf16.msra.mxu1 %v6891_v36  ;;  %5469 = vmatprep.subr.bf16.mxu0 %v6893_v37 }
 0x151   :  { %5501 = vmatprep.subr.bf16.mxu1 %v6896_v42 }
 0x153   :  { %5471 = vmatpush3.bf16.msra.mxu0 %v6899_v46 }
 0x154   :  { %5503 = vmatpush3.bf16.msra.mxu1 %v6903_v47  ;;  %5505 = vmatprep.subr.bf16.mxu0 %v6806_v3 }
 0x155   :  { %5537 = vmatprep.subr.bf16.mxu1 %v6808_v7 }
 0x156   :  { %1026 = vmatmul.mubr.f32.vlgmr.msra.gmra.mrb[10].mxu0 %v813_v61 }
 0x157   :  { %1096 = vmatmul.mubr.f32.vlgmr.msra.gmra.mrb[10].mxu1 %v959_v2  ;;  %5507 = vmatpush3.bf16.msra.mxu0 %v6810_v8 }
 0x158   :  { %5539 = vmatpush3.bf16.msra.mxu1 %v6813_v12  ;;  %5509 = vmatprep.subr.bf16.mxu0 %v6817_v16 }
 0x159   :  { %5541 = vmatprep.subr.bf16.mxu1 %v6819_v17  ;;  %1171 = vmatprep.mubr.f32.mxu0 %v960_v1 }
 0x15a   :  { %1241 = vmatprep.mubr.f32.mxu1 %v1106_v4 }
 0x15b   :  { %5511 = vmatpush3.bf16.msra.mxu0 %v6822_v21 }
 0x15c   :  { %5543 = vmatpush3.bf16.msra.mxu1 %v6826_v25  ;;  %5513 = vmatprep.subr.bf16.mxu0 %v6828_v26 }
 0x15d   :  { %5545 = vmatprep.subr.bf16.mxu1 %v6830_v30 }
 0x15f   :  { %5515 = vmatpush3.bf16.msra.mxu0 %v6833_v34 }
 0x160   :  { %5547 = vmatpush3.bf16.msra.mxu1 %v6837_v38  ;;  %5517 = vmatprep.subr.bf16.mxu0 %v6839_v39 }
 0x161   :  { %5549 = vmatprep.subr.bf16.mxu1 %v6842_v43 }
 0x163   :  { %5519 = vmatpush3.bf16.msra.mxu0 %v6845_v50 }
 0x164   :  { %5551 = vmatpush3.bf16.msra.mxu1 %v6849_v51  ;;  %5521 = vmatprep.subr.bf16.mxu0 %v6851_v52 }
 0x165   :  { %5553 = vmatprep.subr.bf16.mxu1 %v6854_v56 }
 0x167   :  { %5523 = vmatpush3.bf16.msra.mxu0 %v6857_v62 }
 0x168   :  { %5555 = vmatpush3.bf16.msra.mxu1 %v6861_v63  ;;  %5525 = vmatprep.subr.bf16.mxu0 %v6863_v0 }
 0x169   :  { %5557 = vmatprep.subr.bf16.mxu1 %v6866_v5 }
 0x16b   :  { %5527 = vmatpush3.bf16.msra.mxu0 %v6869_v14 }
 0x16c   :  { %5559 = vmatpush3.bf16.msra.mxu1 %v6873_v19  ;;  %5529 = vmatprep.subr.bf16.mxu0 %v6875_v20 }
 0x16d   :  { %5561 = vmatprep.subr.bf16.mxu1 %v6881_v27 }
 0x16f   :  { %5531 = vmatpush3.bf16.msra.mxu0 %v6887_v35 }
 0x170   :  { %5563 = vmatpush3.bf16.msra.mxu1 %v6891_v36  ;;  %5533 = vmatprep.subr.bf16.mxu0 %v6893_v37 }
 0x171   :  { %5565 = vmatprep.subr.bf16.mxu1 %v6896_v42 }
 0x173   :  { %5535 = vmatpush3.bf16.msra.mxu0 %v6899_v46 }
 0x174   :  { %5567 = vmatpush3.bf16.msra.mxu1 %v6903_v47  ;;  %5569 = vmatprep.subr.bf16.mxu0 %v6806_v3 }
 0x175   :  { %5601 = vmatprep.subr.bf16.mxu1 %v6808_v7 }
 0x176   :  { %1172 = vmatmul.mubr.f32.vlgmr.msra.gmra.mrb[12].mxu0 %v959_v2 }
 0x177   :  { %1242 = vmatmul.mubr.f32.vlgmr.msra.gmra.mrb[12].mxu1 %v1105_v6  ;;  %5571 = vmatpush3.bf16.msra.mxu0 %v6810_v8 }
 0x178   :  { %5603 = vmatpush3.bf16.msra.mxu1 %v6813_v12  ;;  %5573 = vmatprep.subr.bf16.mxu0 %v6817_v16 }
 0x179   :  { %5605 = vmatprep.subr.bf16.mxu1 %v6819_v17  ;;  %1317 = vmatprep.mubr.f32.mxu0 %v1106_v4  ;;  %v1543_v4 = vld [vmem:[%s7906_s0 + $0xa0] sm:$0xff] }
 0x17a   :  { %1387 = vmatprep.mubr.f32.mxu1 %v1252_v9 }
 0x17b   :  { %5575 = vmatpush3.bf16.msra.mxu0 %v6822_v21 }
 0x17c   :  { %5607 = vmatpush3.bf16.msra.mxu1 %v6826_v25  ;;  %5577 = vmatprep.subr.bf16.mxu0 %v6828_v26 }
 0x17d   :  { %5609 = vmatprep.subr.bf16.mxu1 %v6830_v30 }
 0x17f   :  { %5579 = vmatpush3.bf16.msra.mxu0 %v6833_v34 }
 0x180   :  { %5611 = vmatpush3.bf16.msra.mxu1 %v6837_v38  ;;  %5581 = vmatprep.subr.bf16.mxu0 %v6839_v39 }
 0x181   :  { %5613 = vmatprep.subr.bf16.mxu1 %v6842_v43 }
 0x183   :  { %5583 = vmatpush3.bf16.msra.mxu0 %v6845_v50 }
 0x184   :  { %5615 = vmatpush3.bf16.msra.mxu1 %v6849_v51  ;;  %5585 = vmatprep.subr.bf16.mxu0 %v6851_v52 }
 0x185   :  { %5617 = vmatprep.subr.bf16.mxu1 %v6854_v56 }
 0x187   :  { %5587 = vmatpush3.bf16.msra.mxu0 %v6857_v62 }
 0x188   :  { %5619 = vmatpush3.bf16.msra.mxu1 %v6861_v63  ;;  %5589 = vmatprep.subr.bf16.mxu0 %v6863_v0 }
 0x189   :  { %v3754_v10 = vpop.f32.mrb[0].mxu0  ;;  %5621 = vmatprep.subr.bf16.mxu1 %v6866_v5 }
 0x18a   :  { %v3755_v13 = vpop.f32.mrb[1].mxu0  ;;  %v3789_v15 = vpop.f32.mrb[0].mxu1 }
 0x18b   :  { %v3756_v18 = vadd.f32 %v3755_v13, %v3754_v10  ;;  %5591 = vmatpush3.bf16.msra.mxu0 %v6869_v14  ;;  %v3790_v22 = vpop.f32.mrb[1].mxu1 }
 0x18c   :  { %5623 = vmatpush3.bf16.msra.mxu1 %v6873_v19  ;;  %v3791_v23 = vadd.f32 %v3790_v22, %v3789_v15  ;;  %5593 = vmatprep.subr.bf16.mxu0 %v6875_v20 }
 0x18d   :  { %v298_v24 = vadd.f32 %v3756_v18, %v7167_v11  ;;  %5625 = vmatprep.subr.bf16.mxu1 %v6881_v27 }
 0x18f   :  { %v7174_v28 = vadd.f32 %v3791_v23, %v298_v24  ;;  %5595 = vmatpush3.bf16.msra.mxu0 %v6887_v35 }
 0x190   :  { %5627 = vmatpush3.bf16.msra.mxu1 %v6891_v36  ;;  %5597 = vmatprep.subr.bf16.mxu0 %v6893_v37 }
 0x191   :  { %5629 = vmatprep.subr.bf16.mxu1 %v6896_v42 }
 0x193   :  { %5599 = vmatpush3.bf16.msra.mxu0 %v6899_v46 }
 0x194   :  { %5631 = vmatpush3.bf16.msra.mxu1 %v6903_v47  ;;  %5633 = vmatprep.subr.bf16.mxu0 %v6806_v3 }
 0x195   :  { %5665 = vmatprep.subr.bf16.mxu1 %v6808_v7 }
 0x196   :  { %1318 = vmatmul.mubr.f32.vlgmr.msra.gmra.mrb[14].mxu0 %v1105_v6  ;;  %v1690_v6 = vld [vmem:[%s7906_s0 + $0xb8] sm:$0xff] }
 0x197   :  { %1388 = vmatmul.mubr.f32.vlgmr.msra.gmra.mrb[14].mxu1 %v1251_v29  ;;  %5635 = vmatpush3.bf16.msra.mxu0 %v6810_v8 }
 0x198   :  { %5667 = vmatpush3.bf16.msra.mxu1 %v6813_v12  ;;  %5637 = vmatprep.subr.bf16.mxu0 %v6817_v16 }
 0x199   :  { %5669 = vmatprep.subr.bf16.mxu1 %v6819_v17  ;;  %1463 = vmatprep.mubr.f32.mxu0 %v1252_v9 }
 0x19a   :  { %1533 = vmatprep.mubr.f32.mxu1 %v1398_v31 }
 0x19b   :  { %5639 = vmatpush3.bf16.msra.mxu0 %v6822_v21 }
 0x19c   :  { %5671 = vmatpush3.bf16.msra.mxu1 %v6826_v25  ;;  %5641 = vmatprep.subr.bf16.mxu0 %v6828_v26 }
 0x19d   :  { %5673 = vmatprep.subr.bf16.mxu1 %v6830_v30 }
 0x19f   :  { %5643 = vmatpush3.bf16.msra.mxu0 %v6833_v34 }
 0x1a0   :  { %5675 = vmatpush3.bf16.msra.mxu1 %v6837_v38  ;;  %5645 = vmatprep.subr.bf16.mxu0 %v6839_v39 }
 0x1a1   :  { %5677 = vmatprep.subr.bf16.mxu1 %v6842_v43 }
 0x1a3   :  { %5647 = vmatpush3.bf16.msra.mxu0 %v6845_v50 }
 0x1a4   :  { %5679 = vmatpush3.bf16.msra.mxu1 %v6849_v51  ;;  %5649 = vmatprep.subr.bf16.mxu0 %v6851_v52 }
 0x1a5   :  { %5681 = vmatprep.subr.bf16.mxu1 %v6854_v56 }
 0x1a7   :  { %5651 = vmatpush3.bf16.msra.mxu0 %v6857_v62 }
 0x1a8   :  { %5683 = vmatpush3.bf16.msra.mxu1 %v6861_v63  ;;  %5653 = vmatprep.subr.bf16.mxu0 %v6863_v0 }
 0x1a9   :  { %v3824_v32 = vpop.f32.mrb[2].mxu0  ;;  %5685 = vmatprep.subr.bf16.mxu1 %v6866_v5 }
 0x1aa   :  { %v3825_v33 = vpop.f32.mrb[3].mxu0  ;;  %v3859_v40 = vpop.f32.mrb[2].mxu1 }
 0x1ab   :  { %v3826_v41 = vadd.f32 %v3825_v33, %v3824_v32  ;;  %5655 = vmatpush3.bf16.msra.mxu0 %v6869_v14  ;;  %v3860_v44 = vpop.f32.mrb[3].mxu1  ;;  %v2014_v32 = vld [vmem:[#allocation6 + $0x118] sm:$0xff]  ;;  %v1999_v33 = vld [vmem:[#allocation6 + $0xa0] sm:$0xff] }
 0x1ac   :  { %5687 = vmatpush3.bf16.msra.mxu1 %v6873_v19  ;;  %v3861_v45 = vadd.f32 %v3860_v44, %v3859_v40  ;;  %5657 = vmatprep.subr.bf16.mxu0 %v6875_v20  ;;  %v2000_v40 = vld [vmem:[#allocation6 + $0xa8] sm:$0xff] }
 0x1ad   :  { %v444_v48 = vadd.f32 %v3826_v41, %v7167_v11  ;;  %5689 = vmatprep.subr.bf16.mxu1 %v6881_v27 }
 0x1af   :  { %v7215_v49 = vadd.f32 %v3861_v45, %v444_v48  ;;  %5659 = vmatpush3.bf16.msra.mxu0 %v6887_v35  ;;  %v2032_v45 = vld [vmem:[#allocation6 + $0x1a8] sm:$0xff] }
 0x1b0   :  { %5691 = vmatpush3.bf16.msra.mxu1 %v6891_v36  ;;  %5661 = vmatprep.subr.bf16.mxu0 %v6893_v37 }
 0x1b1   :  { %5693 = vmatprep.subr.bf16.mxu1 %v6896_v42 }
 0x1b3   :  { %5663 = vmatpush3.bf16.msra.mxu0 %v6899_v46 }
 0x1b4   :  { %5695 = vmatpush3.bf16.msra.mxu1 %v6903_v47  ;;  %5697 = vmatprep.subr.bf16.mxu0 %v6806_v3 }
 0x1b5   :  { %5729 = vmatprep.subr.bf16.mxu1 %v6808_v7 }
 0x1b6   :  { %1464 = vmatmul.mubr.f32.vlgmr.msra.gmra.mrb[16].mxu0 %v1251_v29  ;;  %v7309_v29 = vld [vmem:[%s7906_s0 + $0xb0] sm:$0xff] }
 0x1b7   :  { %1534 = vmatmul.mubr.f32.vlgmr.msra.gmra.mrb[16].mxu1 %v1397_v53  ;;  %5699 = vmatpush3.bf16.msra.mxu0 %v6810_v8 }
 0x1b8   :  { %5731 = vmatpush3.bf16.msra.mxu1 %v6813_v12  ;;  %5701 = vmatprep.subr.bf16.mxu0 %v6817_v16 }
 0x1b9   :  { %5733 = vmatprep.subr.bf16.mxu1 %v6819_v17  ;;  %1609 = vmatprep.mubr.f32.mxu0 %v1398_v31  ;;  %v1836_v31 = vld [vmem:[%s7906_s0 + $0xc8] sm:$0xff] }
 0x1ba   :  { %1679 = vmatprep.mubr.f32.mxu1 %v1544_v54 }
 0x1bb   :  { %5703 = vmatpush3.bf16.msra.mxu0 %v6822_v21 }
 0x1bc   :  { %5735 = vmatpush3.bf16.msra.mxu1 %v6826_v25  ;;  %5705 = vmatprep.subr.bf16.mxu0 %v6828_v26 }
 0x1bd   :  { %5737 = vmatprep.subr.bf16.mxu1 %v6830_v30 }
 0x1bf   :  { %5707 = vmatpush3.bf16.msra.mxu0 %v6833_v34 }
 0x1c0   :  { %5739 = vmatpush3.bf16.msra.mxu1 %v6837_v38  ;;  %5709 = vmatprep.subr.bf16.mxu0 %v6839_v39 }
 0x1c1   :  { %5741 = vmatprep.subr.bf16.mxu1 %v6842_v43 }
 0x1c3   :  { %5711 = vmatpush3.bf16.msra.mxu0 %v6845_v50 }
 0x1c4   :  { %5743 = vmatpush3.bf16.msra.mxu1 %v6849_v51  ;;  %5713 = vmatprep.subr.bf16.mxu0 %v6851_v52 }
 0x1c5   :  { %5745 = vmatprep.subr.bf16.mxu1 %v6854_v56 }
 0x1c7   :  { %5715 = vmatpush3.bf16.msra.mxu0 %v6857_v62 }
 0x1c8   :  { %5747 = vmatpush3.bf16.msra.mxu1 %v6861_v63  ;;  %5717 = vmatprep.subr.bf16.mxu0 %v6863_v0 }
 0x1c9   :  { %v3894_v55 = vpop.f32.mrb[4].mxu0  ;;  %5749 = vmatprep.subr.bf16.mxu1 %v6866_v5 }
 0x1ca   :  { %v3895_v57 = vpop.f32.mrb[5].mxu0  ;;  %v3929_v58 = vpop.f32.mrb[4].mxu1 }
 0x1cb   :  { %v3896_v59 = vadd.f32 %v3895_v57, %v3894_v55  ;;  %5719 = vmatpush3.bf16.msra.mxu0 %v6869_v14  ;;  %v3930_v60 = vpop.f32.mrb[5].mxu1  ;;  %v7379_v55 = vpack.c.bf16 %v2000_v40, %v1999_v33  ;;  %v1984_v57 = vld [vmem:[#allocation6 + $0x28] sm:$0xff] }
 0x1cc   :  { %5751 = vmatpush3.bf16.msra.mxu1 %v6873_v19  ;;  %v3931_v61 = vadd.f32 %v3930_v60, %v3929_v58  ;;  %5721 = vmatprep.subr.bf16.mxu0 %v6875_v20  ;;  %v2015_v58 = vld [vmem:[#allocation6 + $0x120] sm:$0xff]  ;;  %v2016_v60 = vld [vmem:[#allocation6 + $0x128] sm:$0xff] }
 0x1cd   :  { %v590_v1 = vadd.f32 %v3896_v59, %v7167_v11  ;;  %5753 = vmatprep.subr.bf16.mxu1 %v6881_v27 }
 0x1cf   :  { %v7256_v2 = vadd.f32 %v3931_v61, %v590_v1  ;;  %5723 = vmatpush3.bf16.msra.mxu0 %v6887_v35  ;;  %v2001_v61 = vld [vmem:[#allocation6 + $0xb0] sm:$0xff]  ;;  %v2002_v1 = vld [vmem:[#allocation6 + $0xb8] sm:$0xff] }
 0x1d0   :  { %5755 = vmatpush3.bf16.msra.mxu1 %v6891_v36  ;;  %5725 = vmatprep.subr.bf16.mxu0 %v6893_v37 }
 0x1d1   :  { %5757 = vmatprep.subr.bf16.mxu1 %v6896_v42 }
 0x1d3   :  { %5727 = vmatpush3.bf16.msra.mxu0 %v6899_v46 }
 0x1d4   :  { %5759 = vmatpush3.bf16.msra.mxu1 %v6903_v47  ;;  %5761 = vmatprep.subr.bf16.mxu0 %v6806_v3 }
 0x1d5   :  { %5793 = vmatprep.subr.bf16.mxu1 %v6808_v7 }
 0x1d6   :  { %1610 = vmatmul.mubr.f32.vlgmr.msra.gmra.mrb[18].mxu0 %v1397_v53 }
 0x1d7   :  { %1680 = vmatmul.mubr.f32.vlgmr.msra.gmra.mrb[18].mxu1 %v1543_v4  ;;  %5763 = vmatpush3.bf16.msra.mxu0 %v6810_v8 }
 0x1d8   :  { %5795 = vmatpush3.bf16.msra.mxu1 %v6813_v12  ;;  %5765 = vmatprep.subr.bf16.mxu0 %v6817_v16 }
 0x1d9   :  { %5797 = vmatprep.subr.bf16.mxu1 %v6819_v17  ;;  %1755 = vmatprep.mubr.f32.mxu0 %v1544_v54 }
 0x1da   :  { %1825 = vmatprep.mubr.f32.mxu1 %v1690_v6 }
 0x1db   :  { %5767 = vmatpush3.bf16.msra.mxu0 %v6822_v21 }
 0x1dc   :  { %5799 = vmatpush3.bf16.msra.mxu1 %v6826_v25  ;;  %5769 = vmatprep.subr.bf16.mxu0 %v6828_v26 }
 0x1dd   :  { %5801 = vmatprep.subr.bf16.mxu1 %v6830_v30 }
 0x1df   :  { %5771 = vmatpush3.bf16.msra.mxu0 %v6833_v34 }
 0x1e0   :  { %5803 = vmatpush3.bf16.msra.mxu1 %v6837_v38  ;;  %5773 = vmatprep.subr.bf16.mxu0 %v6839_v39 }
 0x1e1   :  { %5805 = vmatprep.subr.bf16.mxu1 %v6842_v43 }
 0x1e3   :  { %5775 = vmatpush3.bf16.msra.mxu0 %v6845_v50 }
 0x1e4   :  { %5807 = vmatpush3.bf16.msra.mxu1 %v6849_v51  ;;  %5777 = vmatprep.subr.bf16.mxu0 %v6851_v52 }
 0x1e5   :  { %5809 = vmatprep.subr.bf16.mxu1 %v6854_v56 }
 0x1e7   :  { %5779 = vmatpush3.bf16.msra.mxu0 %v6857_v62 }
 0x1e8   :  { %5811 = vmatpush3.bf16.msra.mxu1 %v6861_v63  ;;  %5781 = vmatprep.subr.bf16.mxu0 %v6863_v0 }
 0x1e9   :  { %v3964_v9 = vpop.f32.mrb[6].mxu0  ;;  %5813 = vmatprep.subr.bf16.mxu1 %v6866_v5 }
 0x1ea   :  { %v3965_v10 = vpop.f32.mrb[7].mxu0  ;;  %v3999_v13 = vpop.f32.mrb[6].mxu1 }
 0x1eb   :  { %v3966_v15 = vadd.f32 %v3965_v10, %v3964_v9  ;;  %5783 = vmatpush3.bf16.msra.mxu0 %v6869_v14  ;;  %v4000_v18 = vpop.f32.mrb[7].mxu1  ;;  %v7391_v10 = vpack.c.bf16 %v2016_v60, %v2015_v58  ;;  %v2024_v60 = vld [vmem:[#allocation6 + $0x168] sm:$0xff] }
 0x1ec   :  { %5815 = vmatpush3.bf16.msra.mxu1 %v6873_v19  ;;  %v4001_v22 = vadd.f32 %v4000_v18, %v3999_v13  ;;  %5785 = vmatprep.subr.bf16.mxu0 %v6875_v20  ;;  %v7393_v13 = vpack.c.bf16 %v2002_v1, %v2001_v61  ;;  %v1986_v18 = vld [vmem:[#allocation6 + $0x38] sm:$0xff]  ;;  %v2009_v61 = vld [vmem:[#allocation6 + $0xf0] sm:$0xff] }
 0x1ed   :  { %v736_v23 = vadd.f32 %v3966_v15, %v7167_v11  ;;  %5817 = vmatprep.subr.bf16.mxu1 %v6881_v27  ;;  %v1985_v15 = vld [vmem:[#allocation6 + $0x30] sm:$0xff]  ;;  %v2010_v1 = vld [vmem:[#allocation6 + $0xf8] sm:$0xff] }
 0x1ef   :  { %v7297_v24 = vadd.f32 %v4001_v22, %v736_v23  ;;  %5787 = vmatpush3.bf16.msra.mxu0 %v6887_v35  ;;  %v2017_v22 = vld [vmem:[#allocation6 + $0x130] sm:$0xff] }
 0x1f0   :  { %5819 = vmatpush3.bf16.msra.mxu1 %v6891_v36  ;;  %5789 = vmatprep.subr.bf16.mxu0 %v6893_v37 }
 0x1f1   :  { %5821 = vmatprep.subr.bf16.mxu1 %v6896_v42 }
 0x1f3   :  { %5791 = vmatpush3.bf16.msra.mxu0 %v6899_v46 }
 0x1f4   :  { %5823 = vmatpush3.bf16.msra.mxu1 %v6903_v47  ;;  %5825 = vmatprep.subr.bf16.mxu0 %v6806_v3 }
 0x1f5   :  { %5857 = vmatprep.subr.bf16.mxu1 %v6808_v7 }
 0x1f6   :  { %1756 = vmatmul.mubr.f32.vlgmr.msra.gmra.mrb[20].mxu0 %v1543_v4  ;;  %v2033_v4 = vld [vmem:[#allocation6 + $0x1b0] sm:$0xff] }
 0x1f7   :  { %1826 = vmatmul.mubr.f32.vlgmr.msra.gmra.mrb[20].mxu1 %v7309_v29  ;;  %5827 = vmatpush3.bf16.msra.mxu0 %v6810_v8 }
 0x1f8   :  { %5859 = vmatpush3.bf16.msra.mxu1 %v6813_v12  ;;  %5829 = vmatprep.subr.bf16.mxu0 %v6817_v16 }
 0x1f9   :  { %5861 = vmatprep.subr.bf16.mxu1 %v6819_v17  ;;  %1901 = vmatprep.mubr.f32.mxu0 %v1690_v6  ;;  %v2034_v6 = vld [vmem:[#allocation6 + $0x1b8] sm:$0xff] }
 0x1fa   :  { %1971 = vmatprep.mubr.f32.mxu1 %v1836_v31  ;;  %v7396_v23 = vpack.c.bf16 %v2034_v6, %v2033_v4  ;;  %v2004_v31 = vld [vmem:[#allocation6 + $0xc8] sm:$0xff] }
 0x1fb   :  { %5831 = vmatpush3.bf16.msra.mxu0 %v6822_v21 }
 0x1fc   :  { %5863 = vmatpush3.bf16.msra.mxu1 %v6826_v25  ;;  %5833 = vmatprep.subr.bf16.mxu0 %v6828_v26  ;;  %v1995_v25 = vld [vmem:[#allocation6 + $0x80] sm:$0xff]  ;;  %v1996_v26 = vld [vmem:[#allocation6 + $0x88] sm:$0xff] }
 0x1fd   :  { %5865 = vmatprep.subr.bf16.mxu1 %v6830_v30  ;;  %v2027_v30 = vld [vmem:[#allocation6 + $0x180] sm:$0xff] }
 0x1ff   :  { %5835 = vmatpush3.bf16.msra.mxu0 %v6833_v34  ;;  %v2028_v34 = vld [vmem:[#allocation6 + $0x188] sm:$0xff] }
 0x200   :  { %5867 = vmatpush3.bf16.msra.mxu1 %v6837_v38  ;;  %5837 = vmatprep.subr.bf16.mxu0 %v6839_v39  ;;  %v7346_v39 = vpack.c.bf16 %v1996_v26, %v1995_v25  ;;  %v2019_v25 = vld [vmem:[#allocation6 + $0x140] sm:$0xff] }
 0x201   :  { %5869 = vmatprep.subr.bf16.mxu1 %v6842_v43  ;;  %v1979_v43 = vld [vmem:[#allocation6] sm:$0xff] }
 0x203   :  { %5839 = vmatpush3.bf16.msra.mxu0 %v6845_v50  ;;  %v1980_v50 = vld [vmem:[#allocation6 + $0x8] sm:$0xff] }
 0x204   :  { %5871 = vmatpush3.bf16.msra.mxu1 %v6849_v51  ;;  %5841 = vmatprep.subr.bf16.mxu0 %v6851_v52  ;;  %v7349_v51 = vpack.c.bf16 %v2028_v34, %v2027_v30  ;;  %v2011_v52 = vld [vmem:[#allocation6 + $0x100] sm:$0xff]  ;;  %v2020_v30 = vld [vmem:[#allocation6 + $0x148] sm:$0xff]  ;;  %v2005_v34 = vld [vmem:[#allocation6 + $0xd0] sm:$0xff] }
 0x205   :  { %5873 = vmatprep.subr.bf16.mxu1 %v6854_v56  ;;  %v2012_v56 = vld [vmem:[#allocation6 + $0x108] sm:$0xff] }
 0x207   :  { %5843 = vmatpush3.bf16.msra.mxu0 %v6857_v62  ;;  %v517_v62 = vmul.f32 0.2, %v7215_v49 }
 0x208   :  { %5875 = vmatpush3.bf16.msra.mxu1 %v6861_v63  ;;  %5845 = vmatprep.subr.bf16.mxu0 %v6863_v0  ;;  %v1997_v63 = vld [vmem:[#allocation6 + $0x90] sm:$0xff]  ;;  %v1998_v0 = vld [vmem:[#allocation6 + $0x98] sm:$0xff] }
 0x209   :  { %v4034_v3 = vpop.f32.mrb[8].mxu0  ;;  %5877 = vmatprep.subr.bf16.mxu1 %v6866_v5  ;;  %v809_v5 = vmul.f32 0.2, %v7297_v24  ;;  %v518_v41 = vmax.f32 %v7215_v49, %v517_v62  ;;  %v1983_v49 = vld [vmem:[#allocation6 + $0x20] sm:$0xff]  ;;  %v7415_v62 = vpack.c.bf16 %v2020_v30, %v2019_v25 }
 0x20a   :  { %v4035_v7 = vpop.f32.mrb[9].mxu0  ;;  %v4069_v8 = vpop.f32.mrb[8].mxu1  ;;  %v7387_v9 = vpack.c.bf16 %v1984_v57, %v1983_v49  ;;  %v2023_v49 = vld [vmem:[#allocation6 + $0x160] sm:$0xff] }
 0x20b   :  { %v4036_v12 = vadd.f32 %v4035_v7, %v4034_v3  ;;  %5847 = vmatpush3.bf16.msra.mxu0 %v6869_v14  ;;  %v4070_v16 = vpop.f32.mrb[9].mxu1  ;;  %v1835_v14 = vld [vmem:[%s7906_s0 + $0xc0] sm:$0xff]  ;;  %v7372_v48 = vmax.f32 %v7297_v24, %v809_v5  ;;  %v2036_v7 = vld [vmem:[#allocation6 + $0x1c8] sm:$0xff] }
 0x20c   :  { %5879 = vmatpush3.bf16.msra.mxu1 %v6873_v19  ;;  %v4071_v17 = vadd.f32 %v4070_v16, %v4069_v8  ;;  %5849 = vmatprep.subr.bf16.mxu0 %v6875_v20  ;;  %v7357_v19 = vpack.c.bf16 %v1980_v50, %v1979_v43  ;;  %v2029_v20 = vld [vmem:[#allocation6 + $0x190] sm:$0xff]  ;;  %v2018_v24 = vld [vmem:[#allocation6 + $0x138] sm:$0xff]  ;;  %v2035_v3 = vld [vmem:[#allocation6 + $0x1c0] sm:$0xff]  ;;  %v7399_v8 = vpack.c.bf16 %v1986_v18, %v1985_v15 }
 0x20d   :  { %v882_v21 = vadd.f32 %v4036_v12, %v7167_v11  ;;  %5881 = vmatprep.subr.bf16.mxu1 %v6881_v27  ;;  %v2030_v27 = vld [vmem:[#allocation6 + $0x198] sm:$0xff]  ;;  %v7403_v12 = vpack.c.bf16 %v2018_v24, %v2017_v22  ;;  %v7408_v26 = vpack.c.bf16 %v2036_v7, %v2035_v3  ;;  %v2037_v50 = vld [vmem:[#allocation6 + $0x1d0] sm:$0xff]  ;;  %v7439_v3 = vpack.c.bf16 %v2024_v60, %v2023_v49 }
 0x20e   :  { %v7368_v44 = vpack.c.bf16 %v2030_v27, %v2029_v20  ;;  %v2006_v43 = vld [vmem:[#allocation6 + $0xd8] sm:$0xff]  ;;  %v2041_v15 = vld [vmem:[#allocation6 + $0x1f0] sm:$0xff]  ;;  %v7441_v7 = vpack.c.bf16 %v2010_v1, %v2009_v61 }
 0x20f   :  { %v7341_v38 = vadd.f32 %v4071_v17, %v882_v21  ;;  %5851 = vmatpush3.bf16.msra.mxu0 %v6887_v35  ;;  %v7361_v35 = vpack.c.bf16 %v2012_v56, %v2011_v52  ;;  %v1987_v17 = vld [vmem:[#allocation6 + $0x40] sm:$0xff]  ;;  %v1988_v21 = vld [vmem:[#allocation6 + $0x48] sm:$0xff]  ;;  %v2038_v52 = vld [vmem:[#allocation6 + $0x1d8] sm:$0xff] }
 0x210   :  { %5883 = vmatpush3.bf16.msra.mxu1 %v6891_v36  ;;  %5853 = vmatprep.subr.bf16.mxu0 %v6893_v37  ;;  %v1981_v36 = vld [vmem:[#allocation6 + $0x10] sm:$0xff]  ;;  %v1982_v37 = vld [vmem:[#allocation6 + $0x18] sm:$0xff]  ;;  %v7411_v56 = vpack.c.bf16 %v1988_v21, %v1987_v17  ;;  %v7420_v20 = vpack.c.bf16 %v2038_v52, %v2037_v50 }
 0x211   :  { %5885 = vmatprep.subr.bf16.mxu1 %v6896_v42  ;;  %v2013_v42 = vld [vmem:[#allocation6 + $0x110] sm:$0xff]  ;;  %v7374_v53 = vpack.c.bf16 %v1982_v37, %v1981_v36  ;;  %v1990_v5 = vld [vmem:[#allocation6 + $0x58] sm:$0xff]  ;;  %v2007_v36 = vld [vmem:[#allocation6 + $0xe0] sm:$0xff]  ;;  %v955_v60 = vmul.f32 0.2, %v7341_v38 }
 0x212   :  { %v7377_v54 = vpack.c.bf16 %v2014_v32, %v2013_v42  ;;  %v2022_v27 = vld [vmem:[#allocation6 + $0x158] sm:$0xff]  ;;  %v2008_v37 = vld [vmem:[#allocation6 + $0xe8] sm:$0xff]  ;;  %v2039_v42 = vld [vmem:[#allocation6 + $0x1e0] sm:$0xff] }
 0x213   :  { %5855 = vmatpush3.bf16.msra.mxu0 %v6899_v46  ;;  %v7364_v46 = vpack.c.bf16 %v1998_v0, %v1997_v63  ;;  %v7417_v63 = vpack.c.bf16 %v2006_v43, %v2005_v34  ;;  %v1989_v0 = vld [vmem:[#allocation6 + $0x50] sm:$0xff]  ;;  %v2040_v32 = vld [vmem:[#allocation6 + $0x1e8] sm:$0xff]  ;;  %v2042_v18 = vld [vmem:[#allocation6 + $0x1f8] sm:$0xff]  ;;  %v956_v61 = vmax.f32 %v7341_v38, %v955_v60 }
 0x214   :  { %5887 = vmatpush3.bf16.msra.mxu1 %v6903_v47  ;;  %5889 = vmatprep.subr.bf16.mxu0 %v7346_v39  ;;  %v2031_v47 = vld [vmem:[#allocation6 + $0x1a0] sm:$0xff]  ;;  %v7423_v33 = vpack.c.bf16 %v1990_v5, %v1989_v0  ;;  %v7432_v58 = vpack.c.bf16 %v2040_v32, %v2039_v42  ;;  %v1993_v17 = vld [vmem:[#allocation6 + $0x70] sm:$0xff]  ;;  %v1994_v21 = vld [vmem:[#allocation6 + $0x78] sm:$0xff]  ;;  %v7445_v30 = vpack.c.bf16 %v2042_v18, %v2041_v15  ;;  %v371_v0 = vmul.f32 0.2, %v7174_v28 }
 0x215   :  { %5921 = vmatprep.subr.bf16.mxu1 %v7349_v51  ;;  %v7383_v59 = vpack.c.bf16 %v2032_v45, %v2031_v47  ;;  %v1991_v47 = vld [vmem:[#allocation6 + $0x60] sm:$0xff]  ;;  %v1992_v45 = vld [vmem:[#allocation6 + $0x68] sm:$0xff]  ;;  %v2025_v34 = vld [vmem:[#allocation6 + $0x170] sm:$0xff]  ;;  %v7448_v52 = vpack.c.bf16 %v1994_v21, %v1993_v17 }
 0x216   :  { %1902 = vmatmul.mubr.f32.vlgmr.msra.gmra.mrb[22].mxu0 %v7309_v29  ;;  %v2003_v29 = vld [vmem:[#allocation6 + $0xc0] sm:$0xff]  ;;  %v2026_v43 = vld [vmem:[#allocation6 + $0x178] sm:$0xff] }
 0x217   :  { %1972 = vmatmul.mubr.f32.vlgmr.msra.gmra.mrb[22].mxu1 %v1835_v14  ;;  %5891 = vmatpush3.bf16.msra.mxu0 %v7357_v19  ;;  %v7405_v16 = vpack.c.bf16 %v2004_v31, %v2003_v29  ;;  %v2021_v14 = vld [vmem:[#allocation6 + $0x150] sm:$0xff]  ;;  %v7435_v29 = vpack.c.bf16 %v1992_v45, %v1991_v47  ;;  %v7453_v5 = vpack.c.bf16 %v2026_v43, %v2025_v34  ;;  %v2830_v60 = vld [vmem:[#allocation9 + $0x20] sm:$0xff] }
 0x218   :  { %2114 = vmatprep.mubr.f32.mxu0 %v518_v41  ;;  %5923 = vmatpush3.bf16.msra.mxu1 %v7361_v35  ;;  %v7427_v40 = vpack.c.bf16 %v2022_v27, %v2021_v14  ;;  %v7429_v41 = vpack.c.bf16 %v2008_v37, %v2007_v36  ;;  %v663_v14 = vmul.f32 0.2, %v7256_v2  ;;  %v372_v36 = vmax.f32 %v7174_v28, %v371_v0 }
 0x219   :  { %2184 = vmatprep.mubr.f32.mxu1 %v7372_v48  ;;  %5893 = vmatprep.subr.bf16.mxu0 %v7364_v46 }
 0x21a   :  { %5925 = vmatprep.subr.bf16.mxu1 %v7368_v44  ;;  %v664_v37 = vmax.f32 %v7256_v2, %v663_v14 }
 0x21b   :  { %5895 = vmatpush3.bf16.msra.mxu0 %v7374_v53 }
 0x21c   :  { %5927 = vmatpush3.bf16.msra.mxu1 %v7377_v54  ;;  %5897 = vmatprep.subr.bf16.mxu0 %v7379_v55 }
 0x21d   :  { %5929 = vmatprep.subr.bf16.mxu1 %v7383_v59 }
 0x21f   :  { %5899 = vmatpush3.bf16.msra.mxu0 %v7387_v9 }
 0x220   :  { %5931 = vmatpush3.bf16.msra.mxu1 %v7391_v10  ;;  %5901 = vmatprep.subr.bf16.mxu0 %v7393_v13 }
 0x221   :  { %5933 = vmatprep.subr.bf16.mxu1 %v7396_v23 }
 0x223   :  { %5903 = vmatpush3.bf16.msra.mxu0 %v7399_v8 }
 0x224   :  { %5935 = vmatpush3.bf16.msra.mxu1 %v7403_v12  ;;  %5905 = vmatprep.subr.bf16.mxu0 %v7405_v16 }
 0x225   :  { %5937 = vmatprep.subr.bf16.mxu1 %v7408_v26 }
 0x227   :  { %5907 = vmatpush3.bf16.msra.mxu0 %v7411_v56 }
 0x228   :  { %5939 = vmatpush3.bf16.msra.mxu1 %v7415_v62  ;;  %5909 = vmatprep.subr.bf16.mxu0 %v7417_v63 }
 0x229   :  { %v4104_v57 = vpop.f32.mrb[10].mxu0  ;;  %5941 = vmatprep.subr.bf16.mxu1 %v7420_v20 }
 0x22a   :  { %v4105_v4 = vpop.f32.mrb[11].mxu0  ;;  %v4139_v6 = vpop.f32.mrb[10].mxu1 }
 0x22b   :  { %v4106_v22 = vadd.f32 %v4105_v4, %v4104_v57  ;;  %5911 = vmatpush3.bf16.msra.mxu0 %v7423_v33  ;;  %v4140_v24 = vpop.f32.mrb[11].mxu1 }
 0x22c   :  { %5943 = vmatpush3.bf16.msra.mxu1 %v7427_v40  ;;  %v4141_v31 = vadd.f32 %v4140_v24, %v4139_v6  ;;  %5913 = vmatprep.subr.bf16.mxu0 %v7429_v41 }
 0x22d   :  { %v1028_v25 = vadd.f32 %v4106_v22, %v7167_v11  ;;  %5945 = vmatprep.subr.bf16.mxu1 %v7432_v58 }
 0x22f   :  { %v1098_v50 = vadd.f32 %v4141_v31, %v1028_v25  ;;  %5915 = vmatpush3.bf16.msra.mxu0 %v7435_v29 }
 0x230   :  { %5947 = vmatpush3.bf16.msra.mxu1 %v7439_v3  ;;  %5917 = vmatprep.subr.bf16.mxu0 %v7441_v7 }
 0x231   :  { %5949 = vmatprep.subr.bf16.mxu1 %v7445_v30  ;;  %v1101_v27 = vmul.f32 0.2, %v1098_v50 }
 0x233   :  { %5919 = vmatpush3.bf16.msra.mxu0 %v7448_v52  ;;  %v1102_v42 = vmax.f32 %v1098_v50, %v1101_v27 }
 0x234   :  { %5951 = vmatpush3.bf16.msra.mxu1 %v7453_v5  ;;  %5953 = vmatprep.subr.bf16.mxu0 %v7346_v39 }
 0x235   :  { %5985 = vmatprep.subr.bf16.mxu1 %v7349_v51 }
 0x236   :  { %2115 = vmatmul.mubr.f32.vlgmr.msra.gmra.mrb[24].mxu0 %v372_v36 }
 0x237   :  { %2185 = vmatmul.mubr.f32.vlgmr.msra.gmra.mrb[24].mxu1 %v664_v37  ;;  %5955 = vmatpush3.bf16.msra.mxu0 %v7357_v19 }
 0x238   :  { %2254 = vmatprep.mubr.f32.mxu0 %v7372_v48  ;;  %5987 = vmatpush3.bf16.msra.mxu1 %v7361_v35 }
 0x239   :  { %2324 = vmatprep.mubr.f32.mxu1 %v1102_v42  ;;  %5957 = vmatprep.subr.bf16.mxu0 %v7364_v46 }
 0x23a   :  { %5989 = vmatprep.subr.bf16.mxu1 %v7368_v44 }
 0x23b   :  { %5959 = vmatpush3.bf16.msra.mxu0 %v7374_v53 }
 0x23c   :  { %5991 = vmatpush3.bf16.msra.mxu1 %v7377_v54  ;;  %5961 = vmatprep.subr.bf16.mxu0 %v7379_v55 }
 0x23d   :  { %5993 = vmatprep.subr.bf16.mxu1 %v7383_v59 }
 0x23f   :  { %5963 = vmatpush3.bf16.msra.mxu0 %v7387_v9 }
 0x240   :  { %5995 = vmatpush3.bf16.msra.mxu1 %v7391_v10  ;;  %5965 = vmatprep.subr.bf16.mxu0 %v7393_v13 }
 0x241   :  { %5997 = vmatprep.subr.bf16.mxu1 %v7396_v23 }
 0x243   :  { %5967 = vmatpush3.bf16.msra.mxu0 %v7399_v8 }
 0x244   :  { %5999 = vmatpush3.bf16.msra.mxu1 %v7403_v12  ;;  %5969 = vmatprep.subr.bf16.mxu0 %v7405_v16 }
 0x245   :  { %6001 = vmatprep.subr.bf16.mxu1 %v7408_v26 }
 0x247   :  { %5971 = vmatpush3.bf16.msra.mxu0 %v7411_v56 }
 0x248   :  { %6003 = vmatpush3.bf16.msra.mxu1 %v7415_v62  ;;  %5973 = vmatprep.subr.bf16.mxu0 %v7417_v63 }
 0x249   :  { %v4174_v28 = vpop.f32.mrb[12].mxu0  ;;  %6005 = vmatprep.subr.bf16.mxu1 %v7420_v20 }
 0x24a   :  { %v4175_v2 = vpop.f32.mrb[13].mxu0  ;;  %v4209_v48 = vpop.f32.mrb[12].mxu1 }
 0x24b   :  { %v4176_v32 = vadd.f32 %v4175_v2, %v4174_v28  ;;  %5975 = vmatpush3.bf16.msra.mxu0 %v7423_v33  ;;  %v4210_v47 = vpop.f32.mrb[13].mxu1  ;;  %v2827_v28 = vld [vmem:[#allocation9 + $0x8] sm:$0xff] }
 0x24c   :  { %6007 = vmatpush3.bf16.msra.mxu1 %v7427_v40  ;;  %v4211_v45 = vadd.f32 %v4210_v47, %v4209_v48  ;;  %5977 = vmatprep.subr.bf16.mxu0 %v7429_v41  ;;  %v2844_v48 = vld [vmem:[#allocation9 + $0x90] sm:$0xff] }
 0x24d   :  { %v1174_v49 = vadd.f32 %v4176_v32, %v7167_v11  ;;  %6009 = vmatprep.subr.bf16.mxu1 %v7432_v58 }
 0x24f   :  { %v1244_v57 = vadd.f32 %v4211_v45, %v1174_v49  ;;  %5979 = vmatpush3.bf16.msra.mxu0 %v7435_v29  ;;  %v2828_v45 = vld [vmem:[#allocation9 + $0x10] sm:$0xff]  ;;  %v2829_v49 = vld [vmem:[#allocation9 + $0x18] sm:$0xff] }
 0x250   :  { %6011 = vmatpush3.bf16.msra.mxu1 %v7439_v3  ;;  %5981 = vmatprep.subr.bf16.mxu0 %v7441_v7 }
 0x251   :  { %6013 = vmatprep.subr.bf16.mxu1 %v7445_v30  ;;  %v1247_v31 = vmul.f32 0.2, %v1244_v57 }
 0x253   :  { %5983 = vmatpush3.bf16.msra.mxu0 %v7448_v52  ;;  %v1248_v25 = vmax.f32 %v1244_v57, %v1247_v31  ;;  %v2847_v57 = vld [vmem:[#allocation9 + $0xa8] sm:$0xff]  ;;  %v2834_v31 = vld [vmem:[#allocation9 + $0x40] sm:$0xff] }
 0x254   :  { %6015 = vmatpush3.bf16.msra.mxu1 %v7453_v5  ;;  %6017 = vmatprep.subr.bf16.mxu0 %v7346_v39 }
 0x255   :  { %6049 = vmatprep.subr.bf16.mxu1 %v7349_v51 }
 0x256   :  { %2255 = vmatmul.mubr.f32.vlgmr.msra.gmra.mrb[26].mxu0 %v664_v37 }
 0x257   :  { %2325 = vmatmul.mubr.f32.vlgmr.msra.gmra.mrb[26].mxu1 %v956_v61  ;;  %6019 = vmatpush3.bf16.msra.mxu0 %v7357_v19 }
 0x258   :  { %2394 = vmatprep.mubr.f32.mxu0 %v1102_v42  ;;  %6051 = vmatpush3.bf16.msra.mxu1 %v7361_v35 }
 0x259   :  { %6021 = vmatprep.subr.bf16.mxu0 %v7364_v46  ;;  %6053 = vmatprep.subr.bf16.mxu1 %v7368_v44 }
 0x25b   :  { %6023 = vmatpush3.bf16.msra.mxu0 %v7374_v53 }
 0x25c   :  { %6055 = vmatpush3.bf16.msra.mxu1 %v7377_v54  ;;  %6025 = vmatprep.subr.bf16.mxu0 %v7379_v55 }
 0x25d   :  { %6057 = vmatprep.subr.bf16.mxu1 %v7383_v59 }
 0x25f   :  { %6027 = vmatpush3.bf16.msra.mxu0 %v7387_v9 }
 0x260   :  { %6059 = vmatpush3.bf16.msra.mxu1 %v7391_v10  ;;  %6029 = vmatprep.subr.bf16.mxu0 %v7393_v13 }
 0x261   :  { %6061 = vmatprep.subr.bf16.mxu1 %v7396_v23 }
 0x263   :  { %6031 = vmatpush3.bf16.msra.mxu0 %v7399_v8 }
 0x264   :  { %6063 = vmatpush3.bf16.msra.mxu1 %v7403_v12  ;;  %6033 = vmatprep.subr.bf16.mxu0 %v7405_v16 }
 0x265   :  { %6065 = vmatprep.subr.bf16.mxu1 %v7408_v26 }
 0x267   :  { %6035 = vmatpush3.bf16.msra.mxu0 %v7411_v56 }
 0x268   :  { %6067 = vmatpush3.bf16.msra.mxu1 %v7415_v62  ;;  %6037 = vmatprep.subr.bf16.mxu0 %v7417_v63 }
 0x269   :  { %v4244_v38 = vpop.f32.mrb[14].mxu0  ;;  %6069 = vmatprep.subr.bf16.mxu1 %v7420_v20 }
 0x26a   :  { %v4245_v1 = vpop.f32.mrb[15].mxu0  ;;  %v4279_v4 = vpop.f32.mrb[14].mxu1 }
 0x26b   :  { %v4246_v6 = vadd.f32 %v4245_v1, %v4244_v38  ;;  %6039 = vmatpush3.bf16.msra.mxu0 %v7423_v33  ;;  %v4280_v15 = vpop.f32.mrb[15].mxu1  ;;  %v2848_v38 = vld [vmem:[#allocation9 + $0xb0] sm:$0xff]  ;;  %v2849_v1 = vld [vmem:[#allocation9 + $0xb8] sm:$0xff] }
 0x26c   :  { %6071 = vmatpush3.bf16.msra.mxu1 %v7427_v40  ;;  %v4281_v18 = vadd.f32 %v4280_v15, %v4279_v4  ;;  %6041 = vmatprep.subr.bf16.mxu0 %v7429_v41  ;;  %v2832_v15 = vld [vmem:[#allocation9 + $0x30] sm:$0xff] }
 0x26d   :  { %v1320_v22 = vadd.f32 %v4246_v6, %v7167_v11  ;;  %6073 = vmatprep.subr.bf16.mxu1 %v7432_v58  ;;  %v6220_v6 = vpack.c.bf16 %v2849_v1, %v2848_v38  ;;  %v2878_v38 = vld [vmem:[#allocation9 + $0x1a0] sm:$0xff]  ;;  %v2879_v1 = vld [vmem:[#allocation9 + $0x1a8] sm:$0xff] }
 0x26f   :  { %v1390_v24 = vadd.f32 %v4281_v18, %v1320_v22  ;;  %6043 = vmatpush3.bf16.msra.mxu0 %v7435_v29  ;;  %v2850_v18 = vld [vmem:[#allocation9 + $0xc0] sm:$0xff]  ;;  %v2851_v22 = vld [vmem:[#allocation9 + $0xc8] sm:$0xff] }
 0x270   :  { %6075 = vmatpush3.bf16.msra.mxu1 %v7439_v3  ;;  %6045 = vmatprep.subr.bf16.mxu0 %v7441_v7 }
 0x271   :  { %v1393_v17 = vmul.f32 0.2, %v1390_v24  ;;  %6077 = vmatprep.subr.bf16.mxu1 %v7445_v30 }
 0x273   :  { %6047 = vmatpush3.bf16.msra.mxu0 %v7448_v52  ;;  %v1394_v21 = vmax.f32 %v1390_v24, %v1393_v17  ;;  %v6224_v24 = vpack.c.bf16 %v2851_v22, %v2850_v18  ;;  %v2852_v17 = vld [vmem:[#allocation9 + $0xd0] sm:$0xff]  ;;  %v7596_v22 = vld [vmem:[#allocation7] ss:$0 sm:$0xff] }
 0x274   :  { %6079 = vmatpush3.bf16.msra.mxu1 %v7453_v5  ;;  %6081 = vmatprep.subr.bf16.mxu0 %v7346_v39 }
 0x275   :  { %2464 = vmatprep.mubr.f32.mxu1 %v1394_v21  ;;  %6113 = vmatprep.subr.bf16.mxu1 %v7349_v51 }
 0x276   :  { %2395 = vmatmul.mubr.f32.vlgmr.msra.gmra.mrb[28].mxu0 %v956_v61  ;;  %v2831_v61 = vld [vmem:[#allocation9 + $0x28] sm:$0xff] }
 0x277   :  { %2465 = vmatmul.mubr.f32.vlgmr.msra.gmra.mrb[28].mxu1 %v1248_v25  ;;  %6083 = vmatpush3.bf16.msra.mxu0 %v7357_v19  ;;  %v6218_v4 = vpack.c.bf16 %v2831_v61, %v2830_v60  ;;  %v2861_v60 = vld [vmem:[#allocation9 + $0x118] sm:$0xff] }
 0x278   :  { %2534 = vmatprep.mubr.f32.mxu0 %v1394_v21  ;;  %6085 = vmatprep.subr.bf16.mxu0 %v7364_v46  ;;  %v2853_v21 = vld [vmem:[#allocation9 + $0xd8] sm:$0xff] }
 0x279   :  { %6115 = vmatpush3.bf16.msra.mxu1 %v7361_v35 }
 0x27a   :  { %6117 = vmatprep.subr.bf16.mxu1 %v7368_v44 }
 0x27b   :  { %6087 = vmatpush3.bf16.msra.mxu0 %v7374_v53 }
 0x27c   :  { %6089 = vmatprep.subr.bf16.mxu0 %v7379_v55 }
 0x27d   :  { %6119 = vmatpush3.bf16.msra.mxu1 %v7377_v54 }
 0x27e   :  { %6121 = vmatprep.subr.bf16.mxu1 %v7383_v59 }
 0x27f   :  { %6091 = vmatpush3.bf16.msra.mxu0 %v7387_v9 }
 0x280   :  { %6093 = vmatprep.subr.bf16.mxu0 %v7393_v13 }
 0x281   :  { %6123 = vmatpush3.bf16.msra.mxu1 %v7391_v10 }
 0x282   :  { %6125 = vmatprep.subr.bf16.mxu1 %v7396_v23 }
 0x283   :  { %6095 = vmatpush3.bf16.msra.mxu0 %v7399_v8 }
 0x284   :  { %6097 = vmatprep.subr.bf16.mxu0 %v7405_v16 }
 0x285   :  { %6127 = vmatpush3.bf16.msra.mxu1 %v7403_v12 }
 0x286   :  { %6129 = vmatprep.subr.bf16.mxu1 %v7408_v26 }
 0x287   :  { %6099 = vmatpush3.bf16.msra.mxu0 %v7411_v56 }
 0x288   :  { %6101 = vmatprep.subr.bf16.mxu0 %v7417_v63 }
 0x289   :  { %v4314_v34 = vpop.f32.mrb[16].mxu0  ;;  %6131 = vmatpush3.bf16.msra.mxu1 %v7415_v62 }
 0x28a   :  { %v4315_v43 = vpop.f32.mrb[17].mxu0  ;;  %v4349_v50 = vpop.f32.mrb[16].mxu1  ;;  %6133 = vmatprep.subr.bf16.mxu1 %v7420_v20 }
 0x28b   :  { %v4316_v0 = vadd.f32 %v4315_v43, %v4314_v34  ;;  %6103 = vmatpush3.bf16.msra.mxu0 %v7423_v33  ;;  %v4350_v14 = vpop.f32.mrb[17].mxu1  ;;  %v2836_v34 = vld [vmem:[#allocation9 + $0x50] sm:$0xff]  ;;  %v2854_v43 = vld [vmem:[#allocation9 + $0xe0] sm:$0xff] }
 0x28c   :  { %v4351_v27 = vadd.f32 %v4350_v14, %v4349_v50  ;;  %6105 = vmatprep.subr.bf16.mxu0 %v7429_v41  ;;  %v2855_v50 = vld [vmem:[#allocation9 + $0xe8] sm:$0xff]  ;;  %v2838_v14 = vld [vmem:[#allocation9 + $0x60] sm:$0xff] }
 0x28d   :  { %v1466_v36 = vadd.f32 %v4316_v0, %v7167_v11  ;;  %6135 = vmatpush3.bf16.msra.mxu1 %v7427_v40  ;;  %v6232_v0 = vpack.c.bf16 %v2855_v50, %v2854_v43  ;;  %v2865_v43 = vld [vmem:[#allocation9 + $0x138] sm:$0xff] }
 0x28e   :  { %6137 = vmatprep.subr.bf16.mxu1 %v7432_v58 }
 0x28f   :  { %v1536_v37 = vadd.f32 %v4351_v27, %v1466_v36  ;;  %6107 = vmatpush3.bf16.msra.mxu0 %v7435_v29  ;;  %v2856_v36 = vld [vmem:[#allocation9 + $0xf0] sm:$0xff] }
 0x290   :  { %6109 = vmatprep.subr.bf16.mxu0 %v7441_v7 }
 0x291   :  { %6139 = vmatpush3.bf16.msra.mxu1 %v7439_v3 }
 0x292   :  { %6141 = vmatprep.subr.bf16.mxu1 %v7445_v30 }
 0x293   :  { %6111 = vmatpush3.bf16.msra.mxu0 %v7448_v52 }
 0x294   :  { %6145 = vmatprep.subr.bf16.mxu0 %v7346_v39 }
 0x295   :  { %6143 = vmatpush3.bf16.msra.mxu1 %v7453_v5 }
 0x296   :  { %2535 = vmatmul.mubr.f32.vlgmr.msra.gmra.mrb[30].mxu0 %v1248_v25  ;;  %6177 = vmatprep.subr.bf16.mxu1 %v7349_v51  ;;  %v6228_v25 = vpack.c.bf16 %v2853_v21, %v2852_v17  ;;  %v2880_v21 = vld [vmem:[#allocation9 + $0x1b0] sm:$0xff] }
 0x297   :  { %6147 = vmatpush3.bf16.msra.mxu0 %v7357_v19 }
 0x298   :  { %6149 = vmatprep.subr.bf16.mxu0 %v7364_v46 }
 0x29b   :  { %6151 = vmatpush3.bf16.msra.mxu0 %v7374_v53 }
 0x29c   :  { %6153 = vmatprep.subr.bf16.mxu0 %v7379_v55 }
 0x29f   :  { %6155 = vmatpush3.bf16.msra.mxu0 %v7387_v9 }
 0x2a0   :  { %6157 = vmatprep.subr.bf16.mxu0 %v7393_v13  ;;  %v2842_v13 = vld [vmem:[#allocation9 + $0x80] sm:$0xff] }
 0x2a3   :  { %6159 = vmatpush3.bf16.msra.mxu0 %v7399_v8  ;;  %v2843_v8 = vld [vmem:[#allocation9 + $0x88] sm:$0xff] }
 0x2a4   :  { %6161 = vmatprep.subr.bf16.mxu0 %v7405_v16  ;;  %v1539_v16 = vmul.f32 0.2, %v1536_v37 }
 0x2a6   :  { %v1540_v47 = vmax.f32 %v1536_v37, %v1539_v16  ;;  %v2857_v37 = vld [vmem:[#allocation9 + $0xf8] sm:$0xff] }
 0x2a7   :  { %6163 = vmatpush3.bf16.msra.mxu0 %v7411_v56  ;;  %v6208_v56 = vpack.c.bf16 %v2843_v8, %v2842_v13 }
 0x2a8   :  { %6165 = vmatprep.subr.bf16.mxu0 %v7417_v63  ;;  %v2826_v63 = vld [vmem:[#allocation9] sm:$0xff] }
 0x2a9   :  { %v4384_v39 = vpop.f32.mrb[18].mxu0 }
 0x2aa   :  { %v4385_v51 = vpop.f32.mrb[19].mxu0  ;;  %v4419_v19 = vpop.f32.mrb[18].mxu1 }
 0x2ab   :  { %v4386_v46 = vadd.f32 %v4385_v51, %v4384_v39  ;;  %6167 = vmatpush3.bf16.msra.mxu0 %v7423_v33  ;;  %v4420_v53 = vpop.f32.mrb[19].mxu1  ;;  %v2845_v33 = vld [vmem:[#allocation9 + $0x98] sm:$0xff] }
 0x2ac   :  { %v4421_v55 = vadd.f32 %v4420_v53, %v4419_v19  ;;  %6169 = vmatprep.subr.bf16.mxu0 %v7429_v41  ;;  %v6210_v41 = vpack.c.bf16 %v2827_v28, %v2826_v63  ;;  %v2840_v53 = vld [vmem:[#allocation9 + $0x70] sm:$0xff] }
 0x2ad   :  { %v1612_v9 = vadd.f32 %v4386_v46, %v7167_v11  ;;  %v6212_v11 = vpack.c.bf16 %v2845_v33, %v2844_v48  ;;  %v2874_v48 = vld [vmem:[#allocation9 + $0x180] sm:$0xff]  ;;  %v2875_v33 = vld [vmem:[#allocation9 + $0x188] sm:$0xff] }
 0x2af   :  { %v1682_v42 = vadd.f32 %v4421_v55, %v1612_v9  ;;  %6171 = vmatpush3.bf16.msra.mxu0 %v7435_v29  ;;  %v2846_v29 = vld [vmem:[#allocation9 + $0xa0] sm:$0xff]  ;;  %v2841_v55 = vld [vmem:[#allocation9 + $0x78] sm:$0xff] }
 0x2b0   :  { %6173 = vmatprep.subr.bf16.mxu0 %v7441_v7  ;;  %v6214_v7 = vpack.c.bf16 %v2829_v49, %v2828_v45  ;;  %v6396_v9 = vld [vmem:[#allocation4] ss:$0 sm:$0xff]  ;;  %v2876_v45 = vld [vmem:[#allocation9 + $0x190] sm:$0xff] }
 0x2b1   :  { %v1685_v2 = vmul.f32 0.2, %v1682_v42  ;;  %v2877_v49 = vld [vmem:[#allocation9 + $0x198] sm:$0xff] }
 0x2b3   :  { %6175 = vmatpush3.bf16.msra.mxu0 %v7448_v52  ;;  %v1686_v32 = vmax.f32 %v1682_v42, %v1685_v2  ;;  %v6216_v52 = vpack.c.bf16 %v2847_v57, %v2846_v29  ;;  %v6238_v42 = vpack.c.bf16 %v2841_v55, %v2840_v53  ;;  %v2887_v55 = vld [vmem:[#allocation9 + $0x1e8] sm:$0xff] }
 0x2b4   :  { %6209 = vmatprep.subr.bf16.mxu0 %v6208_v56 }
 0x2b5   :  { %2604 = vmatprep.mubr.f32.mxu1 %v1686_v32  ;;  %2674 = vmatprep.mubr.f32.mxu0 %v1686_v32  ;;  %v6240_v32 = vpack.c.bf16 %v2875_v33, %v2874_v48  ;;  %v6593_v48 = vmov 0.0  }
 0x2b6   :  { %2605 = vmatmul.mubr.f32.vlgmr.msra.gmra.mrb[30].mxu1 %v1540_v47  ;;  %2675 = vmatmul.mubr.f32.vlgmr.msra.gmra.mrb[32].mxu0 %v1540_v47  ;;  %v2858_v47 = vld [vmem:[#allocation9 + $0x100] sm:$0xff] }
 0x2b7   :  { %6179 = vmatpush3.bf16.msra.mxu1 %v7361_v35  ;;  %6211 = vmatpush3.bf16.msra.mxu0 %v6210_v41  ;;  %v2833_v35 = vld [vmem:[#allocation9 + $0x38] sm:$0xff] }
 0x2b8   :  { %6181 = vmatprep.subr.bf16.mxu1 %v7368_v44  ;;  %6213 = vmatprep.subr.bf16.mxu0 %v6212_v11  ;;  %v6222_v44 = vpack.c.bf16 %v2833_v35, %v2832_v15  ;;  %v2859_v11 = vld [vmem:[#allocation9 + $0x108] sm:$0xff]  ;;  %v2862_v15 = vld [vmem:[#allocation9 + $0x120] sm:$0xff] }
 0x2b9   :  { %v6242_v29 = vpack.c.bf16 %v2859_v11, %v2858_v47  ;;  %v2863_v35 = vld [vmem:[#allocation9 + $0x128] sm:$0xff] }
 0x2bb   :  { %6183 = vmatpush3.bf16.msra.mxu1 %v7377_v54  ;;  %6215 = vmatpush3.bf16.msra.mxu0 %v6214_v7  ;;  %v2835_v54 = vld [vmem:[#allocation9 + $0x48] sm:$0xff]  ;;  %v6244_v7 = vpack.c.bf16 %v2877_v49, %v2876_v45 }
 0x2bc   :  { %6185 = vmatprep.subr.bf16.mxu1 %v7383_v59  ;;  %6217 = vmatprep.subr.bf16.mxu0 %v6216_v52  ;;  %v6226_v59 = vpack.c.bf16 %v2835_v54, %v2834_v31  ;;  %v2860_v52 = vld [vmem:[#allocation9 + $0x110] sm:$0xff] }
 0x2bd   :  { %v6246_v61 = vpack.c.bf16 %v2861_v60, %v2860_v52 }
 0x2bf   :  { %6187 = vmatpush3.bf16.msra.mxu1 %v7391_v10  ;;  %6219 = vmatpush3.bf16.msra.mxu0 %v6218_v4  ;;  %v2837_v10 = vld [vmem:[#allocation9 + $0x58] sm:$0xff] }
 0x2c0   :  { %6189 = vmatprep.subr.bf16.mxu1 %v7396_v23  ;;  %6221 = vmatprep.subr.bf16.mxu0 %v6220_v6  ;;  %v6230_v23 = vpack.c.bf16 %v2837_v10, %v2836_v34  ;;  %v6248_v6 = vpack.c.bf16 %v2879_v1, %v2878_v38  ;;  %v2864_v10 = vld [vmem:[#allocation9 + $0x130] sm:$0xff] }
 0x2c1   :  { %v6254_v50 = vpack.c.bf16 %v2865_v43, %v2864_v10 }
 0x2c3   :  { %6191 = vmatpush3.bf16.msra.mxu1 %v7403_v12  ;;  %6223 = vmatpush3.bf16.msra.mxu0 %v6222_v44  ;;  %v2839_v12 = vld [vmem:[#allocation9 + $0x68] sm:$0xff] }
 0x2c4   :  { %6193 = vmatprep.subr.bf16.mxu1 %v7408_v26  ;;  %6225 = vmatprep.subr.bf16.mxu0 %v6224_v24  ;;  %v6234_v46 = vpack.c.bf16 %v2839_v12, %v2838_v14  ;;  %v6250_v24 = vpack.c.bf16 %v2863_v35, %v2862_v15  ;;  %v2883_v14 = vld [vmem:[#allocation9 + $0x1c8] sm:$0xff] }
 0x2c7   :  { %6195 = vmatpush3.bf16.msra.mxu1 %v7415_v62  ;;  %6227 = vmatpush3.bf16.msra.mxu0 %v6226_v59  ;;  %v2881_v59 = vld [vmem:[#allocation9 + $0x1b8] sm:$0xff] }
 0x2c8   :  { %6197 = vmatprep.subr.bf16.mxu1 %v7420_v20  ;;  %6229 = vmatprep.subr.bf16.mxu0 %v6228_v25  ;;  %v6236_v20 = vpack.c.bf16 %v2857_v37, %v2856_v36  ;;  %v6252_v34 = vpack.c.bf16 %v2881_v59, %v2880_v21  ;;  %v2867_v36 = vld [vmem:[#allocation9 + $0x148] sm:$0xff] }
 0x2c9   :  { %v4454_v27 = vpop.f32.mrb[20].mxu0 }
 0x2ca   :  { %v4455_v26 = vpop.f32.mrb[21].mxu0  ;;  %v4489_v39 = vpop.f32.mrb[20].mxu1 }
 0x2cb   :  { %v4456_v51 = vadd.f32 %v4455_v26, %v4454_v27  ;;  %v4490_v19 = vpop.f32.mrb[21].mxu1  ;;  %6199 = vmatpush3.bf16.msra.mxu1 %v7427_v40  ;;  %6231 = vmatpush3.bf16.msra.mxu0 %v6230_v23  ;;  %v2866_v27 = vld [vmem:[#allocation9 + $0x140] sm:$0xff]  ;;  %v151_v26 = vlaneseq }
 0x2cc   :  { %v4491_v62 = vadd.f32 %v4490_v19, %v4489_v39  ;;  %6201 = vmatprep.subr.bf16.mxu1 %v7432_v58  ;;  %6233 = vmatprep.subr.bf16.mxu0 %v6232_v0  ;;  %v2882_v0 = vld [vmem:[#allocation9 + $0x1c0] sm:$0xff]  ;;  %v6258_v37 = vpack.c.bf16 %v2867_v36, %v2866_v27  ;;  %v2884_v39 = vld [vmem:[#allocation9 + $0x1d0] sm:$0xff] }
 0x2cd   :  { %v1758_v13 = vadd.f32 %v6396_v9, %v4456_v51  ;;  %v6256_v12 = vpack.c.bf16 %v2883_v14, %v2882_v0  ;;  %v2885_v51 = vld [vmem:[#allocation9 + $0x1d8] sm:$0xff]  ;;  %v2891_v0 = vld [vmem:[#allocation9 + $0x208] sm:$0xff] }
 0x2ce   :  { %v6260_v19 = vpack.c.bf16 %v2885_v51, %v2884_v39  ;;  %v2892_v51 = vld [vmem:[#allocation9 + $0x210] sm:$0xff] }
 0x2cf   :  { %v1828_v8 = vadd.f32 %v4491_v62, %v1758_v13  ;;  %6203 = vmatpush3.bf16.msra.mxu1 %v7439_v3  ;;  %6235 = vmatpush3.bf16.msra.mxu0 %v6234_v46  ;;  %v2868_v46 = vld [vmem:[#allocation9 + $0x150] sm:$0xff]  ;;  %v2869_v62 = vld [vmem:[#allocation9 + $0x158] sm:$0xff]  ;;  %v2871_v13 = vld [vmem:[#allocation9 + $0x168] sm:$0xff] }
 0x2d0   :  { %6205 = vmatprep.subr.bf16.mxu1 %v7445_v30  ;;  %6237 = vmatprep.subr.bf16.mxu0 %v6236_v20  ;;  %v2886_v20 = vld [vmem:[#allocation9 + $0x1e0] sm:$0xff]  ;;  %v6262_v53 = vpack.c.bf16 %v2869_v62, %v2868_v46 }
 0x2d1   :  { %v1831_v3 = vmul.f32 0.2, %v1828_v8 }
 0x2d3   :  { %6207 = vmatpush3.bf16.msra.mxu1 %v7453_v5  ;;  %6239 = vmatpush3.bf16.msra.mxu0 %v6238_v42  ;;  %v1832_v57 = vmax.f32 %v1828_v8, %v1831_v3  ;;  %v6264_v8 = vpack.c.bf16 %v2887_v55, %v2886_v20  ;;  %v2888_v42 = vld [vmem:[#allocation9 + $0x1f0] sm:$0xff]  ;;  %v2894_v20 = vld [vmem:[#allocation9 + $0x220] sm:$0xff] }
 0x2d4   :  { %6241 = vmatprep.subr.bf16.mxu1 %v6240_v32 }
 0x2e9   :  { %v4524_v40 = vpop.f32.mrb[22].mxu0 }
 0x2ea   :  { %v4525_v16 = vpop.f32.mrb[23].mxu0  ;;  %v4559_v58 = vpop.f32.mrb[22].mxu1 }
 0x2eb   :  { %v4526_v56 = vadd.f32 %v4525_v16, %v4524_v40  ;;  %v4560_v63 = vpop.f32.mrb[23].mxu1  ;;  %v2889_v40 = vld [vmem:[#allocation9 + $0x1f8] sm:$0xff]  ;;  %v7602_v16 = vshrl.u32 %v151_v26, 7 }
 0x2ec   :  { %v4561_v28 = vadd.f32 %v4560_v63, %v4559_v58  ;;  %v2872_v63 = vld [vmem:[#allocation9 + $0x170] sm:$0xff] }
 0x2ed   :  { %v1904_v2 = vadd.f32 %v6396_v9, %v4526_v56  ;;  %v2870_v9 = vld [vmem:[#allocation9 + $0x160] sm:$0xff]  ;;  %v6268_v56 = vpack.c.bf16 %v2889_v40, %v2888_v42  ;;  %vm153_vm0 = vcmp.lt.s32.totalorder %v7602_v16, 4 }
 0x2ee   :  { %v6266_v58 = vpack.c.bf16 %v2871_v13, %v2870_v9  ;;  %v7606_v33 = vsel %vm153_vm0, 1.0, %v6593_v48 }
 0x2ef   :  { %v1974_v41 = vadd.f32 %v4561_v28, %v1904_v2  ;;  %v2873_v28 = vld [vmem:[#allocation9 + $0x178] sm:$0xff] }
 0x2f0   :  { %v6270_v2 = vpack.c.bf16 %v2873_v28, %v2872_v63  ;;  %v2897_v63 = vld [vmem:[#allocation9 + $0x238] sm:$0xff] }
 0x2f1   :  { %v1977_v30 = vmul.f32 0.2, %v1974_v41 }
 0x2f3   :  { %v1978_v5 = vmax.f32 %v1974_v41, %v1977_v30  ;;  %v6594_v41 = vmov 0.0|0.0  }
 0x2f4   :  { %6272 = vmatprep.subr.bf16.mxu0 %v6594_v41 }
 0x2f5   :  { %2744 = vmatprep.mubr.f32.mxu1 %v1978_v5 }
 0x2f6   :  { %2745 = vmatmul.mubr.f32.vlgmr.msra.gmra.mrb[32].mxu1 %v1832_v57 }
 0x2f7   :  { %6243 = vmatpush3.bf16.msra.mxu1 %v6242_v29 }
 0x2f8   :  { %6245 = vmatprep.subr.bf16.mxu1 %v6244_v7 }
 0x2fb   :  { %6247 = vmatpush3.bf16.msra.mxu1 %v6246_v61 }
 0x2fc   :  { %6249 = vmatprep.subr.bf16.mxu1 %v6248_v6 }
 0x2ff   :  { %6251 = vmatpush3.bf16.msra.mxu1 %v6250_v24 }
 0x300   :  { %6253 = vmatprep.subr.bf16.mxu1 %v6252_v34 }
 0x303   :  { %6255 = vmatpush3.bf16.msra.mxu1 %v6254_v50  ;;  %v2890_v50 = vld [vmem:[#allocation9 + $0x200] sm:$0xff] }
 0x304   :  { %6257 = vmatprep.subr.bf16.mxu1 %v6256_v12 }
 0x307   :  { %6259 = vmatpush3.bf16.msra.mxu1 %v6258_v37  ;;  %v6273_v37 = vpack.c.bf16 %v2891_v0, %v2890_v50 }
 0x308   :  { %6261 = vmatprep.subr.bf16.mxu1 %v6260_v19  ;;  %v2893_v19 = vld [vmem:[#allocation9 + $0x218] sm:$0xff] }
 0x309   :  { %v4594_v4 = vpop.f32.mrb[24].mxu0  ;;  %v6276_v62 = vpack.c.bf16 %v2893_v19, %v2892_v51 }
 0x30a   :  { %v4629_v18 = vpop.f32.mrb[24].mxu1  ;;  %v4595_v44 = vpop.f32.mrb[25].mxu0 }
 0x30b   :  { %v4596_v31 = vadd.f32 %v4595_v44, %v4594_v4  ;;  %v4630_v54 = vpop.f32.mrb[25].mxu1  ;;  %6263 = vmatpush3.bf16.msra.mxu1 %v6262_v53  ;;  %v2895_v53 = vld [vmem:[#allocation9 + $0x228] sm:$0xff] }
 0x30c   :  { %v4631_v17 = vadd.f32 %v4630_v54, %v4629_v18  ;;  %6265 = vmatprep.subr.bf16.mxu1 %v6264_v8  ;;  %v6279_v9 = vpack.c.bf16 %v2895_v53, %v2894_v20 }
 0x30d   :  { %v2117_v25 = vadd.f32 %v4596_v31, %v7596_v22 }
 0x30f   :  { %v7599_v23 = vadd.f32 %v4631_v17, %v2117_v25  ;;  %6267 = vmatpush3.bf16.msra.mxu1 %v6266_v58 }
 0x310   :  { %6269 = vmatprep.subr.bf16.mxu1 %v6268_v56  ;;  %v2896_v56 = vld [vmem:[#allocation9 + $0x230] sm:$0xff] }
 0x311   :  { %v2750_v32 = vmul.f32 %v7606_v33, %v7599_v23 }
 0x313   :  { %6271 = vmatpush3.bf16.msra.mxu1 %v6270_v2  ;;  %v2785_v3 = vmul.f32 %v2750_v32, %v7599_v23  ;;  %v2755_v29 = vrot.slane %v2750_v32, 4  ;;  %v6282_v2 = vpack.c.bf16 %v2897_v63, %v2896_v56 }
 0x315   :  { %v2790_v11 = vrot.slane %v2785_v3, 4  ;;  %v2756_v61 = vadd.f32 %v2755_v29, %v2750_v32  ;;  %v2903_v29 = vld [vmem:[#allocation9 + $0x268] sm:$0xff] }
 0x317   :  { %v2791_v52 = vadd.f32 %v2790_v11, %v2785_v3  ;;  %v2757_v15 = vrot.slane %v2756_v61, 2  ;;  %v2898_v3 = vld [vmem:[#allocation9 + $0x240] sm:$0xff] }
 0x319   :  { %v2792_v1 = vrot.slane %v2791_v52, 2  ;;  %v2758_v54 = vadd.f32 %v2757_v15, %v2756_v61 }
 0x31b   :  { %v2793_v44 = vadd.f32 %v2792_v1, %v2791_v52  ;;  %v2759_v10 = vrot.slane %v2758_v54, 1  ;;  %v2905_v52 = vld [vmem:[#allocation9 + $0x278] sm:$0xff] }
 0x31d   :  { %v2794_v59 = vrot.slane %v2793_v44, 1  ;;  %v2760_v36 = vadd.f32 %v2759_v10, %v2758_v54 }
 0x31f   :  { %v2795_v14 = vadd.f32 %v2794_v59, %v2793_v44 }
 0x321   :  { %v2821_v46 = vsel %vm2820_vm1, %v2760_v36, %v2795_v14 }
 0x329   :  { %v4664_v47 = vpop.f32.mrb[26].mxu0 }
 0x32a   :  { %v4699_v30 = vpop.f32.mrb[26].mxu1  ;;  %v4665_v45 = vpop.f32.mrb[27].mxu0 }
 0x32b   :  { %v4666_v49 = vadd.f32 %v4665_v45, %v4664_v47  ;;  %v4700_v5 = vpop.f32.mrb[27].mxu1  ;;  %v2899_v47 = vld [vmem:[#allocation9 + $0x248] sm:$0xff]  ;;  %v2901_v45 = vld [vmem:[#allocation9 + $0x258] sm:$0xff] }
 0x32c   :  { %v4701_v57 = vadd.f32 %v4700_v5, %v4699_v30  ;;  %v6285_v11 = vpack.c.bf16 %v2899_v47, %v2898_v3  ;;  %v2900_v30 = vld [vmem:[#allocation9 + $0x250] sm:$0xff]  ;;  %v2902_v5 = vld [vmem:[#allocation9 + $0x260] sm:$0xff] }
 0x32d   :  { %v2257_v7 = vadd.f32 %v4666_v49, %v7596_v22  ;;  %v6288_v49 = vpack.c.bf16 %v2901_v45, %v2900_v30 }
 0x32f   :  { %v7613_v60 = vadd.f32 %v4701_v57, %v2257_v7  ;;  %v6291_v57 = vpack.c.bf16 %v2903_v29, %v2902_v5  ;;  %v2904_v7 = vld [vmem:[#allocation9 + $0x270] sm:$0xff] }
 0x330   :  { %v6294_v61 = vpack.c.bf16 %v2905_v52, %v2904_v7 }
 0x331   :  { %v2751_v38 = vmul.f32 %v7606_v33, %v7613_v60 }
 0x333   :  { %v2761_v4 = vrot.slane %v2751_v38, 4  ;;  %v2786_v6 = vmul.f32 %v2751_v38, %v7613_v60 }
 0x335   :  { %v2796_v35 = vrot.slane %v2786_v6, 4  ;;  %v2762_v18 = vadd.f32 %v2761_v4, %v2751_v38 }
 0x337   :  { %v2797_v24 = vadd.f32 %v2796_v35, %v2786_v6  ;;  %v2763_v31 = vrot.slane %v2762_v18, 2 }
 0x339   :  { %v2764_v17 = vadd.f32 %v2763_v31, %v2762_v18  ;;  %v2798_v21 = vrot.slane %v2797_v24, 2 }
 0x33b   :  { %v2765_v25 = vrot.slane %v2764_v17, 1  ;;  %v2799_v34 = vadd.f32 %v2798_v21, %v2797_v24 }
 0x33d   :  { %v2800_v43 = vrot.slane %v2799_v34, 1  ;;  %v2766_v12 = vadd.f32 %v2765_v25, %v2764_v17 }
 0x33f   :  { %v2801_v27 = vadd.f32 %v2800_v43, %v2799_v34 }
 0x341   :  { %v2822_v39 = vsel %vm2820_vm1, %v2766_v12, %v2801_v27 }
 0x342   :  { %2970 = vmatprep.mubr.f32.mxu0 %v2822_v39 }
 0x343   :  { %2971 = vmatmul.mubr.f32.vlgmr.msra.gmra.mrb[34].mxu0 %v2821_v46 }
 0x344   :  { %6274 = vmatpush3.bf16.msra.mxu0 %v6273_v37  ;;  %5106 = vmatprep.mubr.msk.f32.mxu0 %vm6595_vm2, %v6593_v48 }
 0x345   :  { %6275 = vmatprep.subr.bf16.mxu0 %v6594_v41 }
 0x348   :  { %6277 = vmatpush3.bf16.msra.mxu0 %v6276_v62 }
 0x349   :  { %v4734_v55 = vpop.f32.mrb[28].mxu0  ;;  %6278 = vmatprep.subr.bf16.mxu0 %v6594_v41 }
 0x34a   :  { %v4769_v13 = vpop.f32.mrb[28].mxu1  ;;  %v4735_v8 = vpop.f32.mrb[29].mxu0 }
 0x34b   :  { %v4736_v42 = vadd.f32 %v4735_v8, %v4734_v55  ;;  %v4770_v40 = vpop.f32.mrb[29].mxu1 }
 0x34c   :  { %v4771_v58 = vadd.f32 %v4770_v40, %v4769_v13  ;;  %6280 = vmatpush3.bf16.msra.mxu0 %v6279_v9 }
 0x34d   :  { %v2397_v28 = vadd.f32 %v4736_v42, %v7596_v22  ;;  %6281 = vmatprep.subr.bf16.mxu0 %v6594_v41 }
 0x34f   :  { %v7624_v32 = vadd.f32 %v4771_v58, %v2397_v28 }
 0x350   :  { %6283 = vmatpush3.bf16.msra.mxu0 %v6282_v2 }
 0x351   :  { %6284 = vmatprep.subr.bf16.mxu0 %v6594_v41  ;;  %v2752_v6 = vmul.f32 %v7606_v33, %v7624_v32 }
 0x353   :  { %v2787_v15 = vmul.f32 %v2752_v6, %v7624_v32  ;;  %v2767_v24 = vrot.slane %v2752_v6, 4 }
 0x354   :  { %6286 = vmatpush3.bf16.msra.mxu0 %v6285_v11 }
 0x355   :  { %6287 = vmatprep.subr.bf16.mxu0 %v6594_v41  ;;  %v2802_v35 = vrot.slane %v2787_v15, 4  ;;  %v2768_v10 = vadd.f32 %v2767_v24, %v2752_v6  ;;  %v3154_v24 = vld [vmem:[%s7912_s6 + $0x8] sm:$0xff] }
 0x357   :  { %v2803_v25 = vadd.f32 %v2802_v35, %v2787_v15  ;;  %v2769_v12 = vrot.slane %v2768_v10, 2 }
 0x358   :  { %6289 = vmatpush3.bf16.msra.mxu0 %v6288_v49 }
 0x359   :  { %6290 = vmatprep.subr.bf16.mxu0 %v6594_v41  ;;  %v2804_v50 = vrot.slane %v2803_v25, 2  ;;  %v2770_v19 = vadd.f32 %v2769_v12, %v2768_v10  ;;  %v3160_v10 = vld [vmem:[%s7912_s6 + $0x40] sm:$0xff] }
 0x35a   :  { %v3387_v12 = vld [vmem:[%s7915_s9 + $0x100] sm:$0xff] }
 0x35b   :  { %v2805_v37 = vadd.f32 %v2804_v50, %v2803_v25  ;;  %v2771_v9 = vrot.slane %v2770_v19, 1  ;;  %v3156_v25 = vld [vmem:[%s7912_s6 + $0x18] sm:$0xff]  ;;  %v3403_v50 = vld [vmem:[%s7915_s9 + $0x180] sm:$0xff] }
 0x35c   :  { %6292 = vmatpush3.bf16.msra.mxu0 %v6291_v57 }
 0x35d   :  { %6293 = vmatprep.subr.bf16.mxu0 %v6594_v41  ;;  %v2806_v20 = vrot.slane %v2805_v37, 1  ;;  %v2772_v58 = vadd.f32 %v2771_v9, %v2770_v19  ;;  %v3389_v19 = vld [vmem:[%s7915_s9 + $0x110] sm:$0xff]  ;;  %v3391_v9 = vld [vmem:[%s7915_s9 + $0x120] sm:$0xff] }
 0x35f   :  { %v2807_v8 = vadd.f32 %v2806_v20, %v2805_v37  ;;  %v3405_v37 = vld [vmem:[%s7915_s9 + $0x190] sm:$0xff]  ;;  %v3407_v20 = vld [vmem:[%s7915_s9 + $0x1a0] sm:$0xff] }
 0x360   :  { %6295 = vmatpush3.bf16.msra.mxu0 %v6294_v61 }
 0x361   :  { %v2823_v63 = vsel %vm2820_vm1, %v2772_v58, %v2807_v8 }
 0x369   :  { %v4804_v38 = vpop.f32.mrb[30].mxu0 }
 0x36a   :  { %v4805_v1 = vpop.f32.mrb[31].mxu0 }
 0x36b   :  { %v4806_v4 = vadd.f32 %v4805_v1, %v4804_v38 }
 0x36d   :  { %v2537_v17 = vadd.f32 %v4806_v4, %v7596_v22 }
 0x389   :  { %v4839_v18 = vpop.f32.mrb[30].mxu1  ;;  %v4874_v44 = vpop.f32.mrb[32].mxu0 }
 0x38a   :  { %v4840_v31 = vpop.f32.mrb[31].mxu1  ;;  %v4875_v54 = vpop.f32.mrb[33].mxu0 }
 0x38b   :  { %v4841_v21 = vadd.f32 %v4840_v31, %v4839_v18  ;;  %v4876_v59 = vadd.f32 %v4875_v54, %v4874_v44  ;;  %v3158_v31 = vld [vmem:[%s7912_s6 + $0x30] sm:$0xff] }
 0x38c   :  { %v6296_v54 = vpack.c.bf16 %v3158_v31, %v3154_v24  ;;  %v3143_v24 = vld [vmem:[#allocation12] sm:$0x1] }
 0x38d   :  { %v7636_v34 = vadd.f32 %v4841_v21, %v2537_v17  ;;  %v2677_v3 = vadd.f32 %v4876_v59, %v7596_v22  ;;  %v3153_v17 = vld [vmem:[%s7912_s6] sm:$0xff]  ;;  %v3157_v21 = vld [vmem:[%s7912_s6 + $0x28] sm:$0xff] }
 0x38e   :  { %v6298_v59 = vpack.c.bf16 %v3157_v21, %v3153_v17  ;;  %6297 = vmatprep.subr.bf16.mxu1 %v6296_v54  ;;  %v7715_v54 = vsub.s32 0, %v7602_v16  ;;  %v3155_v17 = vld [vmem:[%s7912_s6 + $0x10] sm:$0xff]  ;;  %v3159_v21 = vld [vmem:[%s7912_s6 + $0x38] sm:$0xff] }
 0x38f   :  { %v2753_v43 = vmul.f32 %v7606_v33, %v7636_v34 }
 0x391   :  { %v2773_v0 = vrot.slane %v2753_v43, 4  ;;  %v2788_v14 = vmul.f32 %v2753_v43, %v7636_v34 }
 0x393   :  { %v2808_v27 = vrot.slane %v2788_v14, 4  ;;  %v2774_v36 = vadd.f32 %v2773_v0, %v2753_v43  ;;  %v6300_v43 = vpack.c.bf16 %v3160_v10, %v3156_v25  ;;  %v3404_v0 = vld [vmem:[%s7915_s9 + $0x188] sm:$0xff]  ;;  %v3371_v25 = vld [vmem:[%s7915_s9 + $0x80] sm:$0xff] }
 0x394   :  { %v3372_v10 = vld [vmem:[%s7915_s9 + $0x88] sm:$0xff] }
 0x395   :  { %v2809_v39 = vadd.f32 %v2808_v27, %v2788_v14  ;;  %v2775_v51 = vrot.slane %v2774_v36, 2  ;;  %v6336_v14 = vpack.c.bf16 %v3404_v0, %v3403_v50  ;;  %v3388_v27 = vld [vmem:[%s7915_s9 + $0x108] sm:$0xff]  ;;  %v6302_v50 = vpack.c.bf16 %v3159_v21, %v3155_v17 }
 0x396   :  { %v6304_v0 = vpack.c.bf16 %v3372_v10, %v3371_v25  ;;  %v3368_v17 = vld [vmem:[%s7915_s9 + $0x68] sm:$0xff]  ;;  %v3397_v25 = vld [vmem:[%s7915_s9 + $0x150] sm:$0xff]  ;;  %v3398_v10 = vld [vmem:[%s7915_s9 + $0x158] sm:$0xff] }
 0x397   :  { %v2776_v46 = vadd.f32 %v2775_v51, %v2774_v36  ;;  %v2810_v62 = vrot.slane %v2809_v39, 2  ;;  %6337 = vmatprep.subr.bf16.mxu0 %v6336_v14  ;;  %v6338_v36 = vpack.c.bf16 %v3388_v27, %v3387_v12  ;;  %v3355_v14 = vld [vmem:[%s7915_s9] sm:$0xff]  ;;  %v3356_v12 = vld [vmem:[%s7915_s9 + $0x8] sm:$0xff] }
 0x399   :  { %v2777_v53 = vrot.slane %v2776_v46, 1  ;;  %v2811_v55 = vadd.f32 %v2810_v62, %v2809_v39  ;;  %v3406_v39 = vld [vmem:[%s7915_s9 + $0x198] sm:$0xff] }
 0x39a   :  { %v6340_v51 = vpack.c.bf16 %v3406_v39, %v3405_v37  ;;  %v3374_v37 = vld [vmem:[%s7915_s9 + $0x98] sm:$0xff]  ;;  %v6306_v39 = vpack.c.bf16 %v3356_v12, %v3355_v14  ;;  %v3415_v14 = vld [vmem:[%s7915_s9 + $0x1e0] sm:$0xff] }
 0x39b   :  { %v2812_v13 = vrot.slane %v2811_v55, 1  ;;  %v2778_v42 = vadd.f32 %v2777_v53, %v2776_v46  ;;  %v3390_v46 = vld [vmem:[%s7915_s9 + $0x118] sm:$0xff]  ;;  %v3408_v53 = vld [vmem:[%s7915_s9 + $0x1a8] sm:$0xff] }
 0x39c   :  { %v6342_v62 = vpack.c.bf16 %v3390_v46, %v3389_v19  ;;  %v3357_v19 = vld [vmem:[%s7915_s9 + $0x10] sm:$0xff]  ;;  %v3358_v46 = vld [vmem:[%s7915_s9 + $0x18] sm:$0xff] }
 0x39d   :  { %v2813_v40 = vadd.f32 %v2812_v13, %v2811_v55  ;;  %v6344_v55 = vpack.c.bf16 %v3408_v53, %v3407_v20  ;;  %v3392_v13 = vld [vmem:[%s7915_s9 + $0x128] sm:$0xff]  ;;  %v6310_v53 = vpack.c.bf16 %v3358_v46, %v3357_v19  ;;  %v3399_v19 = vld [vmem:[%s7915_s9 + $0x160] sm:$0xff] }
 0x39e   :  { %v6346_v8 = vpack.c.bf16 %v3392_v13, %v3391_v9  ;;  %v3376_v20 = vld [vmem:[%s7915_s9 + $0xa8] sm:$0xff]  ;;  %v3359_v9 = vld [vmem:[%s7915_s9 + $0x20] sm:$0xff] }
 0x39f   :  { %v2824_v56 = vsel %vm2820_vm1, %v2778_v42, %v2813_v40  ;;  %v3409_v42 = vld [vmem:[%s7915_s9 + $0x1b0] sm:$0xff]  ;;  %v3410_v40 = vld [vmem:[%s7915_s9 + $0x1b8] sm:$0xff]  ;;  %v3360_v13 = vld [vmem:[%s7915_s9 + $0x28] sm:$0xff] }
 0x3a0   :  { %3040 = vmatprep.mubr.f32.mxu1 %v2824_v56  ;;  %v6348_v58 = vpack.c.bf16 %v3410_v40, %v3409_v42  ;;  %v3393_v56 = vld [vmem:[%s7915_s9 + $0x130] sm:$0xff]  ;;  %v3378_v42 = vld [vmem:[%s7915_s9 + $0xb8] sm:$0xff]  ;;  %v6314_v40 = vpack.c.bf16 %v3360_v13, %v3359_v9  ;;  %v3400_v46 = vld [vmem:[%s7915_s9 + $0x168] sm:$0xff] }
 0x3a1   :  { %3041 = vmatmul.mubr.f32.vlgmr.msra.gmra.mrb[34].mxu1 %v2823_v63  ;;  %v3394_v63 = vld [vmem:[%s7915_s9 + $0x138] sm:$0xff]  ;;  %v3401_v9 = vld [vmem:[%s7915_s9 + $0x170] sm:$0xff] }
 0x3a2   :  { %3229 = vmatprep.mubr.f32.mxu1 %v6593_v48  ;;  %6299 = vmatpush1.bf16.msra.mxu1 %v6298_v59  ;;  %v3402_v13 = vld [vmem:[%s7915_s9 + $0x178] sm:$0xff] }
 0x3a3   :  { %6301 = vmatprep.subr.bf16.mxu1 %v6300_v43 }
 0x3c9   :  { %v4909_v28 = vpop.f32.mrb[32].mxu1 }
 0x3ca   :  { %v4910_v2 = vpop.f32.mrb[33].mxu1 }
 0x3cb   :  { %v4911_v47 = vadd.f32 %v4910_v2, %v4909_v28  ;;  %v6350_v28 = vpack.c.bf16 %v3394_v63, %v3393_v56  ;;  %v3361_v56 = vld [vmem:[%s7915_s9 + $0x30] sm:$0xff]  ;;  %v3362_v63 = vld [vmem:[%s7915_s9 + $0x38] sm:$0xff] }
 0x3cd   :  { %v2747_v11 = vadd.f32 %v4911_v47, %v2677_v3 }
 0x3cf   :  { %v2754_v30 = vmul.f32 %v7606_v33, %v2747_v11 }
 0x3d1   :  { %v2779_v45 = vrot.slane %v2754_v30, 4  ;;  %v2789_v49 = vmul.f32 %v2754_v30, %v2747_v11 }
 0x3d3   :  { %v2780_v5 = vadd.f32 %v2779_v45, %v2754_v30  ;;  %v2814_v29 = vrot.slane %v2789_v49, 4 }
 0x3d5   :  { %v2781_v57 = vrot.slane %v2780_v5, 2  ;;  %v2815_v7 = vadd.f32 %v2814_v29, %v2789_v49 }
 0x3d7   :  { %v2816_v52 = vrot.slane %v2815_v7, 2  ;;  %v2782_v61 = vadd.f32 %v2781_v57, %v2780_v5 }
 0x3d9   :  { %v2817_v38 = vadd.f32 %v2816_v52, %v2815_v7  ;;  %v2783_v1 = vrot.slane %v2782_v61, 1 }
 0x3db   :  { %v2818_v4 = vrot.slane %v2817_v38, 1  ;;  %v2784_v6 = vadd.f32 %v2783_v1, %v2782_v61  ;;  %v6596_v61 = vmov 1966171168  }
 0x3dd   :  { %v2819_v15 = vadd.f32 %v2818_v4, %v2817_v38  ;;  %v3127_v38 = vunpack.c.l.s4 %v6596_v61  ;;  %v3366_v61 = vld [vmem:[%s7915_s9 + $0x58] sm:$0xff] }
 0x3df   :  { %v2825_v35 = vsel %vm2820_vm1, %v2784_v6, %v2819_v15  ;;  %v3128_v1 = vunpack.c.0.s8 %v3127_v38 }
 0x3e0   :  { %5107 = vmatmul.mubr.f32.vlgmr.msra.gmra.mrb[36].mxu0 %v2825_v35 }
 0x3e1   :  { %6339 = vmatpush3.bf16.msra.mxu0 %v6338_v36  ;;  %v3131_v4 = vsub.s32 %v3128_v1, %v7602_v16  ;;  %v3373_v36 = vld [vmem:[%s7915_s9 + $0x90] sm:$0xff] }
 0x3e2   :  { %6341 = vmatprep.subr.bf16.mxu0 %v6340_v51  ;;  %v6308_v51 = vpack.c.bf16 %v3374_v37, %v3373_v36  ;;  %v3369_v36 = vld [vmem:[%s7915_s9 + $0x70] sm:$0xff]  ;;  %v3370_v37 = vld [vmem:[%s7915_s9 + $0x78] sm:$0xff] }
 0x3e5   :  { %6343 = vmatpush3.bf16.msra.mxu0 %v6342_v62  ;;  %v3375_v62 = vld [vmem:[%s7915_s9 + $0xa0] sm:$0xff] }
 0x3e6   :  { %6345 = vmatprep.subr.bf16.mxu0 %v6344_v55  ;;  %v6312_v55 = vpack.c.bf16 %v3376_v20, %v3375_v62  ;;  %v6362_v62 = vpack.c.bf16 %v3400_v46, %v3399_v19  ;;  %v3417_v20 = vld [vmem:[%s7915_s9 + $0x1f0] sm:$0xff] }
 0x3e9   :  { %6347 = vmatpush3.bf16.msra.mxu0 %v6346_v8  ;;  %v3377_v8 = vld [vmem:[%s7915_s9 + $0xb0] sm:$0xff] }
 0x3ea   :  { %6349 = vmatprep.subr.bf16.mxu0 %v6348_v58  ;;  %v6316_v58 = vpack.c.bf16 %v3378_v42, %v3377_v8  ;;  %v6366_v8 = vpack.c.bf16 %v3402_v13, %v3401_v9  ;;  %v3329_v42 = vsub.s32 1, %v7602_v16 }
 0x3ed   :  { %6351 = vmatpush3.bf16.msra.mxu0 %v6350_v28  ;;  %v3379_v28 = vld [vmem:[%s7915_s9 + $0xc0] sm:$0xff] }
 0x416   :  { %v4944_v22 = vpop.f32.mrb[34].mxu0 }
 0x417   :  { %v4945_v18 = vpop.f32.mrb[35].mxu0 }
 0x418   :  { %v4946_v44 = vadd.f32 %v4945_v18, %v4944_v22  ;;  %v3122_v22 = vld [vmem:[#allocation10] sm:$0x1] }
 0x474   :  { %v4979_v2 = vpop.f32.mrb[34].mxu1 }
 0x475   :  { %v4980_v3 = vpop.f32.mrb[35].mxu1 }
 0x476   :  { %v4981_v47 = vadd.f32 %v4980_v3, %v4979_v2  ;;  %v3380_v2 = vld [vmem:[%s7915_s9 + $0xc8] sm:$0xff]  ;;  %v6318_v3 = vpack.c.bf16 %v3362_v63, %v3361_v56 }
 0x478   :  { %v3043_v11 = vadd.f32 %v4981_v47, %v4946_v44  ;;  %v6320_v47 = vpack.c.bf16 %v3380_v2, %v3379_v28 }
 0x4b3   :  { %v3112_v30 = vpop.f32.mrb[36].mxu0 }
 0x4b4   :  { %v3113_v45 = vadd.f32 %v3112_v30, %v3043_v11  ;;  %v5108_v49 = vpop.f32.mrb[37].mxu0  ;;  %v3363_v11 = vld [vmem:[%s7915_s9 + $0x40] sm:$0xff]  ;;  %v3364_v30 = vld [vmem:[%s7915_s9 + $0x48] sm:$0xff] }
 0x4b5   :  { %v3381_v49 = vld [vmem:[%s7915_s9 + $0xd0] sm:$0xff] }
 0x4b6   :  { %v3116_v5 = vmul.f32 0.01, %v3113_v45  ;;  %v6322_v45 = vpack.c.bf16 %v3364_v30, %v3363_v11 }
 0x4b8   :  { %v3117_v29 = vmul.f32 %v3116_v5, %v3116_v5 }
 0x4ba   :  { %v3119_v57 = vrot.slane %v3117_v29, 7  ;;  %v3411_v29 = vld [vmem:[%s7915_s9 + $0x1c0] sm:$0xff] }
 0x4bc   :  { %v3121_v7 = vsub.f32 %v3116_v5, %v3119_v57 }
 0x4be   :  { %v3123_v52 = vadd.f32 1e-05, %v3121_v7  ;;  %v3412_v7 = vld [vmem:[%s7915_s9 + $0x1c8] sm:$0xff] }
 0x4bf   :  { %v6352_v38 = vpack.c.bf16 %v3412_v7, %v3411_v29 }
 0x4c0   :  { %6388 = vrsqrt.f32 %v3123_v52  ;;  %v3365_v52 = vld [vmem:[%s7915_s9 + $0x50] sm:$0xff] }
 0x4c1   :  { %v6326_v1 = vpack.c.bf16 %v3366_v61, %v3365_v52  ;;  %6353 = vmatprep.subr.bf16.mxu0 %v6352_v38 }
 0x4ca   :  { %v6389_v6 = vpop.eup %6388 }
 0x4cb   :  { %v3132_v15 = vrot.slane %v6389_v6, %v3131_v4  ;;  %v3396_v6 = vld [vmem:[%s7915_s9 + $0x148] sm:$0xff] }
 0x4cd   :  { %v3133_v35 = vcombine.high %v3132_v15, %v3132_v15 }
 0x4cf   :  { %v3140_v18 = vrot.slane %v3133_v35, %v3131_v4  ;;  %v3395_v4 = vld [vmem:[%s7915_s9 + $0x140] sm:$0xff] }
 0x4d0   :  { %v6354_v15 = vpack.c.bf16 %v3396_v6, %v3395_v4  ;;  %v3383_v35 = vld [vmem:[%s7915_s9 + $0xe0] sm:$0xff] }
 0x4d1   :  { %v3142_v44 = vmul.f32 %v3140_v18, %v3122_v22  ;;  %v3384_v22 = vld [vmem:[%s7915_s9 + $0xe8] sm:$0xff]  ;;  %v3413_v18 = vld [vmem:[%s7915_s9 + $0x1d0] sm:$0xff] }
 0x4d2   :  { %6355 = vmatpush3.bf16.msra.mxu0 %v6354_v15 }
 0x4d3   :  { %v3144_v31 = vmul.f32 %v3142_v44, %v3116_v5  ;;  %v3382_v5 = vld [vmem:[%s7915_s9 + $0xd8] sm:$0xff] }
 0x4d4   :  { %v6324_v57 = vpack.c.bf16 %v3382_v5, %v3381_v49 }
 0x4d5   :  { %v3145_v59 = vsub.f32 %v3143_v24, %v3144_v31  ;;  %v3414_v24 = vld [vmem:[%s7915_s9 + $0x1d8] sm:$0xff]  ;;  %v3367_v31 = vld [vmem:[%s7915_s9 + $0x60] sm:$0xff] }
 0x4d6   :  { %v6356_v21 = vpack.c.bf16 %v3414_v24, %v3413_v18  ;;  %v3610_v18 = vld [vmem:[#allocation13 + $0x8] sm:$0xff]  ;;  %v3612_v24 = vld [vmem:[#allocation13 + $0x18] sm:$0xff] }
 0x4d7   :  { %v3150_v43 = vrot.slane %v3145_v59, %v7715_v54  ;;  %v6330_v59 = vpack.c.bf16 %v3368_v17, %v3367_v31 }
 0x4d8   :  { %6357 = vmatprep.subr.bf16.mxu0 %v6356_v21 }
 0x4d9   :  { %v3152_v27 = vsel %vm2820_vm1, %v3142_v44, %v3150_v43  ;;  %v6328_v44 = vpack.c.bf16 %v3384_v22, %v3383_v35  ;;  %v6358_v43 = vpack.c.bf16 %v3398_v10, %v3397_v25 }
 0x4da   :  { %3716 = vmatmul.mubr.msk.f32.vlgmr.msra.gmra.mrb[36].mxu1 %vm3161_vm3, %v3152_v27 }
 0x4db   :  { %6303 = vmatpush1.bf16.msra.mxu1 %v6302_v50  ;;  %3300 = vmatprep.mubr.f32.mxu1 %v6593_v48  ;;  %v3385_v50 = vld [vmem:[%s7915_s9 + $0xf0] sm:$0xff] }
 0x4dc   :  { %6305 = vmatprep.subr.bf16.mxu1 %v6304_v0  ;;  %v3386_v0 = vld [vmem:[%s7915_s9 + $0xf8] sm:$0xff]  ;;  %6359 = vmatpush3.bf16.msra.mxu0 %v6358_v43 }
 0x4dd   :  { %v6332_v12 = vpack.c.bf16 %v3386_v0, %v3385_v50 }
 0x4de   :  { %3717 = vmatmul.mubr.msk.f32.vlgmr.msra.gmra.mrb[38].mxu1 %vm3161_vm3, %v3152_v27  ;;  %v3416_v27 = vld [vmem:[%s7915_s9 + $0x1e8] sm:$0xff] }
 0x4df   :  { %6307 = vmatpush3.bf16.msra.mxu1 %v6306_v39  ;;  %v6360_v39 = vpack.c.bf16 %v3416_v27, %v3415_v14 }
 0x4e0   :  { %6309 = vmatprep.subr.bf16.mxu1 %v6308_v51  ;;  %v6334_v51 = vpack.c.bf16 %v3370_v37, %v3369_v36 }
 0x4e1   :  { %6361 = vmatprep.subr.bf16.mxu0 %v6360_v39 }
 0x4e2   :  { %6363 = vmatpush3.bf16.msra.mxu0 %v6362_v62 }
 0x4e3   :  { %6311 = vmatpush3.bf16.msra.mxu1 %v6310_v53  ;;  %v3418_v53 = vld [vmem:[%s7915_s9 + $0x1f8] sm:$0xff] }
 0x4e4   :  { %6313 = vmatprep.subr.bf16.mxu1 %v6312_v55  ;;  %v6364_v55 = vpack.c.bf16 %v3418_v53, %v3417_v20 }
 0x4e6   :  { %6365 = vmatprep.subr.bf16.mxu0 %v6364_v55 }
 0x4e7   :  { %6315 = vmatpush3.bf16.msra.mxu1 %v6314_v40  ;;  %6367 = vmatpush3.bf16.msra.mxu0 %v6366_v8 }
 0x4e8   :  { %6317 = vmatprep.subr.bf16.mxu1 %v6316_v58 }
 0x4eb   :  { %6319 = vmatpush3.bf16.msra.mxu1 %v6318_v3 }
 0x4ec   :  { %6321 = vmatprep.subr.bf16.mxu1 %v6320_v47 }
 0x4ef   :  { %6323 = vmatpush3.bf16.msra.mxu1 %v6322_v45 }
 0x4f0   :  { %6325 = vmatprep.subr.bf16.mxu1 %v6324_v57 }
 0x4f3   :  { %6327 = vmatpush3.bf16.msra.mxu1 %v6326_v1 }
 0x4f4   :  { %6329 = vmatprep.subr.bf16.mxu1 %v6328_v44  ;;  %v3611_v44 = vld [vmem:[#allocation13 + $0x10] sm:$0xff] }
 0x4f5   :  { %v6372_v31 = vpack.c.bf16 %v3612_v24, %v3611_v44 }
 0x4f7   :  { %6331 = vmatpush3.bf16.msra.mxu1 %v6330_v59 }
 0x4f8   :  { %6333 = vmatprep.subr.bf16.mxu1 %v6332_v12 }
 0x4fb   :  { %6335 = vmatpush3.bf16.msra.mxu1 %v6334_v51 }
 0x4fc   :  { %6368 = vmatprep.subr.bf16.mxu1 %v6594_v41 }
 0x5ad   :  { %v3231_v40 = vpop.f32.mrb[36].mxu1 }
 0x5ae   :  { %v3310_v58 = vrot.slane %v3231_v40, %v7715_v54  ;;  %v3233_v56 = vpop.f32.mrb[37].mxu1  ;;  %v3330_v2 = vrot.slane %v3231_v40, %v3329_v42 }
 0x5af   :  { %v3314_v63 = vrot.slane %v3233_v56, %v7715_v54  ;;  %v3334_v47 = vrot.slane %v3233_v56, %v3329_v42  ;;  %v3588_v56 = vld [vmem:[%s7917_s11] sm:$0x1] }
 0x5b0   :  { %v3323_v28 = vmul.f32 %v3310_v58, %v7599_v23 }
 0x5b1   :  { %v3324_v3 = vmul.f32 %v3314_v63, %v7613_v60  ;;  %v3302_v11 = vpop.f32.mrb[38].mxu1 }
 0x5b2   :  { %v3343_v30 = vadd.f32 %v3330_v2, %v3323_v28  ;;  %v3318_v45 = vrot.slane %v3302_v11, %v7715_v54  ;;  %v3304_v49 = vpop.f32.mrb[39].mxu1  ;;  %v3338_v7 = vrot.slane %v3302_v11, %v3329_v42 }
 0x5b3   :  { %v3344_v5 = vadd.f32 %v3334_v47, %v3324_v3  ;;  %v3322_v16 = vrot.slane %v3304_v49, %v7715_v54  ;;  %v3342_v23 = vrot.slane %v3304_v49, %v3329_v42  ;;  %v3719_v47 = vld [vmem:[%s7918_s12] ss:$0 sm:$0xff] }
 0x5b4   :  { %v3347_v29 = vmul.f32 0.2, %v3343_v30  ;;  %v3325_v57 = vmul.f32 %v3318_v45, %v7624_v32  ;;  %v3609_v32 = vld [vmem:[#allocation13] sm:$0xff] }
 0x5b5   :  { %v3348_v52 = vmul.f32 0.2, %v3344_v5  ;;  %v3326_v61 = vmul.f32 %v3322_v16, %v7636_v34  ;;  %v6369_v34 = vpack.c.bf16 %v3610_v18, %v3609_v32 }
 0x5b6   :  { %v3345_v38 = vadd.f32 %v3338_v7, %v3325_v57  ;;  %v3351_v4 = vmax.f32 %v3343_v30, %v3347_v29 }
 0x5b7   :  { %v3346_v1 = vadd.f32 %v3342_v23, %v3326_v61  ;;  %v3352_v60 = vmax.f32 %v3344_v5, %v3348_v52  ;;  %v3720_v5 = vld [vmem:[%s7920_s14] ss:$0 sm:$0xff]  ;;  %v3694_v23 = vand.u32 127, %v151_v26 }
 0x5b8   :  { %v3349_v6 = vmul.f32 0.2, %v3345_v38 }
 0x5b9   :  { %v3350_v15 = vmul.f32 0.2, %v3346_v1  ;;  %3490 = vmatprep.mubr.f32.mxu1 %v3352_v60  ;;  %vm3701_vm5 = vcmp.eq.s32.totalorder %v3694_v23, 1 }
 0x5ba   :  { %3491 = vmatmul.mubr.f32.vlgmr.msra.gmra.mrb[40].mxu1 %v3351_v4  ;;  %v3353_v22 = vmax.f32 %v3345_v38, %v3349_v6 }
 0x5bb   :  { %v3354_v35 = vmax.f32 %v3346_v1, %v3350_v15  ;;  %5117 = vmatprep.mubr.msk.f32.mxu1 %vm6595_vm2, %v6593_v48  ;;  %6370 = vmatpush3.bf16.msra.mxu1 %v6369_v34  ;;  %v3718_v48 = vld [vmem:[%s7916_s10] ss:$0 sm:$0xff] }
 0x5bc   :  { %6371 = vmatprep.subr.bf16.mxu1 %v6594_v41 }
 0x5bd   :  { %3560 = vmatprep.mubr.f32.mxu0 %v3354_v35 }
 0x5be   :  { %3561 = vmatmul.mubr.f32.vlgmr.msra.gmra.mrb[38].mxu0 %v3353_v22 }
 0x5bf   :  { %6373 = vmatpush3.bf16.msra.mxu1 %v6372_v31 }
 0x68d   :  { %v5031_v17 = vpop.f32.mrb[40].mxu1 }
 0x68e   :  { %v5032_v21 = vpop.f32.mrb[41].mxu1 }
 0x68f   :  { %v5033_v59 = vadd.f32 %v5032_v21, %v5031_v17 }
 0x691   :  { %v5066_v25 = vpop.f32.mrb[38].mxu0  ;;  %v3493_v43 = vadd.f32 %v5033_v59, %v3718_v48 }
 0x692   :  { %v5067_v10 = vpop.f32.mrb[39].mxu0 }
 0x693   :  { %v5068_v50 = vadd.f32 %v5067_v10, %v5066_v25 }
 0x695   :  { %v3563_v0 = vadd.f32 %v5068_v50, %v3493_v43 }
 0x697   :  { %v3566_v14 = vmul.f32 %v7606_v33, %v3563_v0 }
 0x699   :  { %v3576_v12 = vmul.f32 %v3566_v14, %v3563_v0  ;;  %v3568_v27 = vsel %vm3567_vm4, %v3566_v14, 0.0 }
 0x69a   :  { %v3569_v41 = vrot.slane %v3568_v27, 4 }
 0x69b   :  { %v3577_v36 = vsel %vm3567_vm4, %v3576_v12, 0.0 }
 0x69c   :  { %v3570_v37 = vadd.f32 %v3569_v41, %v3568_v27  ;;  %v3578_v39 = vrot.slane %v3577_v36, 4 }
 0x69e   :  { %v3571_v51 = vrot.slane %v3570_v37, 2  ;;  %v3579_v19 = vadd.f32 %v3578_v39, %v3577_v36 }
 0x6a0   :  { %v3572_v46 = vadd.f32 %v3571_v51, %v3570_v37  ;;  %v3580_v62 = vrot.slane %v3579_v19, 2 }
 0x6a2   :  { %v3573_v20 = vrot.slane %v3572_v46, 1  ;;  %v3581_v53 = vadd.f32 %v3580_v62, %v3579_v19 }
 0x6a4   :  { %v3574_v55 = vadd.f32 %v3573_v20, %v3572_v46  ;;  %v3582_v9 = vrot.slane %v3581_v53, 1 }
 0x6a6   :  { %v3575_v13 = vmul.f32 0.25, %v3574_v55  ;;  %v3583_v8 = vadd.f32 %v3582_v9, %v3581_v53 }
 0x6a8   :  { %v3584_v42 = vmul.f32 0.25, %v3583_v8  ;;  %v3585_v33 = vmul.f32 %v3575_v13, %v3575_v13  ;;  %v3587_v2 = vsub.f32 %v3563_v0, %v3575_v13 }
 0x6aa   :  { %v3586_v40 = vsub.f32 %v3584_v42, %v3585_v33 }
 0x6ac   :  { %v3589_v58 = vadd.f32 1e-05, %v3586_v40 }
 0x6ae   :  { %6390 = vrsqrt.f32 %v3589_v58 }
 0x6b8   :  { %v6391_v63 = vpop.eup %6390 }
 0x6b9   :  { %v3591_v28 = vmul.f32 %v6391_v63, %v3588_v56 }
 0x6bb   :  { %v3596_v3 = vrot.slane %v3591_v28, %v7715_v54 }
 0x6bd   :  { %v3598_v11 = vmul.f32 %v3596_v3, %v3587_v2 }
 0x6bf   :  { %v3606_v30 = vadd.f32 %v3719_v47, %v3598_v11 }
 0x6c1   :  { %v3607_v45 = vmul.f32 0.2, %v3606_v30 }
 0x6c3   :  { %v3608_v49 = vmax.f32 %v3606_v30, %v3607_v45 }
 0x6c5   :  { %5118 = vmatmul.mubr.msk.f32.vlgmr.msra.gmra.mrb[42].mxu1 %vm3567_vm4, %v3608_v49 }
 0x798   :  { %v3689_v16 = vpop.f32.mrb[42].mxu1 }
 0x799   :  { %v3690_v29 = vadd.f32 %v3720_v5, %v3689_v16  ;;  %v5119_v57 = vpop.f32.mrb[43].mxu1 }
 0x79b   :  { %v3695_v7 = vsub.f32 0.0, %v3690_v29 }
 0x79d   :  { %v3696_v52 = vmul.f32 1.442695, %v3695_v7 }
 0x79f   :  { %6392 = vpow2.f32 %v3696_v52 }
 0x7a9   :  { %v6393_v54 = vpop.eup %6392 }
 0x7aa   :  { %v3698_v61 = vadd.f32 1.0, %v6393_v54 }
 0x7ac   :  { %6394 = vrcp.f32 %v3698_v61 }
 0x7b6   :  { %v6395_v38 = vpop.eup %6394 }
 0x7b7   :  { %v3702_v1 = vsel %vm3701_vm5, %v6395_v38, %v3690_v29 }
 0x7b8   :  { %3703 = vst [vmem:[%s7921_s15] sm:$0xff] %v3702_v1 }
 0x7b9   :  { %3708 = vsyncpa [#allocation3], 1 }
 0x7ba   :  { %3709 = vsyncpa [#allocation5], 1 }
 0x7bb   :  { %3710 = vsyncpa [#allocation8], 1 }
 0x7bc   :  { %3711 = vsyncpa [#allocation11], 1 }
 0x7bd   :  { %3712 = vsyncpa [#allocation14], 1 }

</bundles_post_ra>
